<compile_context>
chip_gen: v6e
topology: v6e:2x2x1
jax: 0.10.0
libtpu: 0.0.40
codegen_flags: <defaults>
</compile_context>

<pallas_src>
import jax
import jax.numpy as jnp
from jax.experimental import pallas as pl
from jax.experimental.pallas import tpu as pltpu


def lstm_kernel(xT_ref,      # (D, T*B)   column t*B+b == x[b, t, :]
                w_in_ref,    # (8H, D)    gate-interleaved [W_ih0 rows | zero rows]
                b_in_ref,    # (8H, 1)    gate-interleaved [b0 rows | b1 rows]
                w_comb_ref,  # (8H, 2H)   gate-interleaved [[W_hh0|0],[W_ih1|W_hh1]]
                w_fc_ref,    # (D, H)     fc weight
                b_fc_ref,    # (D, 1)     fc bias
                out_ref,     # (D, B)     transposed output
                bias_ref):   # (T, 8H, B) VMEM scratch: per-step additive gate terms
    eight_h = w_comb_ref.shape[0]
    H = eight_h // 8
    D, B = out_ref.shape
    T = bias_ref.shape[0]

    # Row-block layout (each block H rows): [i0, i1, f0, f1, g0, g1, o0, o1];
    # "*0" rows belong to layer 0 (pipelined one step ahead), "*1" to layer 1.

    # ---- Hoisted layer-0 input projection: ONE MXU matmul over all T*B
    # columns, biases folded in.  Column t holds (gate-interleaved):
    #   layer-0 rows: W_ih0 @ x_t + b0      layer-1 rows: b1 (weights are 0).
    full = jnp.dot(w_in_ref[...], xT_ref[...],
                   preferred_element_type=jnp.float32) + b_in_ref[...]

    # ---- Stage per-step additive gate terms into a T-leading VMEM scratch so
    # the recurrent loop does a lane-aligned leading-axis load (no relayout on
    # the critical path).  Loop step t consumes layer-0 gates of step t+1 plus
    # b1; slot T-1 reuses column 0 (its layer-0 rows are never consumed, and
    # its layer-1 rows are exactly b1 for every column).
    for t in range(T):
        src = (t + 1) % T
        bias_ref[t] = full[:, src * B:(src + 1) * B]

    w_comb = w_comb_ref[...]

    # ---- Prologue: layer-0 cell at t=0 (h0_{-1} = c0_{-1} = 0, so its
    # recurrent matmul vanishes; gates come straight from column 0).
    col0 = full[:, 0:B]
    i0 = jax.nn.sigmoid(col0[0 * H:1 * H, :])
    g0 = jnp.tanh(col0[4 * H:5 * H, :])
    o0 = jax.nn.sigmoid(col0[6 * H:7 * H, :])
    c0 = i0 * g0                          # forget gate drops out against c=0
    h0 = o0 * jnp.tanh(c0)
    zero = jnp.zeros((H, B), jnp.float32)
    h_stack = jnp.concatenate([h0, zero], axis=0)   # [h0_t ; h1_{t-1}]
    c_stack = jnp.concatenate([c0, zero], axis=0)   # [c0_t ; c1_{t-1}]

    # ---- Software-pipelined recurrence: ONE fused matmul per step.  Layer-0
    # rows produce step t+1, layer-1 rows produce step t; both need only
    # [h0_t ; h1_{t-1}].  T is a static Python int -> fully unrolled.
    two_h = 2 * H
    for t in range(T):
        combo = jnp.dot(w_comb, h_stack, preferred_element_type=jnp.float32)
        gates = combo + bias_ref[t]                    # (8H, B)
        sig = jax.nn.sigmoid(gates)                    # one EUP pass; g rows = filler
        i_g = sig[0 * two_h:1 * two_h, :]              # [i0_{t+1} ; i1_t]
        f_g = sig[1 * two_h:2 * two_h, :]              # [f0_{t+1} ; f1_t]
        g_g = jnp.tanh(gates[2 * two_h:3 * two_h, :])  # [g0_{t+1} ; g1_t]
        o_g = sig[3 * two_h:4 * two_h, :]              # [o0_{t+1} ; o1_t]
        c_stack = f_g * c_stack + i_g * g_g            # [c0_{t+1} ; c1_t]
        h_stack = o_g * jnp.tanh(c_stack)              # [h0_{t+1} ; h1_t]
    # The last iteration's layer-0 half is a phantom step T that is computed
    # but never consumed; its inputs are finite so it cannot poison anything.

    # ---- fc head on the last-step hidden state of the top layer (h1_{T-1}).
    h1_last = h_stack[H:2 * H, :]
    out_ref[...] = (jnp.dot(w_fc_ref[...], h1_last,
                            preferred_element_type=jnp.float32) + b_fc_ref[...])


def _gate_blocks(a, H):
    """Split the leading 4H axis (PyTorch i,f,g,o order) into the 4 gates."""
    return a[0 * H:1 * H], a[1 * H:2 * H], a[2 * H:3 * H], a[3 * H:4 * H]


@jax.jit
def lstm_model_forward(x, params):
    """x: (B, T, D) float32, batch_first like the PyTorch module. Returns (B, D)."""
    B, T, D = x.shape
    H = params["w_hh0"].shape[1]

    # Column-major ("transposed") activations: features on sublanes, batch on
    # lanes.  Column t*B+b of xT is x[b, t, :].
    xT = jnp.transpose(x, (2, 1, 0)).reshape(D, T * B)

    b0 = (params["b_ih0"] + params["b_hh0"]).reshape(4 * H, 1)
    b1 = (params["b_ih1"] + params["b_hh1"]).reshape(4 * H, 1)

    ih0 = _gate_blocks(params["w_ih0"], H)    # 4 x (H, D)
    hh0 = _gate_blocks(params["w_hh0"], H)    # 4 x (H, H)
    ih1 = _gate_blocks(params["w_ih1"], H)    # 4 x (H, H)
    hh1 = _gate_blocks(params["w_hh1"], H)    # 4 x (H, H)
    b0g = _gate_blocks(b0, H)
    b1g = _gate_blocks(b1, H)

    # Gate-interleaved row order [i0,i1,f0,f1,g0,g1,o0,o1]; columns [h0 | h1].
    z_hh = jnp.zeros((H, H), jnp.float32)
    z_hd = jnp.zeros((H, D), jnp.float32)
    comb_rows, in_rows, bias_rows = [], [], []
    for k in range(4):                        # i, f, g, o
        comb_rows.append(jnp.concatenate([hh0[k], z_hh], axis=1))    # layer-0 rows
        comb_rows.append(jnp.concatenate([ih1[k], hh1[k]], axis=1))  # layer-1 rows
        in_rows += [ih0[k], z_hd]
        bias_rows += [b0g[k], b1g[k]]
    w_comb = jnp.concatenate(comb_rows, axis=0)    # (8H, 2H)
    w_in = jnp.concatenate(in_rows, axis=0)        # (8H, D)
    b_in = jnp.concatenate(bias_rows, axis=0)      # (8H, 1)

    b_fc = params["b_fc"].reshape(D, 1)

    args = (xT, w_in, b_in, w_comb, params["w_fc"], b_fc)
    vmem = pl.BlockSpec(memory_space=pltpu.MemorySpace.VMEM)
    outT = pl.pallas_call(
        lstm_kernel,
        out_shape=jax.ShapeDtypeStruct((D, B), jnp.float32),
        in_specs=[vmem] * len(args),
        out_specs=vmem,
        scratch_shapes=[pltpu.VMEM((T, 8 * H, B), jnp.float32)],
    )(*args)
    return outT.T                                            # (B, D)


def init_params(key, input_dim, hidden_dim):
    """Deterministic init with PyTorch-native shapes."""
    H, D = hidden_dim, input_dim
    bound = 1.0 / jnp.sqrt(jnp.float32(H))
    ks = jax.random.split(key, 12)

    def u(k, shape):
        return jax.random.uniform(k, shape, jnp.float32, -bound, bound)

    return dict(
        w_ih0=u(ks[0], (4 * H, D)), w_hh0=u(ks[1], (4 * H, H)),
        b_ih0=u(ks[2], (4 * H,)),  b_hh0=u(ks[3], (4 * H,)),
        w_ih1=u(ks[4], (4 * H, H)), w_hh1=u(ks[5], (4 * H, H)),
        b_ih1=u(ks[6], (4 * H,)),  b_hh1=u(ks[7], (4 * H,)),
        w_fc=u(ks[8], (D, H)),     b_fc=u(ks[9], (D,)),
    )


def lstm_model_reference(x, params):
    """Pure-JAX reference of the same forward pass (PyTorch math, row form)."""
    B, T, D = x.shape
    H = params["w_hh0"].shape[1]
    b0 = params["b_ih0"] + params["b_hh0"]
    b1 = params["b_ih1"] + params["b_hh1"]

    def cell(x_t, h, c, w_ih, w_hh, b):
        gates = x_t @ w_ih.T + h @ w_hh.T + b
        i = jax.nn.sigmoid(gates[:, 0 * H:1 * H])
        f = jax.nn.sigmoid(gates[:, 1 * H:2 * H])
        g = jnp.tanh(gates[:, 2 * H:3 * H])
        o = jax.nn.sigmoid(gates[:, 3 * H:4 * H])
        c = f * c + i * g
        return o * jnp.tanh(c), c

    h0 = c0 = h1 = c1 = jnp.zeros((B, H), jnp.float32)
    for t in range(T):
        h0, c0 = cell(x[:, t, :], h0, c0, params["w_ih0"], params["w_hh0"], b0)
        h1, c1 = cell(h0, h1, c1, params["w_ih1"], params["w_hh1"], b1)
    return h1 @ params["w_fc"].T + params["b_fc"]


if __name__ == "__main__":
    B, T, D, H = 2, 8, 8, 16
    key = jax.random.PRNGKey(0)
    k_x, k_p = jax.random.split(key)
    x = jax.random.normal(k_x, (B, T, D), jnp.float32)
    params = init_params(k_p, input_dim=D, hidden_dim=H)

    out = jax.block_until_ready(lstm_model_forward(x, params))
    ref = jax.block_until_ready(lstm_model_reference(x, params))

    assert out.shape == (B, D)
    # Tolerance covers default (bf16-pass) MXU matmul precision on both sides;
    # set precision=HIGHEST on the dots if bit-closer agreement is required.
    assert jnp.allclose(out, ref, atol=2e-3, rtol=2e-3), "mismatch vs JAX reference"
    print("KERNEL_OK")
</pallas_src>

<mosaic_0001>
module attributes {stable_mosaic.version = 11 : i64} {
  func.func @lstm_kernel(%arg0: memref<8x16xf32, #tpu.memory_space<vmem>>, %arg1: memref<128x8xf32, #tpu.memory_space<vmem>>, %arg2: memref<128x1xf32, #tpu.memory_space<vmem>>, %arg3: memref<128x32xf32, #tpu.memory_space<vmem>>, %arg4: memref<8x16xf32, #tpu.memory_space<vmem>>, %arg5: memref<8x1xf32, #tpu.memory_space<vmem>>, %arg6: memref<8x2xf32, #tpu.memory_space<vmem>>, %arg7: memref<8x128x2xf32, #tpu.memory_space<vmem>>) attributes {dimension_semantics = [], scalar_prefetch = 0 : i64, scratch_operands = 1 : i64, tpu.core_type = #tpu.core_type<tc>} {
    %c0 = arith.constant 0 : index
    %c0_0 = arith.constant 0 : index
    %0 = vector.load %arg1[%c0, %c0_0] : memref<128x8xf32, #tpu.memory_space<vmem>>, vector<128x8xf32>
    %c0_1 = arith.constant 0 : index
    %c0_2 = arith.constant 0 : index
    %1 = vector.load %arg0[%c0_1, %c0_2] : memref<8x16xf32, #tpu.memory_space<vmem>>, vector<8x16xf32>
    %cst = arith.constant dense<0.000000e+00> : vector<128x16xf32>
    %2 = tpu.matmul %0, %1, %cst {dimension_numbers = #tpu.dot_dimension_numbers<[1], [0], [0], [1], [0, 0, 1, 1], [], []>} : vector<128x8xf32>, vector<8x16xf32>, vector<128x16xf32> -> vector<128x16xf32>
    %c0_3 = arith.constant 0 : index
    %c0_4 = arith.constant 0 : index
    %3 = vector.load %arg2[%c0_3, %c0_4] : memref<128x1xf32, #tpu.memory_space<vmem>>, vector<128x1xf32>
    %4 = vector.broadcast %3 : vector<128x1xf32> to vector<128x16xf32>
    %5 = arith.addf %2, %4 : vector<128x16xf32>
    %6 = vector.extract_strided_slice %5 {offsets = [0, 2], sizes = [128, 2], strides = [1, 1]} : vector<128x16xf32> to vector<128x2xf32>
    %c0_5 = arith.constant 0 : index
    %c0_6 = arith.constant 0 : index
    %c0_7 = arith.constant 0 : index
    %7 = vector.load %arg7[%c0_5, %c0_6, %c0_7] : memref<8x128x2xf32, #tpu.memory_space<vmem>>, vector<1x128x2xf32>
    %8 = vector.shape_cast %7 : vector<1x128x2xf32> to vector<128x2xf32>
    %9 = vector.shape_cast %6 : vector<128x2xf32> to vector<1x128x2xf32>
    tpu.vector_store %arg7[%c0_5, %c0_6, %c0_7], %9 {strides = array<i32>} : memref<8x128x2xf32, #tpu.memory_space<vmem>>, vector<1x128x2xf32>,
    %10 = vector.extract_strided_slice %5 {offsets = [0, 4], sizes = [128, 2], strides = [1, 1]} : vector<128x16xf32> to vector<128x2xf32>
    %c1 = arith.constant 1 : index
    %c0_8 = arith.constant 0 : index
    %c0_9 = arith.constant 0 : index
    %11 = vector.load %arg7[%c1, %c0_8, %c0_9] : memref<8x128x2xf32, #tpu.memory_space<vmem>>, vector<1x128x2xf32>
    %12 = vector.shape_cast %11 : vector<1x128x2xf32> to vector<128x2xf32>
    %13 = vector.shape_cast %10 : vector<128x2xf32> to vector<1x128x2xf32>
    tpu.vector_store %arg7[%c1, %c0_8, %c0_9], %13 {strides = array<i32>} : memref<8x128x2xf32, #tpu.memory_space<vmem>>, vector<1x128x2xf32>,
    %14 = vector.extract_strided_slice %5 {offsets = [0, 6], sizes = [128, 2], strides = [1, 1]} : vector<128x16xf32> to vector<128x2xf32>
    %c2 = arith.constant 2 : index
    %c0_10 = arith.constant 0 : index
    %c0_11 = arith.constant 0 : index
    %15 = vector.load %arg7[%c2, %c0_10, %c0_11] : memref<8x128x2xf32, #tpu.memory_space<vmem>>, vector<1x128x2xf32>
    %16 = vector.shape_cast %15 : vector<1x128x2xf32> to vector<128x2xf32>
    %17 = vector.shape_cast %14 : vector<128x2xf32> to vector<1x128x2xf32>
    tpu.vector_store %arg7[%c2, %c0_10, %c0_11], %17 {strides = array<i32>} : memref<8x128x2xf32, #tpu.memory_space<vmem>>, vector<1x128x2xf32>,
    %18 = vector.extract_strided_slice %5 {offsets = [0, 8], sizes = [128, 2], strides = [1, 1]} : vector<128x16xf32> to vector<128x2xf32>
    %c3 = arith.constant 3 : index
    %c0_12 = arith.constant 0 : index
    %c0_13 = arith.constant 0 : index
    %19 = vector.load %arg7[%c3, %c0_12, %c0_13] : memref<8x128x2xf32, #tpu.memory_space<vmem>>, vector<1x128x2xf32>
    %20 = vector.shape_cast %19 : vector<1x128x2xf32> to vector<128x2xf32>
    %21 = vector.shape_cast %18 : vector<128x2xf32> to vector<1x128x2xf32>
    tpu.vector_store %arg7[%c3, %c0_12, %c0_13], %21 {strides = array<i32>} : memref<8x128x2xf32, #tpu.memory_space<vmem>>, vector<1x128x2xf32>,
    %22 = vector.extract_strided_slice %5 {offsets = [0, 10], sizes = [128, 2], strides = [1, 1]} : vector<128x16xf32> to vector<128x2xf32>
    %c4 = arith.constant 4 : index
    %c0_14 = arith.constant 0 : index
    %c0_15 = arith.constant 0 : index
    %23 = vector.load %arg7[%c4, %c0_14, %c0_15] : memref<8x128x2xf32, #tpu.memory_space<vmem>>, vector<1x128x2xf32>
    %24 = vector.shape_cast %23 : vector<1x128x2xf32> to vector<128x2xf32>
    %25 = vector.shape_cast %22 : vector<128x2xf32> to vector<1x128x2xf32>
    tpu.vector_store %arg7[%c4, %c0_14, %c0_15], %25 {strides = array<i32>} : memref<8x128x2xf32, #tpu.memory_space<vmem>>, vector<1x128x2xf32>,
    %26 = vector.extract_strided_slice %5 {offsets = [0, 12], sizes = [128, 2], strides = [1, 1]} : vector<128x16xf32> to vector<128x2xf32>
    %c5 = arith.constant 5 : index
    %c0_16 = arith.constant 0 : index
    %c0_17 = arith.constant 0 : index
    %27 = vector.load %arg7[%c5, %c0_16, %c0_17] : memref<8x128x2xf32, #tpu.memory_space<vmem>>, vector<1x128x2xf32>
    %28 = vector.shape_cast %27 : vector<1x128x2xf32> to vector<128x2xf32>
    %29 = vector.shape_cast %26 : vector<128x2xf32> to vector<1x128x2xf32>
    tpu.vector_store %arg7[%c5, %c0_16, %c0_17], %29 {strides = array<i32>} : memref<8x128x2xf32, #tpu.memory_space<vmem>>, vector<1x128x2xf32>,
    %30 = vector.extract_strided_slice %5 {offsets = [0, 14], sizes = [128, 2], strides = [1, 1]} : vector<128x16xf32> to vector<128x2xf32>
    %c6 = arith.constant 6 : index
    %c0_18 = arith.constant 0 : index
    %c0_19 = arith.constant 0 : index
    %31 = vector.load %arg7[%c6, %c0_18, %c0_19] : memref<8x128x2xf32, #tpu.memory_space<vmem>>, vector<1x128x2xf32>
    %32 = vector.shape_cast %31 : vector<1x128x2xf32> to vector<128x2xf32>
    %33 = vector.shape_cast %30 : vector<128x2xf32> to vector<1x128x2xf32>
    tpu.vector_store %arg7[%c6, %c0_18, %c0_19], %33 {strides = array<i32>} : memref<8x128x2xf32, #tpu.memory_space<vmem>>, vector<1x128x2xf32>,
    %34 = vector.extract_strided_slice %5 {offsets = [0, 0], sizes = [128, 2], strides = [1, 1]} : vector<128x16xf32> to vector<128x2xf32>
    %c7 = arith.constant 7 : index
    %c0_20 = arith.constant 0 : index
    %c0_21 = arith.constant 0 : index
    %35 = vector.load %arg7[%c7, %c0_20, %c0_21] : memref<8x128x2xf32, #tpu.memory_space<vmem>>, vector<1x128x2xf32>
    %36 = vector.shape_cast %35 : vector<1x128x2xf32> to vector<128x2xf32>
    %37 = vector.shape_cast %34 : vector<128x2xf32> to vector<1x128x2xf32>
    tpu.vector_store %arg7[%c7, %c0_20, %c0_21], %37 {strides = array<i32>} : memref<8x128x2xf32, #tpu.memory_space<vmem>>, vector<1x128x2xf32>,
    %c0_22 = arith.constant 0 : index
    %c0_23 = arith.constant 0 : index
    %38 = vector.load %arg3[%c0_22, %c0_23] : memref<128x32xf32, #tpu.memory_space<vmem>>, vector<128x32xf32>
    %39 = vector.extract_strided_slice %5 {offsets = [0, 0], sizes = [128, 2], strides = [1, 1]} : vector<128x16xf32> to vector<128x2xf32>
    %40 = vector.extract_strided_slice %39 {offsets = [0, 0], sizes = [16, 2], strides = [1, 1]} : vector<128x2xf32> to vector<16x2xf32>
    %41 = arith.negf %40 : vector<16x2xf32>
    %42 = math.exp %41 : vector<16x2xf32>
    %cst_24 = arith.constant 1.000000e+00 : f32
    %43 = vector.broadcast %cst_24 : f32 to vector<16x2xf32>
    %44 = arith.addf %43, %42 : vector<16x2xf32>
    %45 = arith.divf %43, %44 : vector<16x2xf32>
    %46 = vector.extract_strided_slice %39 {offsets = [64, 0], sizes = [16, 2], strides = [1, 1]} : vector<128x2xf32> to vector<16x2xf32>
    %47 = math.tanh %46 : vector<16x2xf32>
    %48 = vector.extract_strided_slice %39 {offsets = [96, 0], sizes = [16, 2], strides = [1, 1]} : vector<128x2xf32> to vector<16x2xf32>
    %49 = arith.negf %48 : vector<16x2xf32>
    %50 = math.exp %49 : vector<16x2xf32>
    %cst_25 = arith.constant 1.000000e+00 : f32
    %51 = vector.broadcast %cst_25 : f32 to vector<16x2xf32>
    %52 = arith.addf %51, %50 : vector<16x2xf32>
    %53 = arith.divf %51, %52 : vector<16x2xf32>
    %54 = arith.mulf %45, %47 : vector<16x2xf32>
    %55 = math.tanh %54 : vector<16x2xf32>
    %56 = arith.mulf %53, %55 : vector<16x2xf32>
    %cst_26 = arith.constant 0.000000e+00 : f32
    %57 = vector.broadcast %cst_26 : f32 to vector<16x2xf32>
    %58 = tpu.concatenate %56, %57 in 0 : vector<16x2xf32>, vector<16x2xf32> -> vector<32x2xf32>
    %59 = tpu.concatenate %54, %57 in 0 : vector<16x2xf32>, vector<16x2xf32> -> vector<32x2xf32>
    %cst_27 = arith.constant dense<0.000000e+00> : vector<128x2xf32>
    %60 = tpu.matmul %38, %58, %cst_27 {dimension_numbers = #tpu.dot_dimension_numbers<[1], [0], [0], [1], [0, 0, 1, 1], [], []>} : vector<128x32xf32>, vector<32x2xf32>, vector<128x2xf32> -> vector<128x2xf32>
    %c0_28 = arith.constant 0 : index
    %c0_29 = arith.constant 0 : index
    %c0_30 = arith.constant 0 : index
    %61 = vector.load %arg7[%c0_28, %c0_29, %c0_30] : memref<8x128x2xf32, #tpu.memory_space<vmem>>, vector<1x128x2xf32>
    %62 = vector.shape_cast %61 : vector<1x128x2xf32> to vector<128x2xf32>
    %63 = arith.addf %60, %62 : vector<128x2xf32>
    %64 = arith.negf %63 : vector<128x2xf32>
    %65 = math.exp %64 : vector<128x2xf32>
    %cst_31 = arith.constant 1.000000e+00 : f32
    %66 = vector.broadcast %cst_31 : f32 to vector<128x2xf32>
    %67 = arith.addf %66, %65 : vector<128x2xf32>
    %68 = arith.divf %66, %67 : vector<128x2xf32>
    %69 = vector.extract_strided_slice %68 {offsets = [0, 0], sizes = [32, 2], strides = [1, 1]} : vector<128x2xf32> to vector<32x2xf32>
    %70 = vector.extract_strided_slice %68 {offsets = [32, 0], sizes = [32, 2], strides = [1, 1]} : vector<128x2xf32> to vector<32x2xf32>
    %71 = vector.extract_strided_slice %63 {offsets = [64, 0], sizes = [32, 2], strides = [1, 1]} : vector<128x2xf32> to vector<32x2xf32>
    %72 = math.tanh %71 : vector<32x2xf32>
    %73 = vector.extract_strided_slice %68 {offsets = [96, 0], sizes = [32, 2], strides = [1, 1]} : vector<128x2xf32> to vector<32x2xf32>
    %74 = arith.mulf %70, %59 : vector<32x2xf32>
    %75 = arith.mulf %69, %72 : vector<32x2xf32>
    %76 = arith.addf %74, %75 : vector<32x2xf32>
    %77 = math.tanh %76 : vector<32x2xf32>
    %78 = arith.mulf %73, %77 : vector<32x2xf32>
    %cst_32 = arith.constant dense<0.000000e+00> : vector<128x2xf32>
    %79 = tpu.matmul %38, %78, %cst_32 {dimension_numbers = #tpu.dot_dimension_numbers<[1], [0], [0], [1], [0, 0, 1, 1], [], []>} : vector<128x32xf32>, vector<32x2xf32>, vector<128x2xf32> -> vector<128x2xf32>
    %c1_33 = arith.constant 1 : index
    %c0_34 = arith.constant 0 : index
    %c0_35 = arith.constant 0 : index
    %80 = vector.load %arg7[%c1_33, %c0_34, %c0_35] : memref<8x128x2xf32, #tpu.memory_space<vmem>>, vector<1x128x2xf32>
    %81 = vector.shape_cast %80 : vector<1x128x2xf32> to vector<128x2xf32>
    %82 = arith.addf %79, %81 : vector<128x2xf32>
    %83 = arith.negf %82 : vector<128x2xf32>
    %84 = math.exp %83 : vector<128x2xf32>
    %cst_36 = arith.constant 1.000000e+00 : f32
    %85 = vector.broadcast %cst_36 : f32 to vector<128x2xf32>
    %86 = arith.addf %85, %84 : vector<128x2xf32>
    %87 = arith.divf %85, %86 : vector<128x2xf32>
    %88 = vector.extract_strided_slice %87 {offsets = [0, 0], sizes = [32, 2], strides = [1, 1]} : vector<128x2xf32> to vector<32x2xf32>
    %89 = vector.extract_strided_slice %87 {offsets = [32, 0], sizes = [32, 2], strides = [1, 1]} : vector<128x2xf32> to vector<32x2xf32>
    %90 = vector.extract_strided_slice %82 {offsets = [64, 0], sizes = [32, 2], strides = [1, 1]} : vector<128x2xf32> to vector<32x2xf32>
    %91 = math.tanh %90 : vector<32x2xf32>
    %92 = vector.extract_strided_slice %87 {offsets = [96, 0], sizes = [32, 2], strides = [1, 1]} : vector<128x2xf32> to vector<32x2xf32>
    %93 = arith.mulf %89, %76 : vector<32x2xf32>
    %94 = arith.mulf %88, %91 : vector<32x2xf32>
    %95 = arith.addf %93, %94 : vector<32x2xf32>
    %96 = math.tanh %95 : vector<32x2xf32>
    %97 = arith.mulf %92, %96 : vector<32x2xf32>
    %cst_37 = arith.constant dense<0.000000e+00> : vector<128x2xf32>
    %98 = tpu.matmul %38, %97, %cst_37 {dimension_numbers = #tpu.dot_dimension_numbers<[1], [0], [0], [1], [0, 0, 1, 1], [], []>} : vector<128x32xf32>, vector<32x2xf32>, vector<128x2xf32> -> vector<128x2xf32>
    %c2_38 = arith.constant 2 : index
    %c0_39 = arith.constant 0 : index
    %c0_40 = arith.constant 0 : index
    %99 = vector.load %arg7[%c2_38, %c0_39, %c0_40] : memref<8x128x2xf32, #tpu.memory_space<vmem>>, vector<1x128x2xf32>
    %100 = vector.shape_cast %99 : vector<1x128x2xf32> to vector<128x2xf32>
    %101 = arith.addf %98, %100 : vector<128x2xf32>
    %102 = arith.negf %101 : vector<128x2xf32>
    %103 = math.exp %102 : vector<128x2xf32>
    %cst_41 = arith.constant 1.000000e+00 : f32
    %104 = vector.broadcast %cst_41 : f32 to vector<128x2xf32>
    %105 = arith.addf %104, %103 : vector<128x2xf32>
    %106 = arith.divf %104, %105 : vector<128x2xf32>
    %107 = vector.extract_strided_slice %106 {offsets = [0, 0], sizes = [32, 2], strides = [1, 1]} : vector<128x2xf32> to vector<32x2xf32>
    %108 = vector.extract_strided_slice %106 {offsets = [32, 0], sizes = [32, 2], strides = [1, 1]} : vector<128x2xf32> to vector<32x2xf32>
    %109 = vector.extract_strided_slice %101 {offsets = [64, 0], sizes = [32, 2], strides = [1, 1]} : vector<128x2xf32> to vector<32x2xf32>
    %110 = math.tanh %109 : vector<32x2xf32>
    %111 = vector.extract_strided_slice %106 {offsets = [96, 0], sizes = [32, 2], strides = [1, 1]} : vector<128x2xf32> to vector<32x2xf32>
    %112 = arith.mulf %108, %95 : vector<32x2xf32>
    %113 = arith.mulf %107, %110 : vector<32x2xf32>
    %114 = arith.addf %112, %113 : vector<32x2xf32>
    %115 = math.tanh %114 : vector<32x2xf32>
    %116 = arith.mulf %111, %115 : vector<32x2xf32>
    %cst_42 = arith.constant dense<0.000000e+00> : vector<128x2xf32>
    %117 = tpu.matmul %38, %116, %cst_42 {dimension_numbers = #tpu.dot_dimension_numbers<[1], [0], [0], [1], [0, 0, 1, 1], [], []>} : vector<128x32xf32>, vector<32x2xf32>, vector<128x2xf32> -> vector<128x2xf32>
    %c3_43 = arith.constant 3 : index
    %c0_44 = arith.constant 0 : index
    %c0_45 = arith.constant 0 : index
    %118 = vector.load %arg7[%c3_43, %c0_44, %c0_45] : memref<8x128x2xf32, #tpu.memory_space<vmem>>, vector<1x128x2xf32>
    %119 = vector.shape_cast %118 : vector<1x128x2xf32> to vector<128x2xf32>
    %120 = arith.addf %117, %119 : vector<128x2xf32>
    %121 = arith.negf %120 : vector<128x2xf32>
    %122 = math.exp %121 : vector<128x2xf32>
    %cst_46 = arith.constant 1.000000e+00 : f32
    %123 = vector.broadcast %cst_46 : f32 to vector<128x2xf32>
    %124 = arith.addf %123, %122 : vector<128x2xf32>
    %125 = arith.divf %123, %124 : vector<128x2xf32>
    %126 = vector.extract_strided_slice %125 {offsets = [0, 0], sizes = [32, 2], strides = [1, 1]} : vector<128x2xf32> to vector<32x2xf32>
    %127 = vector.extract_strided_slice %125 {offsets = [32, 0], sizes = [32, 2], strides = [1, 1]} : vector<128x2xf32> to vector<32x2xf32>
    %128 = vector.extract_strided_slice %120 {offsets = [64, 0], sizes = [32, 2], strides = [1, 1]} : vector<128x2xf32> to vector<32x2xf32>
    %129 = math.tanh %128 : vector<32x2xf32>
    %130 = vector.extract_strided_slice %125 {offsets = [96, 0], sizes = [32, 2], strides = [1, 1]} : vector<128x2xf32> to vector<32x2xf32>
    %131 = arith.mulf %127, %114 : vector<32x2xf32>
    %132 = arith.mulf %126, %129 : vector<32x2xf32>
    %133 = arith.addf %131, %132 : vector<32x2xf32>
    %134 = math.tanh %133 : vector<32x2xf32>
    %135 = arith.mulf %130, %134 : vector<32x2xf32>
    %cst_47 = arith.constant dense<0.000000e+00> : vector<128x2xf32>
    %136 = tpu.matmul %38, %135, %cst_47 {dimension_numbers = #tpu.dot_dimension_numbers<[1], [0], [0], [1], [0, 0, 1, 1], [], []>} : vector<128x32xf32>, vector<32x2xf32>, vector<128x2xf32> -> vector<128x2xf32>
    %c4_48 = arith.constant 4 : index
    %c0_49 = arith.constant 0 : index
    %c0_50 = arith.constant 0 : index
    %137 = vector.load %arg7[%c4_48, %c0_49, %c0_50] : memref<8x128x2xf32, #tpu.memory_space<vmem>>, vector<1x128x2xf32>
    %138 = vector.shape_cast %137 : vector<1x128x2xf32> to vector<128x2xf32>
    %139 = arith.addf %136, %138 : vector<128x2xf32>
    %140 = arith.negf %139 : vector<128x2xf32>
    %141 = math.exp %140 : vector<128x2xf32>
    %cst_51 = arith.constant 1.000000e+00 : f32
    %142 = vector.broadcast %cst_51 : f32 to vector<128x2xf32>
    %143 = arith.addf %142, %141 : vector<128x2xf32>
    %144 = arith.divf %142, %143 : vector<128x2xf32>
    %145 = vector.extract_strided_slice %144 {offsets = [0, 0], sizes = [32, 2], strides = [1, 1]} : vector<128x2xf32> to vector<32x2xf32>
    %146 = vector.extract_strided_slice %144 {offsets = [32, 0], sizes = [32, 2], strides = [1, 1]} : vector<128x2xf32> to vector<32x2xf32>
    %147 = vector.extract_strided_slice %139 {offsets = [64, 0], sizes = [32, 2], strides = [1, 1]} : vector<128x2xf32> to vector<32x2xf32>
    %148 = math.tanh %147 : vector<32x2xf32>
    %149 = vector.extract_strided_slice %144 {offsets = [96, 0], sizes = [32, 2], strides = [1, 1]} : vector<128x2xf32> to vector<32x2xf32>
    %150 = arith.mulf %146, %133 : vector<32x2xf32>
    %151 = arith.mulf %145, %148 : vector<32x2xf32>
    %152 = arith.addf %150, %151 : vector<32x2xf32>
    %153 = math.tanh %152 : vector<32x2xf32>
    %154 = arith.mulf %149, %153 : vector<32x2xf32>
    %cst_52 = arith.constant dense<0.000000e+00> : vector<128x2xf32>
    %155 = tpu.matmul %38, %154, %cst_52 {dimension_numbers = #tpu.dot_dimension_numbers<[1], [0], [0], [1], [0, 0, 1, 1], [], []>} : vector<128x32xf32>, vector<32x2xf32>, vector<128x2xf32> -> vector<128x2xf32>
    %c5_53 = arith.constant 5 : index
    %c0_54 = arith.constant 0 : index
    %c0_55 = arith.constant 0 : index
    %156 = vector.load %arg7[%c5_53, %c0_54, %c0_55] : memref<8x128x2xf32, #tpu.memory_space<vmem>>, vector<1x128x2xf32>
    %157 = vector.shape_cast %156 : vector<1x128x2xf32> to vector<128x2xf32>
    %158 = arith.addf %155, %157 : vector<128x2xf32>
    %159 = arith.negf %158 : vector<128x2xf32>
    %160 = math.exp %159 : vector<128x2xf32>
    %cst_56 = arith.constant 1.000000e+00 : f32
    %161 = vector.broadcast %cst_56 : f32 to vector<128x2xf32>
    %162 = arith.addf %161, %160 : vector<128x2xf32>
    %163 = arith.divf %161, %162 : vector<128x2xf32>
    %164 = vector.extract_strided_slice %163 {offsets = [0, 0], sizes = [32, 2], strides = [1, 1]} : vector<128x2xf32> to vector<32x2xf32>
    %165 = vector.extract_strided_slice %163 {offsets = [32, 0], sizes = [32, 2], strides = [1, 1]} : vector<128x2xf32> to vector<32x2xf32>
    %166 = vector.extract_strided_slice %158 {offsets = [64, 0], sizes = [32, 2], strides = [1, 1]} : vector<128x2xf32> to vector<32x2xf32>
    %167 = math.tanh %166 : vector<32x2xf32>
    %168 = vector.extract_strided_slice %163 {offsets = [96, 0], sizes = [32, 2], strides = [1, 1]} : vector<128x2xf32> to vector<32x2xf32>
    %169 = arith.mulf %165, %152 : vector<32x2xf32>
    %170 = arith.mulf %164, %167 : vector<32x2xf32>
    %171 = arith.addf %169, %170 : vector<32x2xf32>
    %172 = math.tanh %171 : vector<32x2xf32>
    %173 = arith.mulf %168, %172 : vector<32x2xf32>
    %cst_57 = arith.constant dense<0.000000e+00> : vector<128x2xf32>
    %174 = tpu.matmul %38, %173, %cst_57 {dimension_numbers = #tpu.dot_dimension_numbers<[1], [0], [0], [1], [0, 0, 1, 1], [], []>} : vector<128x32xf32>, vector<32x2xf32>, vector<128x2xf32> -> vector<128x2xf32>
    %c6_58 = arith.constant 6 : index
    %c0_59 = arith.constant 0 : index
    %c0_60 = arith.constant 0 : index
    %175 = vector.load %arg7[%c6_58, %c0_59, %c0_60] : memref<8x128x2xf32, #tpu.memory_space<vmem>>, vector<1x128x2xf32>
    %176 = vector.shape_cast %175 : vector<1x128x2xf32> to vector<128x2xf32>
    %177 = arith.addf %174, %176 : vector<128x2xf32>
    %178 = arith.negf %177 : vector<128x2xf32>
    %179 = math.exp %178 : vector<128x2xf32>
    %cst_61 = arith.constant 1.000000e+00 : f32
    %180 = vector.broadcast %cst_61 : f32 to vector<128x2xf32>
    %181 = arith.addf %180, %179 : vector<128x2xf32>
    %182 = arith.divf %180, %181 : vector<128x2xf32>
    %183 = vector.extract_strided_slice %182 {offsets = [0, 0], sizes = [32, 2], strides = [1, 1]} : vector<128x2xf32> to vector<32x2xf32>
    %184 = vector.extract_strided_slice %182 {offsets = [32, 0], sizes = [32, 2], strides = [1, 1]} : vector<128x2xf32> to vector<32x2xf32>
    %185 = vector.extract_strided_slice %177 {offsets = [64, 0], sizes = [32, 2], strides = [1, 1]} : vector<128x2xf32> to vector<32x2xf32>
    %186 = math.tanh %185 : vector<32x2xf32>
    %187 = vector.extract_strided_slice %182 {offsets = [96, 0], sizes = [32, 2], strides = [1, 1]} : vector<128x2xf32> to vector<32x2xf32>
    %188 = arith.mulf %184, %171 : vector<32x2xf32>
    %189 = arith.mulf %183, %186 : vector<32x2xf32>
    %190 = arith.addf %188, %189 : vector<32x2xf32>
    %191 = math.tanh %190 : vector<32x2xf32>
    %192 = arith.mulf %187, %191 : vector<32x2xf32>
    %cst_62 = arith.constant dense<0.000000e+00> : vector<128x2xf32>
    %193 = tpu.matmul %38, %192, %cst_62 {dimension_numbers = #tpu.dot_dimension_numbers<[1], [0], [0], [1], [0, 0, 1, 1], [], []>} : vector<128x32xf32>, vector<32x2xf32>, vector<128x2xf32> -> vector<128x2xf32>
    %c7_63 = arith.constant 7 : index
    %c0_64 = arith.constant 0 : index
    %c0_65 = arith.constant 0 : index
    %194 = vector.load %arg7[%c7_63, %c0_64, %c0_65] : memref<8x128x2xf32, #tpu.memory_space<vmem>>, vector<1x128x2xf32>
    %195 = vector.shape_cast %194 : vector<1x128x2xf32> to vector<128x2xf32>
    %196 = arith.addf %193, %195 : vector<128x2xf32>
    %197 = arith.negf %196 : vector<128x2xf32>
    %198 = math.exp %197 : vector<128x2xf32>
    %cst_66 = arith.constant 1.000000e+00 : f32
    %199 = vector.broadcast %cst_66 : f32 to vector<128x2xf32>
    %200 = arith.addf %199, %198 : vector<128x2xf32>
    %201 = arith.divf %199, %200 : vector<128x2xf32>
    %202 = vector.extract_strided_slice %201 {offsets = [0, 0], sizes = [32, 2], strides = [1, 1]} : vector<128x2xf32> to vector<32x2xf32>
    %203 = vector.extract_strided_slice %201 {offsets = [32, 0], sizes = [32, 2], strides = [1, 1]} : vector<128x2xf32> to vector<32x2xf32>
    %204 = vector.extract_strided_slice %196 {offsets = [64, 0], sizes = [32, 2], strides = [1, 1]} : vector<128x2xf32> to vector<32x2xf32>
    %205 = math.tanh %204 : vector<32x2xf32>
    %206 = vector.extract_strided_slice %201 {offsets = [96, 0], sizes = [32, 2], strides = [1, 1]} : vector<128x2xf32> to vector<32x2xf32>
    %207 = arith.mulf %203, %190 : vector<32x2xf32>
    %208 = arith.mulf %202, %205 : vector<32x2xf32>
    %209 = arith.addf %207, %208 : vector<32x2xf32>
    %210 = math.tanh %209 : vector<32x2xf32>
    %211 = arith.mulf %206, %210 : vector<32x2xf32>
    %212 = vector.extract_strided_slice %211 {offsets = [16, 0], sizes = [16, 2], strides = [1, 1]} : vector<32x2xf32> to vector<16x2xf32>
    %c0_67 = arith.constant 0 : index
    %c0_68 = arith.constant 0 : index
    %213 = vector.load %arg4[%c0_67, %c0_68] : memref<8x16xf32, #tpu.memory_space<vmem>>, vector<8x16xf32>
    %cst_69 = arith.constant dense<0.000000e+00> : vector<8x2xf32>
    %214 = tpu.matmul %213, %212, %cst_69 {dimension_numbers = #tpu.dot_dimension_numbers<[1], [0], [0], [1], [0, 0, 1, 1], [], []>} : vector<8x16xf32>, vector<16x2xf32>, vector<8x2xf32> -> vector<8x2xf32>
    %c0_70 = arith.constant 0 : index
    %c0_71 = arith.constant 0 : index
    %215 = vector.load %arg5[%c0_70, %c0_71] : memref<8x1xf32, #tpu.memory_space<vmem>>, vector<8x1xf32>
    %216 = vector.broadcast %215 : vector<8x1xf32> to vector<8x2xf32>
    %217 = arith.addf %214, %216 : vector<8x2xf32>
    %c0_72 = arith.constant 0 : index
    %c0_73 = arith.constant 0 : index
    %218 = vector.load %arg6[%c0_72, %c0_73] : memref<8x2xf32, #tpu.memory_space<vmem>>, vector<8x2xf32>
    tpu.vector_store %arg6[%c0_72, %c0_73], %217 {strides = array<i32>} : memref<8x2xf32, #tpu.memory_space<vmem>>, vector<8x2xf32>,
    return
  }
}

</mosaic_0001>

<bundles_post_ra>
// kernel: lstm_model_forward.1
= control target key start
LH: loop header
LB: loop body
LE: loop exit
PB: predicated region body
PF: predicated region fallthrough
CT: control target
= control target key end

     0   :  { %vm136_vm0 = vcmask 64512   ;;  %v4245_v3 = vmov 0   ;;  %vm882_vm1 = vcmask 261120   ;;  %vm394_vm2 = vcmask 15360   ;;  %s4247_s13 = smov 124   ;;  %s4249_s18 = smov 120   ;;  %s5422_s0 = inlined_call_operand.vmem [shape: f32[8,16], index: 0, kind: input, shape index: {}]   ;;  %s5423_s1 = inlined_call_operand.vmem [shape: f32[128,8], index: 1, kind: input, shape index: {}]   ;;  %s5424_s2 = inlined_call_operand.vmem [shape: f32[128,1], index: 2, kind: input, shape index: {}]   ;;  %s5425_s3 = inlined_call_operand.vmem [shape: f32[128,32], index: 3, kind: input, shape index: {}]   ;;  %s5426_s5 = inlined_call_operand.vmem [shape: f32[8,1], index: 5, kind: input, shape index: {}]   ;;  %s5427_s4 = inlined_call_operand.vmem [shape: f32[8,16], index: 4, kind: input, shape index: {}]   ;;  %s5428_s6 = inlined_call_operand.vmem [shape: f32[8,2], index: 6, kind: output, shape index: {}]  }
   0x1   :  { %v39_v0 = vld [vmem:[%s5422_s0] sm:$0xff]  ;;  %v33_v2 = vld [vmem:[%s5423_s1 + $0x50] sm:$0xff]  ;;  %3707 = vset.pattern.permute.xlu0 %v4245_v3  ;;  %3708 = vset.pattern.permute.xlu1 %v4245_v3  ;;  %v24_v4 = vld [vmem:[%s5423_s1 + $0x8] sm:$0xff]  ;;  %s4250_s19 = smov 118   ;;  %s4251_s20 = smov 116   ;;  %vm4254_vm3 = vmmov 0  }
   0x2   :  { %v23_v1 = vld [vmem:[%s5423_s1] sm:$0xff]  ;;  %3410 = vmatprep.subr.mxu0 %v39_v0  ;;  %3695 = vmatprep.subr.mxu1 %v39_v0  ;;  %v34_v5 = vld [vmem:[%s5423_s1 + $0x58] sm:$0xff]  ;;  %v25_v6 = vld [vmem:[%s5423_s1 + $0x10] sm:$0xff]  ;;  %s4252_s21 = smov 114   ;;  %vm2914_vm4 = vcmask 130048  }
   0x3   :  { %3411 = vmatpush3.msra.mxu0 %v39_v0  ;;  %3696 = vmatpush3.msra.mxu1 %v39_v0  ;;  %v35_v7 = vld [vmem:[%s5423_s1 + $0x60] sm:$0xff]  ;;  %v26_v8 = vld [vmem:[%s5423_s1 + $0x18] sm:$0xff]  ;;  %v36_v9 = vld [vmem:[%s5423_s1 + $0x68] sm:$0xff] }
   0x4   :  { %3412 = vmatprep.mubr.msk.f32.mxu0 %vm136_vm0, %v23_v1  ;;  %3427 = vmatprep.mubr.msk.f32.mxu1 %vm136_vm0, %v33_v2  ;;  %v41_v10 = vld [vmem:[%s5424_s2 + $0x8] sm:$0xff]  ;;  %v27_v11 = vld [vmem:[%s5423_s1 + $0x20] sm:$0xff]  ;;  %v37_v12 = vld [vmem:[%s5423_s1 + $0x70] sm:$0xff] }
   0x5   :  { %3413 = vmatmul.mubr.msk.f32.vlgmr.msra.gmra.mxu0 %vm136_vm0, %v24_v4  ;;  %3428 = vmatmul.mubr.msk.f32.vlgmr.msra.gmra.mxu1 %vm136_vm0, %v34_v5  ;;  %v40_v13 = vld [vmem:[%s5424_s2] sm:$0xff]  ;;  %v53_v14 = vld [vmem:[%s5424_s2 + $0x68] sm:$0xff]  ;;  %v38_v16 = vld [vmem:[%s5423_s1 + $0x78] sm:$0xff] }
   0x6   :  { %3415 = vmatprep.mubr.msk.f32.mxu0 %vm136_vm0, %v25_v6  ;;  %3430 = vmatprep.mubr.msk.f32.mxu1 %vm136_vm0, %v35_v7  ;;  %v28_v15 = vld [vmem:[%s5423_s1 + $0x28] sm:$0xff]  ;;  %v29_v17 = vld [vmem:[%s5423_s1 + $0x30] sm:$0xff]  ;;  %v52_v18 = vld [vmem:[%s5424_s2 + $0x60] sm:$0xff] }
   0x7   :  { %63 = vperm.xlu0 %3707, %v41_v10   ;;  %123 = vperm.xlu1 %3708, %v53_v14   ;;  %v49_v19 = vld [vmem:[%s5424_s2 + $0x48] sm:$0xff]  ;;  %v30_v20 = vld [vmem:[%s5423_s1 + $0x38] sm:$0xff]  ;;  %v31_v21 = vld [vmem:[%s5423_s1 + $0x40] sm:$0xff] }
   0x8   :  { %v43_v22 = vld [vmem:[%s5424_s2 + $0x18] sm:$0xff]  ;;  %v48_v23 = vld [vmem:[%s5424_s2 + $0x40] sm:$0xff]  ;;  %v32_v24 = vld [vmem:[%s5423_s1 + $0x48] sm:$0xff]  ;;  %s4248_s1 = smov 122  }
   0x9   :  { %3416 = vmatmul.mubr.msk.f32.gmra.mxu0 %vm136_vm0, %v26_v8  ;;  %3431 = vmatmul.mubr.msk.f32.gmra.mxu1 %vm136_vm0, %v36_v9  ;;  %v42_v25 = vld [vmem:[%s5424_s2 + $0x10] sm:$0xff]  ;;  %v47_v26 = vld [vmem:[%s5424_s2 + $0x38] sm:$0xff]  ;;  %v45_v27 = vld [vmem:[%s5424_s2 + $0x28] sm:$0xff] }
   0xa   :  { %3418 = vmatprep.mubr.msk.f32.mxu0 %vm136_vm0, %v27_v11  ;;  %3433 = vmatprep.mubr.msk.f32.mxu1 %vm136_vm0, %v37_v12  ;;  %v46_v28 = vld [vmem:[%s5424_s2 + $0x30] sm:$0xff]  ;;  %v51_v29 = vld [vmem:[%s5424_s2 + $0x58] sm:$0xff]  ;;  %v44_v30 = vld [vmem:[%s5424_s2 + $0x20] sm:$0xff] }
   0xb   :  { %58 = vperm.xlu0 %3707, %v40_v13   ;;  %103 = vperm.xlu1 %3708, %v49_v19   ;;  %v50_v31 = vld [vmem:[%s5424_s2 + $0x50] sm:$0xff]  ;;  %v55_v32 = vld [vmem:[%s5424_s2 + $0x78] sm:$0xff]  ;;  %v4408_v34 = vld [vmem:[%s5425_s3] sm:$0xff] }
   0xc   :  { %v54_v33 = vld [vmem:[%s5424_s2 + $0x70] sm:$0xff]  ;;  %s4246_s2 = smov 126  }
   0xd   :  { %3419 = vmatmul.mubr.msk.f32.gmra.mxu0 %vm136_vm0, %v28_v15  ;;  %3434 = vmatmul.mubr.msk.f32.gmra.mxu1 %vm136_vm0, %v38_v16 }
   0xe   :  { %3421 = vmatprep.mubr.msk.f32.mxu0 %vm136_vm0, %v29_v17  ;;  %3440 = vmatprep.mubr.msk.f32.mxu1 %vm882_vm1, %v4408_v34 }
   0xf   :  { %118 = vperm.xlu0 %3707, %v52_v18   ;;  %98 = vperm.xlu1 %3708, %v48_v23  }
  0x11   :  { %3422 = vmatmul.mubr.msk.f32.gmra.mxu0 %vm136_vm0, %v30_v20 }
  0x12   :  { %3424 = vmatprep.mubr.msk.f32.mxu0 %vm136_vm0, %v31_v21 }
  0x13   :  { %73 = vperm.xlu0 %3707, %v43_v22   ;;  %93 = vperm.xlu1 %3708, %v47_v26  }
  0x15   :  { %3425 = vmatmul.mubr.msk.f32.gmra.mxu0 %vm136_vm0, %v32_v24 }
  0x16   :  { %3472 = vmatprep.mubr.msk.f32.mxu0 %vm882_vm1, %v4408_v34 }
  0x17   :  { %68 = vperm.xlu0 %3707, %v42_v25   ;;  %88 = vperm.xlu1 %3708, %v46_v28  }
  0x1b   :  { %83 = vperm.xlu0 %3707, %v45_v27   ;;  %78 = vperm.xlu1 %3708, %v44_v30  }
  0x1f   :  { %113 = vperm.xlu0 %3707, %v51_v29   ;;  %133 = vperm.xlu1 %3708, %v55_v32  }
  0x23   :  { %108 = vperm.xlu0 %3707, %v50_v31   ;;  %128 = vperm.xlu1 %3708, %v54_v33  }
  0x82   :  { %v64_v35 = vpop.permute.xlu0 %63  ;;  %v124_v37 = vpop.permute.xlu1 %123 }
  0x86   :  { %v59_v36 = vpop.permute.xlu0 %58  ;;  %v4414_v39 = vpop.permute.xlu1 %103 }
  0x8a   :  { %v119_v38 = vpop.permute.xlu0 %118  ;;  %v4416_v41 = vpop.permute.xlu1 %98 }
  0x8e   :  { %v74_v40 = vpop.permute.xlu0 %73  ;;  %v94_v43 = vpop.permute.xlu1 %93 }
  0x92   :  { %v69_v42 = vpop.permute.xlu0 %68  ;;  %v89_v45 = vpop.permute.xlu1 %88 }
  0x96   :  { %v84_v44 = vpop.permute.xlu0 %83  ;;  %v79_v47 = vpop.permute.xlu1 %78 }
  0x9a   :  { %v114_v46 = vpop.permute.xlu0 %113  ;;  %v134_v53 = vpop.permute.xlu1 %133 }
  0x9e   :  { %v109_v50 = vpop.permute.xlu0 %108  ;;  %v129_v4 = vpop.permute.xlu1 %128 }
  0xc5   :  { %v3414_v48 = vpop.f32.mrf.mxu0  ;;  %v3429_v49 = vpop.f32.mrf.mxu1 }
  0xc6   :  { %v4418_v51 = vadd.f32 %v3414_v48, %v64_v35  ;;  %v4420_v52 = vadd.f32 %v3429_v49, %v114_v46  ;;  %v4551_v46 = vld [vmem:[%s5425_s3 + $0x18] sm:$0xff]  ;;  %v4569_v48 = vld [vmem:[%s5425_s3 + $0x28] sm:$0xff]  ;;  %v4576_v49 = vld [vmem:[%s5425_s3 + $0x30] sm:$0xff] }
  0xc7   :  { %v251_v54 = vpop.f32.mrf.mxu0  ;;  %v301_v55 = vpop.f32.mrf.mxu1 }
  0xc8   :  { %813 = vst.msk [vmem:[#allocation2 + $0x3d8] sm:$0xff] %vm394_vm2, %v4420_v52  ;;  %v4424_v56 = vadd.f32 %v251_v54, %v59_v36  ;;  %v4426_v57 = vadd.f32 %v301_v55, %v109_v50  ;;  %348 = vrot.lane.b32.xlu0 %v4418_v51, %s4246_s2  ;;  %v3010_v58 = vmul.f32 -1.442695, %v4418_v51  ;;  %v4587_v50 = vld [vmem:[%s5425_s3 + $0x38] sm:$0xff]  ;;  %v4605_v54 = vld [vmem:[%s5425_s3 + $0x48] sm:$0xff]  ;;  %v4612_v55 = vld [vmem:[%s5425_s3 + $0x50] sm:$0xff] }
  0xc9   :  { %v3417_v59 = vpop.f32.mrf.mxu0  ;;  %v3432_v60 = vpop.f32.mrf.mxu1 }
  0xca   :  { %812 = vst.msk [vmem:[#allocation2 + $0x3d0] sm:$0xff] %vm394_vm2, %v4426_v57  ;;  %v4433_v61 = vadd.f32 %v3417_v59, %v74_v40  ;;  %v4435_v62 = vadd.f32 %v3432_v60, %v124_v37  ;;  %3709 = vpow2.f32 %v3010_v58  ;;  %v3009_v63 = vmul.f32 -1.442695, %v4424_v56  ;;  %v4623_v58 = vld [vmem:[%s5425_s3 + $0x58] sm:$0xff]  ;;  %v4630_v59 = vld [vmem:[%s5425_s3 + $0x60] sm:$0xff]  ;;  %v4641_v60 = vld [vmem:[%s5425_s3 + $0x68] sm:$0xff] }
  0xcb   :  { %v261_v0 = vpop.f32.mrf.mxu0  ;;  %v311_v1 = vpop.f32.mrf.mxu1 }
  0xcc   :  { %805 = vst.msk [vmem:[#allocation2 + $0x398] sm:$0xff] %vm394_vm2, %v4433_v61  ;;  %v4440_v2 = vadd.f32 %v261_v0, %v69_v42  ;;  %v4442_v3 = vadd.f32 %v311_v1, %v119_v38  ;;  %352 = vrot.lane.b32.xlu0 %v4433_v61, %s4246_s2  ;;  %3711 = vpow2.f32 %v3009_v63  ;;  %v3012_v14 = vmul.f32 -1.442695, %v4435_v62  ;;  %v4648_v63 = vld [vmem:[%s5425_s3 + $0x70] sm:$0xff]  ;;  %v4659_v0 = vld [vmem:[%s5425_s3 + $0x78] sm:$0xff] }
  0xcd   :  { %v3420_v5 = vpop.f32.mrf.mxu0  ;;  %v3435_v6 = vpop.f32.mrf.mxu1 }
  0xce   :  { %804 = vst.msk [vmem:[#allocation2 + $0x390] sm:$0xff] %vm394_vm2, %v4440_v2  ;;  %v4448_v7 = vadd.f32 %v3420_v5, %v84_v44  ;;  %v4450_v8 = vadd.f32 %v3435_v6, %v134_v53  ;;  %v3011_v17 = vmul.f32 -1.442695, %v4442_v3  ;;  %3713 = vpow2.f32 %v3012_v14  ;;  %v4535_v44 = vld [vmem:[%s5425_s3 + $0x8] sm:$0xff]  ;;  %v4594_v53 = vld [vmem:[%s5425_s3 + $0x40] sm:$0xff] }
  0xcf   :  { %v271_v9 = vpop.f32.mrf.mxu0  ;;  %v321_v10 = vpop.f32.mrf.mxu1 }
  0xd0   :  { %v4452_v11 = vadd.f32 %v271_v9, %v79_v47  ;;  %817 = vst.msk [vmem:[#allocation2 + $0x3f8] sm:$0xff] %vm394_vm2, %v4450_v8  ;;  %356 = vrot.lane.b32.xlu1 %v4448_v7, %s4246_s2  ;;  %350 = vrot.lane.b32.xlu0 %v4440_v2, %s4246_s2  ;;  %v4460_v12 = vadd.f32 %v321_v10, %v129_v4  ;;  %3715 = vpow2.f32 %v3011_v17  ;;  %v4558_v47 = vld [vmem:[%s5425_s3 + $0x20] sm:$0xff] }
  0xd1   :  { %v3423_v13 = vpop.f32.mrf.mxu0 }
  0xd2   :  { %v4463_v15 = vadd.f32 %v3423_v13, %v94_v43  ;;  %816 = vst.msk [vmem:[#allocation2 + $0x3f0] sm:$0xff] %vm394_vm2, %v4460_v12 }
  0xd3   :  { %v281_v16 = vpop.f32.mrf.mxu0 }
  0xd4   :  { %809 = vst.msk [vmem:[#allocation2 + $0x3b8] sm:$0xff] %vm394_vm2, %v4463_v15  ;;  %v4470_v18 = vadd.f32 %v281_v16, %v89_v45  ;;  %360 = vrot.lane.b32.xlu1 %v4463_v15, %s4246_s2  ;;  %346 = vrot.lane.b32.xlu0 %v4424_v56, %s4246_s2  ;;  %v4540_v45 = vld [vmem:[%s5425_s3 + $0x10] sm:$0xff] }
  0xd5   :  { %v3426_v19 = vpop.f32.mrf.mxu0 }
  0xd6   :  { %808 = vst.msk [vmem:[#allocation2 + $0x3b0] sm:$0xff] %vm394_vm2, %v4470_v18  ;;  %v4479_v20 = vadd.f32 %v3426_v19, %v4414_v39 }
  0xd7   :  { %v3710_v21 = vpop.eup %3709  ;;  %v291_v22 = vpop.f32.mrf.mxu0 }
  0xd8   :  { %v4482_v23 = vadd.f32 %v291_v22, %v4416_v41  ;;  %358 = vrot.lane.b32.xlu1 %v4470_v18, %s4246_s2  ;;  %368 = vrot.lane.b32.xlu0 %v4420_v52, %s4246_s2  ;;  %v841_v24 = vadd.f32 1.0, %v3710_v21  ;;  %3717 = vtanh.f32 %v4479_v20 }
  0xd9   :  { %v3712_v25 = vpop.eup %3711 }
  0xda   :  { %3719 = vrcp.f32 %v841_v24  ;;  %v840_v26 = vadd.f32 1.0, %v3712_v25 }
  0xdb   :  { %3721 = vtanh.f32 %v4482_v23  ;;  %v3714_v27 = vpop.eup %3713 }
  0xdc   :  { %354 = vrot.lane.b32.xlu1 %v4452_v11, %s4246_s2  ;;  %366 = vrot.lane.b32.xlu0 %v4426_v57, %s4246_s2  ;;  %3723 = vrcp.f32 %v840_v26  ;;  %v855_v29 = vadd.f32 1.0, %v3714_v27 }
  0xdd   :  { %v3716_v28 = vpop.eup %3715 }
  0xde   :  { %v854_v32 = vadd.f32 1.0, %v3716_v28  ;;  %3725 = vrcp.f32 %v855_v29 }
  0xe0   :  { %376 = vrot.lane.b32.xlu1 %v4450_v8, %s4246_s2  ;;  %364 = vrot.lane.b32.xlu0 %v4479_v20, %s4246_s2 }
  0xe4   :  { %374 = vrot.lane.b32.xlu1 %v4460_v12, %s4246_s2  ;;  %362 = vrot.lane.b32.xlu0 %v4482_v23, %s4246_s2 }
  0xe5   :  { %v3718_v30 = vpop.eup %3717 }
  0xe7   :  { %v3720_v31 = vpop.eup %3719 }
  0xe8   :  { %v3722_v33 = vpop.eup %3721  ;;  %372 = vrot.lane.b32.xlu1 %v4435_v62, %s4246_s2  ;;  %417 = vrot.lane.b32.xlu0 %v4433_v61, %s4247_s13  ;;  %v4506_v35 = vmul.f32 %v3720_v31, %v3718_v30 }
  0xe9   :  { %v3724_v36 = vpop.eup %3723 }
  0xea   :  { %3727 = vtanh.f32 %v4506_v35  ;;  %v4509_v37 = vmul.f32 %v3724_v36, %v3722_v33 }
  0xeb   :  { %3729 = vrcp.f32 %v854_v32  ;;  %v3726_v38 = vpop.eup %3725 }
  0xec   :  { %370 = vrot.lane.b32.xlu1 %v4442_v3, %s4246_s2  ;;  %415 = vrot.lane.b32.xlu0 %v4440_v2, %s4247_s13  ;;  %3731 = vtanh.f32 %v4509_v37 }
  0xf0   :  { %425 = vrot.lane.b32.xlu1 %v4463_v15, %s4247_s13  ;;  %413 = vrot.lane.b32.xlu0 %v4418_v51, %s4247_s13 }
  0xf4   :  { %423 = vrot.lane.b32.xlu1 %v4470_v18, %s4247_s13  ;;  %411 = vrot.lane.b32.xlu0 %v4424_v56, %s4247_s13 }
  0xf7   :  { %v3728_v39 = vpop.eup %3727 }
  0xf8   :  { %v3730_v40 = vpop.eup %3729  ;;  %421 = vrot.lane.b32.xlu1 %v4448_v7, %s4247_s13  ;;  %433 = vrot.lane.b32.xlu0 %v4420_v52, %s4247_s13  ;;  %v865_v41 = vmul.f32 %v3728_v39, %v3726_v38 }
  0xf9   :  { %v3732_v42 = vpop.eup %3731 }
  0xfa   :  { %3436 = vmatprep.subr.mxu1 %v865_v41  ;;  %v864_v43 = vmul.f32 %v3732_v42, %v3730_v40 }
  0xfb   :  { %3437 = vmatpush3.msra.mxu1 %v865_v41 }
  0xfc   :  { %419 = vrot.lane.b32.xlu1 %v4452_v11, %s4247_s13  ;;  %431 = vrot.lane.b32.xlu0 %v4426_v57, %s4247_s13 }
  0xfd   :  { %3438 = vmatprep.subr.mxu1 %v864_v43 }
  0xfe   :  { %3439 = vmatpush3.msra.mxu1 %v864_v43 }
  0xff   :  { %3441 = vmatmul.mubr.msk.f32.vlgmr.msra.gmra.mxu1 %vm882_vm1, %v4535_v44 }
 0x100   :  { %441 = vrot.lane.b32.xlu1 %v4450_v8, %s4247_s13  ;;  %429 = vrot.lane.b32.xlu0 %v4479_v20, %s4247_s13 }
 0x101   :  { %3443 = vmatprep.mubr.msk.f32.mxu1 %vm882_vm1, %v4540_v45 }
 0x103   :  { %3444 = vmatmul.mubr.msk.f32.gmra.mxu1 %vm882_vm1, %v4551_v46 }
 0x104   :  { %439 = vrot.lane.b32.xlu1 %v4460_v12, %s4247_s13  ;;  %427 = vrot.lane.b32.xlu0 %v4482_v23, %s4247_s13 }
 0x105   :  { %3446 = vmatprep.mubr.msk.f32.mxu1 %vm882_vm1, %v4558_v47 }
 0x107   :  { %3447 = vmatmul.mubr.msk.f32.gmra.mxu1 %vm882_vm1, %v4569_v48 }
 0x108   :  { %437 = vrot.lane.b32.xlu1 %v4435_v62, %s4247_s13  ;;  %482 = vrot.lane.b32.xlu0 %v4433_v61, %s4248_s1 }
 0x109   :  { %3449 = vmatprep.mubr.msk.f32.mxu1 %vm882_vm1, %v4576_v49 }
 0x10b   :  { %3450 = vmatmul.mubr.msk.f32.gmra.mxu1 %vm882_vm1, %v4587_v50 }
 0x10c   :  { %435 = vrot.lane.b32.xlu1 %v4442_v3, %s4247_s13  ;;  %480 = vrot.lane.b32.xlu0 %v4440_v2, %s4248_s1 }
 0x10d   :  { %3452 = vmatprep.mubr.msk.f32.mxu1 %vm882_vm1, %v4594_v53 }
 0x10f   :  { %3453 = vmatmul.mubr.msk.f32.gmra.mxu1 %vm882_vm1, %v4605_v54 }
 0x110   :  { %490 = vrot.lane.b32.xlu1 %v4463_v15, %s4248_s1  ;;  %478 = vrot.lane.b32.xlu0 %v4418_v51, %s4248_s1 }
 0x111   :  { %3455 = vmatprep.mubr.msk.f32.mxu1 %vm882_vm1, %v4612_v55 }
 0x113   :  { %3456 = vmatmul.mubr.msk.f32.gmra.mxu1 %vm882_vm1, %v4623_v58 }
 0x114   :  { %488 = vrot.lane.b32.xlu1 %v4470_v18, %s4248_s1  ;;  %476 = vrot.lane.b32.xlu0 %v4424_v56, %s4248_s1 }
 0x115   :  { %3458 = vmatprep.mubr.msk.f32.mxu1 %vm882_vm1, %v4630_v59 }
 0x117   :  { %3459 = vmatmul.mubr.msk.f32.gmra.mxu1 %vm882_vm1, %v4641_v60 }
 0x118   :  { %486 = vrot.lane.b32.xlu1 %v4448_v7, %s4248_s1  ;;  %498 = vrot.lane.b32.xlu0 %v4420_v52, %s4248_s1 }
 0x119   :  { %3461 = vmatprep.mubr.msk.f32.mxu1 %vm882_vm1, %v4648_v63 }
 0x11b   :  { %3462 = vmatmul.mubr.msk.f32.gmra.mxu1 %vm882_vm1, %v4659_v0 }
 0x11c   :  { %484 = vrot.lane.b32.xlu1 %v4452_v11, %s4248_s1  ;;  %496 = vrot.lane.b32.xlu0 %v4426_v57, %s4248_s1 }
 0x11d   :  { %3504 = vmatprep.mubr.msk.f32.mxu1 %vm882_vm1, %v4408_v34 }
 0x120   :  { %506 = vrot.lane.b32.xlu1 %v4450_v8, %s4248_s1  ;;  %494 = vrot.lane.b32.xlu0 %v4479_v20, %s4248_s1 }
 0x124   :  { %504 = vrot.lane.b32.xlu1 %v4460_v12, %s4248_s1  ;;  %492 = vrot.lane.b32.xlu0 %v4482_v23, %s4248_s1 }
 0x128   :  { %502 = vrot.lane.b32.xlu1 %v4435_v62, %s4248_s1  ;;  %547 = vrot.lane.b32.xlu0 %v4433_v61, %s4249_s18 }
 0x12c   :  { %500 = vrot.lane.b32.xlu1 %v4442_v3, %s4248_s1  ;;  %545 = vrot.lane.b32.xlu0 %v4440_v2, %s4249_s18 }
 0x130   :  { %555 = vrot.lane.b32.xlu1 %v4463_v15, %s4249_s18  ;;  %543 = vrot.lane.b32.xlu0 %v4418_v51, %s4249_s18 }
 0x134   :  { %553 = vrot.lane.b32.xlu1 %v4470_v18, %s4249_s18  ;;  %541 = vrot.lane.b32.xlu0 %v4424_v56, %s4249_s18 }
 0x138   :  { %551 = vrot.lane.b32.xlu1 %v4448_v7, %s4249_s18  ;;  %563 = vrot.lane.b32.xlu0 %v4420_v52, %s4249_s18 }
 0x13a   :  { %v349_v34 = vpop.permute.xlu0 %348 }
 0x13b   :  { %396 = vst.msk [vmem:[#allocation2 + $0x8] sm:$0xff] %vm394_vm2, %v349_v34 }
 0x13c   :  { %549 = vrot.lane.b32.xlu1 %v4452_v11, %s4249_s18  ;;  %561 = vrot.lane.b32.xlu0 %v4426_v57, %s4249_s18 }
 0x13e   :  { %v353_v1 = vpop.permute.xlu0 %352 }
 0x13f   :  { %398 = vst.msk [vmem:[#allocation2 + $0x18] sm:$0xff] %vm394_vm2, %v353_v1 }
 0x140   :  { %571 = vrot.lane.b32.xlu1 %v4450_v8, %s4249_s18  ;;  %559 = vrot.lane.b32.xlu0 %v4479_v20, %s4249_s18 }
 0x142   :  { %v357_v4 = vpop.permute.xlu1 %356  ;;  %v351_v5 = vpop.permute.xlu0 %350 }
 0x143   :  { %400 = vst.msk [vmem:[#allocation2 + $0x28] sm:$0xff] %vm394_vm2, %v357_v4  ;;  %397 = vst.msk [vmem:[#allocation2 + $0x10] sm:$0xff] %vm394_vm2, %v351_v5 }
 0x144   :  { %569 = vrot.lane.b32.xlu1 %v4460_v12, %s4249_s18  ;;  %557 = vrot.lane.b32.xlu0 %v4482_v23, %s4249_s18 }
 0x146   :  { %v361_v6 = vpop.permute.xlu1 %360  ;;  %v347_v9 = vpop.permute.xlu0 %346 }
 0x147   :  { %402 = vst.msk [vmem:[#allocation2 + $0x38] sm:$0xff] %vm394_vm2, %v361_v6  ;;  %395 = vst.msk [vmem:[#allocation2] sm:$0xff] %vm394_vm2, %v347_v9 }
 0x148   :  { %567 = vrot.lane.b32.xlu1 %v4435_v62, %s4249_s18  ;;  %612 = vrot.lane.b32.xlu0 %v4433_v61, %s4250_s19 }
 0x14a   :  { %v359_v10 = vpop.permute.xlu1 %358  ;;  %v369_v13 = vpop.permute.xlu0 %368 }
 0x14b   :  { %401 = vst.msk [vmem:[#allocation2 + $0x30] sm:$0xff] %vm394_vm2, %v359_v10  ;;  %406 = vst.msk [vmem:[#allocation2 + $0x58] sm:$0xff] %vm394_vm2, %v369_v13 }
 0x14c   :  { %565 = vrot.lane.b32.xlu1 %v4442_v3, %s4249_s18  ;;  %610 = vrot.lane.b32.xlu0 %v4440_v2, %s4250_s19 }
 0x14e   :  { %v355_v14 = vpop.permute.xlu1 %354  ;;  %v367_v16 = vpop.permute.xlu0 %366 }
 0x14f   :  { %399 = vst.msk [vmem:[#allocation2 + $0x20] sm:$0xff] %vm394_vm2, %v355_v14  ;;  %405 = vst.msk [vmem:[#allocation2 + $0x50] sm:$0xff] %vm394_vm2, %v367_v16 }
 0x150   :  { %620 = vrot.lane.b32.xlu1 %v4463_v15, %s4250_s19  ;;  %608 = vrot.lane.b32.xlu0 %v4418_v51, %s4250_s19 }
 0x152   :  { %v377_v17 = vpop.permute.xlu1 %376  ;;  %v365_v19 = vpop.permute.xlu0 %364 }
 0x153   :  { %410 = vst.msk [vmem:[#allocation2 + $0x78] sm:$0xff] %vm394_vm2, %v377_v17  ;;  %404 = vst.msk [vmem:[#allocation2 + $0x48] sm:$0xff] %vm394_vm2, %v365_v19 }
 0x154   :  { %618 = vrot.lane.b32.xlu1 %v4470_v18, %s4250_s19  ;;  %606 = vrot.lane.b32.xlu0 %v4424_v56, %s4250_s19 }
 0x156   :  { %v375_v21 = vpop.permute.xlu1 %374  ;;  %v363_v22 = vpop.permute.xlu0 %362 }
 0x157   :  { %409 = vst.msk [vmem:[#allocation2 + $0x70] sm:$0xff] %vm394_vm2, %v375_v21  ;;  %403 = vst.msk [vmem:[#allocation2 + $0x40] sm:$0xff] %vm394_vm2, %v363_v22 }
 0x158   :  { %616 = vrot.lane.b32.xlu1 %v4448_v7, %s4250_s19  ;;  %628 = vrot.lane.b32.xlu0 %v4420_v52, %s4250_s19 }
 0x15a   :  { %v373_v24 = vpop.permute.xlu1 %372  ;;  %v418_v25 = vpop.permute.xlu0 %417 }
 0x15b   :  { %408 = vst.msk [vmem:[#allocation2 + $0x68] sm:$0xff] %vm394_vm2, %v373_v24  ;;  %463 = vst.msk [vmem:[#allocation2 + $0x98] sm:$0xff] %vm394_vm2, %v418_v25 }
 0x15c   :  { %614 = vrot.lane.b32.xlu1 %v4452_v11, %s4250_s19  ;;  %626 = vrot.lane.b32.xlu0 %v4426_v57, %s4250_s19 }
 0x15e   :  { %v371_v26 = vpop.permute.xlu1 %370  ;;  %v416_v27 = vpop.permute.xlu0 %415 }
 0x15f   :  { %407 = vst.msk [vmem:[#allocation2 + $0x60] sm:$0xff] %vm394_vm2, %v371_v26  ;;  %462 = vst.msk [vmem:[#allocation2 + $0x90] sm:$0xff] %vm394_vm2, %v416_v27 }
 0x160   :  { %636 = vrot.lane.b32.xlu1 %v4450_v8, %s4250_s19  ;;  %624 = vrot.lane.b32.xlu0 %v4479_v20, %s4250_s19 }
 0x162   :  { %v426_v28 = vpop.permute.xlu1 %425  ;;  %v414_v29 = vpop.permute.xlu0 %413 }
 0x163   :  { %467 = vst.msk [vmem:[#allocation2 + $0xb8] sm:$0xff] %vm394_vm2, %v426_v28  ;;  %461 = vst.msk [vmem:[#allocation2 + $0x88] sm:$0xff] %vm394_vm2, %v414_v29 }
 0x164   :  { %634 = vrot.lane.b32.xlu1 %v4460_v12, %s4250_s19  ;;  %622 = vrot.lane.b32.xlu0 %v4482_v23, %s4250_s19 }
 0x166   :  { %v424_v30 = vpop.permute.xlu1 %423  ;;  %v412_v31 = vpop.permute.xlu0 %411 }
 0x167   :  { %466 = vst.msk [vmem:[#allocation2 + $0xb0] sm:$0xff] %vm394_vm2, %v424_v30  ;;  %460 = vst.msk [vmem:[#allocation2 + $0x80] sm:$0xff] %vm394_vm2, %v412_v31  ;;  %v867_v30 = vld [vmem:[#allocation2 + $0x8] sm:$0xff] }
 0x168   :  { %632 = vrot.lane.b32.xlu1 %v4435_v62, %s4250_s19  ;;  %677 = vrot.lane.b32.xlu0 %v4433_v61, %s4251_s20 }
 0x16a   :  { %v422_v32 = vpop.permute.xlu1 %421  ;;  %v434_v33 = vpop.permute.xlu0 %433 }
 0x16b   :  { %465 = vst.msk [vmem:[#allocation2 + $0xa8] sm:$0xff] %vm394_vm2, %v422_v32  ;;  %471 = vst.msk [vmem:[#allocation2 + $0xd8] sm:$0xff] %vm394_vm2, %v434_v33 }
 0x16c   :  { %630 = vrot.lane.b32.xlu1 %v4442_v3, %s4250_s19  ;;  %675 = vrot.lane.b32.xlu0 %v4440_v2, %s4251_s20 }
 0x16e   :  { %v420_v36 = vpop.permute.xlu1 %419  ;;  %v432_v38 = vpop.permute.xlu0 %431 }
 0x16f   :  { %464 = vst.msk [vmem:[#allocation2 + $0xa0] sm:$0xff] %vm394_vm2, %v420_v36  ;;  %470 = vst.msk [vmem:[#allocation2 + $0xd0] sm:$0xff] %vm394_vm2, %v432_v38  ;;  %v866_v36 = vld [vmem:[#allocation2] sm:$0xff] }
 0x170   :  { %685 = vrot.lane.b32.xlu1 %v4463_v15, %s4251_s20  ;;  %673 = vrot.lane.b32.xlu0 %v4418_v51, %s4251_s20 }
 0x172   :  { %v442_v39 = vpop.permute.xlu1 %441  ;;  %v430_v40 = vpop.permute.xlu0 %429 }
 0x173   :  { %475 = vst.msk [vmem:[#allocation2 + $0xf8] sm:$0xff] %vm394_vm2, %v442_v39  ;;  %469 = vst.msk [vmem:[#allocation2 + $0xc8] sm:$0xff] %vm394_vm2, %v430_v40 }
 0x174   :  { %683 = vrot.lane.b32.xlu1 %v4470_v18, %s4251_s20  ;;  %671 = vrot.lane.b32.xlu0 %v4424_v56, %s4251_s20 }
 0x176   :  { %v440_v41 = vpop.permute.xlu1 %439  ;;  %v428_v42 = vpop.permute.xlu0 %427 }
 0x177   :  { %474 = vst.msk [vmem:[#allocation2 + $0xf0] sm:$0xff] %vm394_vm2, %v440_v41  ;;  %468 = vst.msk [vmem:[#allocation2 + $0xc0] sm:$0xff] %vm394_vm2, %v428_v42  ;;  %v869_v42 = vld [vmem:[#allocation2 + $0x18] sm:$0xff] }
 0x178   :  { %681 = vrot.lane.b32.xlu1 %v4448_v7, %s4251_s20  ;;  %693 = vrot.lane.b32.xlu0 %v4420_v52, %s4251_s20 }
 0x17a   :  { %v438_v43 = vpop.permute.xlu1 %437  ;;  %v483_v34 = vpop.permute.xlu0 %482 }
 0x17b   :  { %473 = vst.msk [vmem:[#allocation2 + $0xe8] sm:$0xff] %vm394_vm2, %v438_v43  ;;  %528 = vst.msk [vmem:[#allocation2 + $0x118] sm:$0xff] %vm394_vm2, %v483_v34 }
 0x17c   :  { %679 = vrot.lane.b32.xlu1 %v4452_v11, %s4251_s20  ;;  %691 = vrot.lane.b32.xlu0 %v4426_v57, %s4251_s20 }
 0x17e   :  { %v436_v1 = vpop.permute.xlu1 %435  ;;  %v481_v4 = vpop.permute.xlu0 %480 }
 0x17f   :  { %472 = vst.msk [vmem:[#allocation2 + $0xe0] sm:$0xff] %vm394_vm2, %v436_v1  ;;  %527 = vst.msk [vmem:[#allocation2 + $0x110] sm:$0xff] %vm394_vm2, %v481_v4 }
 0x180   :  { %701 = vrot.lane.b32.xlu1 %v4450_v8, %s4251_s20  ;;  %689 = vrot.lane.b32.xlu0 %v4479_v20, %s4251_s20 }
 0x182   :  { %v491_v5 = vpop.permute.xlu1 %490  ;;  %v479_v6 = vpop.permute.xlu0 %478 }
 0x183   :  { %532 = vst.msk [vmem:[#allocation2 + $0x138] sm:$0xff] %vm394_vm2, %v491_v5  ;;  %526 = vst.msk [vmem:[#allocation2 + $0x108] sm:$0xff] %vm394_vm2, %v479_v6  ;;  %v868_v5 = vld [vmem:[#allocation2 + $0x10] sm:$0xff] }
 0x184   :  { %699 = vrot.lane.b32.xlu1 %v4460_v12, %s4251_s20  ;;  %687 = vrot.lane.b32.xlu0 %v4482_v23, %s4251_s20 }
 0x186   :  { %v489_v9 = vpop.permute.xlu1 %488  ;;  %v477_v10 = vpop.permute.xlu0 %476 }
 0x187   :  { %531 = vst.msk [vmem:[#allocation2 + $0x130] sm:$0xff] %vm394_vm2, %v489_v9  ;;  %525 = vst.msk [vmem:[#allocation2 + $0x100] sm:$0xff] %vm394_vm2, %v477_v10 }
 0x188   :  { %697 = vrot.lane.b32.xlu1 %v4435_v62, %s4251_s20  ;;  %742 = vrot.lane.b32.xlu0 %v4433_v61, %s4252_s21 }
 0x18a   :  { %v487_v13 = vpop.permute.xlu1 %486  ;;  %v499_v14 = vpop.permute.xlu0 %498 }
 0x18b   :  { %530 = vst.msk [vmem:[#allocation2 + $0x128] sm:$0xff] %vm394_vm2, %v487_v13  ;;  %536 = vst.msk [vmem:[#allocation2 + $0x158] sm:$0xff] %vm394_vm2, %v499_v14  ;;  %v871_v14 = vld [vmem:[#allocation2 + $0x28] sm:$0xff] }
 0x18c   :  { %695 = vrot.lane.b32.xlu1 %v4442_v3, %s4251_s20  ;;  %740 = vrot.lane.b32.xlu0 %v4440_v2, %s4252_s21 }
 0x18e   :  { %v485_v16 = vpop.permute.xlu1 %484  ;;  %v497_v17 = vpop.permute.xlu0 %496 }
 0x18f   :  { %529 = vst.msk [vmem:[#allocation2 + $0x120] sm:$0xff] %vm394_vm2, %v485_v16  ;;  %535 = vst.msk [vmem:[#allocation2 + $0x150] sm:$0xff] %vm394_vm2, %v497_v17 }
 0x190   :  { %750 = vrot.lane.b32.xlu1 %v4463_v15, %s4252_s21  ;;  %738 = vrot.lane.b32.xlu0 %v4418_v51, %s4252_s21 }
 0x192   :  { %v507_v61 = vpop.permute.xlu1 %506  ;;  %v495_v19 = vpop.permute.xlu0 %494 }
 0x193   :  { %540 = vst.msk [vmem:[#allocation2 + $0x178] sm:$0xff] %vm394_vm2, %v507_v61  ;;  %534 = vst.msk [vmem:[#allocation2 + $0x148] sm:$0xff] %vm394_vm2, %v495_v19 }
 0x194   :  { %748 = vrot.lane.b32.xlu1 %v4470_v18, %s4252_s21  ;;  %736 = vrot.lane.b32.xlu0 %v4424_v56, %s4252_s21 }
 0x196   :  { %v505_v2 = vpop.permute.xlu1 %504  ;;  %v493_v21 = vpop.permute.xlu0 %492 }
 0x197   :  { %539 = vst.msk [vmem:[#allocation2 + $0x170] sm:$0xff] %vm394_vm2, %v505_v2  ;;  %533 = vst.msk [vmem:[#allocation2 + $0x140] sm:$0xff] %vm394_vm2, %v493_v21  ;;  %v870_v2 = vld [vmem:[#allocation2 + $0x20] sm:$0xff] }
 0x198   :  { %746 = vrot.lane.b32.xlu1 %v4448_v7, %s4252_s21  ;;  %758 = vrot.lane.b32.xlu0 %v4420_v52, %s4252_s21 }
 0x19a   :  { %v503_v51 = vpop.permute.xlu1 %502  ;;  %v548_v15 = vpop.permute.xlu0 %547 }
 0x19b   :  { %538 = vst.msk [vmem:[#allocation2 + $0x168] sm:$0xff] %vm394_vm2, %v503_v51  ;;  %593 = vst.msk [vmem:[#allocation2 + $0x198] sm:$0xff] %vm394_vm2, %v548_v15 }
 0x19c   :  { %744 = vrot.lane.b32.xlu1 %v4452_v11, %s4252_s21  ;;  %756 = vrot.lane.b32.xlu0 %v4426_v57, %s4252_s21  ;;  %v2908_v57 = vld [vmem:[%s5426_s5] sm:$0xff] }
 0x19e   :  { %v501_v56 = vpop.permute.xlu1 %500  ;;  %v546_v18 = vpop.permute.xlu0 %545 }
 0x19f   :  { %537 = vst.msk [vmem:[#allocation2 + $0x160] sm:$0xff] %vm394_vm2, %v501_v56  ;;  %592 = vst.msk [vmem:[#allocation2 + $0x190] sm:$0xff] %vm394_vm2, %v546_v18  ;;  %v873_v18 = vld [vmem:[#allocation2 + $0x38] sm:$0xff] }
 0x1a0   :  { %766 = vrot.lane.b32.xlu1 %v4450_v8, %s4252_s21  ;;  %754 = vrot.lane.b32.xlu0 %v4479_v20, %s4252_s21 }
 0x1a2   :  { %v556_v52 = vpop.permute.xlu1 %555  ;;  %v544_v7 = vpop.permute.xlu0 %543 }
 0x1a3   :  { %597 = vst.msk [vmem:[#allocation2 + $0x1b8] sm:$0xff] %vm394_vm2, %v556_v52  ;;  %591 = vst.msk [vmem:[#allocation2 + $0x188] sm:$0xff] %vm394_vm2, %v544_v7 }
 0x1a4   :  { %764 = vrot.lane.b32.xlu1 %v4460_v12, %s4252_s21  ;;  %752 = vrot.lane.b32.xlu0 %v4482_v23, %s4252_s21 }
 0x1a6   :  { %v554_v8 = vpop.permute.xlu1 %553  ;;  %v542_v11 = vpop.permute.xlu0 %541 }
 0x1a7   :  { %596 = vst.msk [vmem:[#allocation2 + $0x1b0] sm:$0xff] %vm394_vm2, %v554_v8  ;;  %590 = vst.msk [vmem:[#allocation2 + $0x180] sm:$0xff] %vm394_vm2, %v542_v11  ;;  %v872_v11 = vld [vmem:[#allocation2 + $0x30] sm:$0xff] }
 0x1a8   :  { %762 = vrot.lane.b32.xlu1 %v4435_v62, %s4252_s21  ;;  %2911 = vperm.xlu0 %3707, %v2908_v57  }
 0x1aa   :  { %v552_v20 = vpop.permute.xlu1 %551  ;;  %v564_v22 = vpop.permute.xlu0 %563 }
 0x1ab   :  { %595 = vst.msk [vmem:[#allocation2 + $0x1a8] sm:$0xff] %vm394_vm2, %v552_v20  ;;  %601 = vst.msk [vmem:[#allocation2 + $0x1d8] sm:$0xff] %vm394_vm2, %v564_v22 }
 0x1ac   :  { %760 = vrot.lane.b32.xlu1 %v4442_v3, %s4252_s21 }
 0x1ae   :  { %v550_v12 = vpop.permute.xlu1 %549  ;;  %v562_v23 = vpop.permute.xlu0 %561 }
 0x1af   :  { %594 = vst.msk [vmem:[#allocation2 + $0x1a0] sm:$0xff] %vm394_vm2, %v550_v12  ;;  %600 = vst.msk [vmem:[#allocation2 + $0x1d0] sm:$0xff] %vm394_vm2, %v562_v23 }
 0x1b2   :  { %v572_v24 = vpop.permute.xlu1 %571  ;;  %v560_v25 = vpop.permute.xlu0 %559 }
 0x1b3   :  { %605 = vst.msk [vmem:[#allocation2 + $0x1f8] sm:$0xff] %vm394_vm2, %v572_v24  ;;  %599 = vst.msk [vmem:[#allocation2 + $0x1c8] sm:$0xff] %vm394_vm2, %v560_v25 }
 0x1b6   :  { %v570_v62 = vpop.permute.xlu1 %569  ;;  %v558_v26 = vpop.permute.xlu0 %557 }
 0x1b7   :  { %604 = vst.msk [vmem:[#allocation2 + $0x1f0] sm:$0xff] %vm394_vm2, %v570_v62  ;;  %598 = vst.msk [vmem:[#allocation2 + $0x1c0] sm:$0xff] %vm394_vm2, %v558_v26  ;;  %v875_v62 = vld [vmem:[#allocation2 + $0x48] sm:$0xff] }
 0x1ba   :  { %v568_v27 = vpop.permute.xlu1 %567  ;;  %v613_v3 = vpop.permute.xlu0 %612 }
 0x1bb   :  { %603 = vst.msk [vmem:[#allocation2 + $0x1e8] sm:$0xff] %vm394_vm2, %v568_v27  ;;  %658 = vst.msk [vmem:[#allocation2 + $0x218] sm:$0xff] %vm394_vm2, %v613_v3 }
 0x1be   :  { %v566_v28 = vpop.permute.xlu1 %565  ;;  %v611_v29 = vpop.permute.xlu0 %610 }
 0x1bf   :  { %602 = vst.msk [vmem:[#allocation2 + $0x1e0] sm:$0xff] %vm394_vm2, %v566_v28  ;;  %657 = vst.msk [vmem:[#allocation2 + $0x210] sm:$0xff] %vm394_vm2, %v611_v29  ;;  %v3442_v31 = vpop.f32.mrf.mxu1  ;;  %v874_v29 = vld [vmem:[#allocation2 + $0x40] sm:$0xff] }
 0x1c0   :  { %v1003_v32 = vadd.f32 %v3442_v31, %v867_v30 }
 0x1c1   :  { %v997_v33 = vpop.f32.mrf.mxu1 }
 0x1c2   :  { %v3030_v38 = vmul.f32 -1.442695, %v1003_v32  ;;  %v998_v39 = vadd.f32 %v997_v33, %v866_v36  ;;  %v621_v40 = vpop.permute.xlu1 %620  ;;  %v609_v41 = vpop.permute.xlu0 %608 }
 0x1c3   :  { %662 = vst.msk [vmem:[#allocation2 + $0x238] sm:$0xff] %vm394_vm2, %v621_v40  ;;  %656 = vst.msk [vmem:[#allocation2 + $0x208] sm:$0xff] %vm394_vm2, %v609_v41  ;;  %v3445_v43 = vpop.f32.mrf.mxu1 }
 0x1c4   :  { %3733 = vpow2.f32 %v3030_v38  ;;  %v3029_v34 = vmul.f32 -1.442695, %v998_v39  ;;  %v1013_v1 = vadd.f32 %v3445_v43, %v869_v42  ;;  %v877_v39 = vld [vmem:[#allocation2 + $0x58] sm:$0xff] }
 0x1c5   :  { %v1007_v4 = vpop.f32.mrf.mxu1 }
 0x1c6   :  { %3735 = vpow2.f32 %v3029_v34  ;;  %v3032_v6 = vmul.f32 -1.442695, %v1013_v1  ;;  %v1008_v9 = vadd.f32 %v1007_v4, %v868_v5  ;;  %v619_v10 = vpop.permute.xlu1 %618  ;;  %v607_v13 = vpop.permute.xlu0 %606  ;;  %v876_v34 = vld [vmem:[#allocation2 + $0x50] sm:$0xff] }
 0x1c7   :  { %661 = vst.msk [vmem:[#allocation2 + $0x230] sm:$0xff] %vm394_vm2, %v619_v10  ;;  %655 = vst.msk [vmem:[#allocation2 + $0x200] sm:$0xff] %vm394_vm2, %v607_v13  ;;  %v3448_v16 = vpop.f32.mrf.mxu1 }
 0x1c8   :  { %3737 = vpow2.f32 %v3032_v6  ;;  %v3031_v17 = vmul.f32 -1.442695, %v1008_v9  ;;  %v1023_v61 = vadd.f32 %v3448_v16, %v871_v14  ;;  %v879_v9 = vld [vmem:[#allocation2 + $0x68] sm:$0xff] }
 0x1c9   :  { %v1017_v19 = vpop.f32.mrf.mxu1 }
 0x1ca   :  { %3739 = vpow2.f32 %v3031_v17  ;;  %v3034_v21 = vmul.f32 -1.442695, %v1023_v61  ;;  %v1018_v51 = vadd.f32 %v1017_v19, %v870_v2  ;;  %v617_v15 = vpop.permute.xlu1 %616  ;;  %v629_v56 = vpop.permute.xlu0 %628 }
 0x1cb   :  { %660 = vst.msk [vmem:[#allocation2 + $0x228] sm:$0xff] %vm394_vm2, %v617_v15  ;;  %666 = vst.msk [vmem:[#allocation2 + $0x258] sm:$0xff] %vm394_vm2, %v629_v56  ;;  %v3451_v52 = vpop.f32.mrf.mxu1  ;;  %v878_v15 = vld [vmem:[#allocation2 + $0x60] sm:$0xff]  ;;  %v881_v56 = vld [vmem:[#allocation2 + $0x78] sm:$0xff] }
 0x1cc   :  { %3741 = vpow2.f32 %v3034_v21  ;;  %v3033_v7 = vmul.f32 -1.442695, %v1018_v51  ;;  %v1033_v57 = vadd.f32 %v3451_v52, %v873_v18 }
 0x1cd   :  { %v1027_v8 = vpop.f32.mrf.mxu1 }
 0x1ce   :  { %3743 = vpow2.f32 %v3033_v7  ;;  %v3036_v20 = vmul.f32 -1.442695, %v1033_v57  ;;  %v1028_v22 = vadd.f32 %v1027_v8, %v872_v11  ;;  %v615_v12 = vpop.permute.xlu1 %614  ;;  %v627_v23 = vpop.permute.xlu0 %626 }
 0x1cf   :  { %659 = vst.msk [vmem:[#allocation2 + $0x220] sm:$0xff] %vm394_vm2, %v615_v12  ;;  %665 = vst.msk [vmem:[#allocation2 + $0x250] sm:$0xff] %vm394_vm2, %v627_v23  ;;  %v3454_v24 = vpop.f32.mrf.mxu1 }
 0x1d0   :  { %3745 = vpow2.f32 %v3036_v20  ;;  %v3035_v25 = vmul.f32 -1.442695, %v1028_v22  ;;  %v1043_v27 = vadd.f32 %v3454_v24, %v875_v62  ;;  %v880_v20 = vld [vmem:[#allocation2 + $0x70] sm:$0xff] }
 0x1d1   :  { %v3734_v26 = vpop.eup %3733  ;;  %v1037_v3 = vpop.f32.mrf.mxu1 }
 0x1d2   :  { %v1113_v28 = vadd.f32 1.0, %v3734_v26  ;;  %3747 = vpow2.f32 %v3035_v25  ;;  %v637_v30 = vpop.permute.xlu1 %636  ;;  %v625_v31 = vpop.permute.xlu0 %624  ;;  %v1038_v33 = vadd.f32 %v1037_v3, %v874_v29 }
 0x1d3   :  { %v3736_v32 = vpop.eup %3735  ;;  %670 = vst.msk [vmem:[#allocation2 + $0x278] sm:$0xff] %vm394_vm2, %v637_v30  ;;  %664 = vst.msk [vmem:[#allocation2 + $0x248] sm:$0xff] %vm394_vm2, %v625_v31  ;;  %v3457_v36 = vpop.f32.mrf.mxu1  ;;  %3749 = vtanh.f32 %v1043_v27 }
 0x1d4   :  { %v1112_v38 = vadd.f32 1.0, %v3736_v32  ;;  %v1053_v41 = vadd.f32 %v3457_v36, %v877_v39  ;;  %3751 = vrcp.f32 %v1113_v28 }
 0x1d5   :  { %v3738_v40 = vpop.eup %3737  ;;  %v1047_v42 = vpop.f32.mrf.mxu1  ;;  %3753 = vtanh.f32 %v1038_v33 }
 0x1d6   :  { %v1115_v43 = vadd.f32 1.0, %v3738_v40  ;;  %v635_v1 = vpop.permute.xlu1 %634  ;;  %v623_v4 = vpop.permute.xlu0 %622  ;;  %v1048_v6 = vadd.f32 %v1047_v42, %v876_v34  ;;  %3755 = vrcp.f32 %v1112_v38 }
 0x1d7   :  { %v3740_v5 = vpop.eup %3739  ;;  %669 = vst.msk [vmem:[#allocation2 + $0x270] sm:$0xff] %vm394_vm2, %v635_v1  ;;  %663 = vst.msk [vmem:[#allocation2 + $0x240] sm:$0xff] %vm394_vm2, %v623_v4  ;;  %v3460_v10 = vpop.f32.mrf.mxu1  ;;  %3757 = vtanh.f32 %v1053_v41 }
 0x1d8   :  { %v1063_v13 = vadd.f32 %v3460_v10, %v879_v9  ;;  %v1114_v16 = vadd.f32 1.0, %v3740_v5  ;;  %3759 = vrcp.f32 %v1115_v43 }
 0x1d9   :  { %v3742_v14 = vpop.eup %3741  ;;  %v1057_v17 = vpop.f32.mrf.mxu1  ;;  %3761 = vtanh.f32 %v1048_v6 }
 0x1da   :  { %v1117_v61 = vadd.f32 1.0, %v3742_v14  ;;  %v633_v19 = vpop.permute.xlu1 %632  ;;  %v678_v2 = vpop.permute.xlu0 %677  ;;  %v3038_v51 = vmul.f32 -1.442695, %v1063_v13  ;;  %v1058_v7 = vadd.f32 %v1057_v17, %v878_v15 }
 0x1db   :  { %v3744_v21 = vpop.eup %3743  ;;  %668 = vst.msk [vmem:[#allocation2 + $0x268] sm:$0xff] %vm394_vm2, %v633_v19  ;;  %723 = vst.msk [vmem:[#allocation2 + $0x298] sm:$0xff] %vm394_vm2, %v678_v2  ;;  %v3463_v18 = vpop.f32.mrf.mxu1 }
 0x1dc   :  { %3763 = vrcp.f32 %v1117_v61  ;;  %v1116_v52 = vadd.f32 1.0, %v3744_v21  ;;  %v1073_v57 = vadd.f32 %v3463_v18, %v881_v56  ;;  %v3037_v27 = vmul.f32 -1.442695, %v1058_v7 }
 0x1dd   :  { %v3746_v8 = vpop.eup %3745  ;;  %3765 = vrcp.f32 %v1114_v16  ;;  %v1067_v11 = vpop.f32.mrf.mxu1 }
 0x1de   :  { %3767 = vrcp.f32 %v1116_v52  ;;  %v1119_v22 = vadd.f32 1.0, %v3746_v8  ;;  %v3040_v12 = vmul.f32 -1.442695, %v1073_v57  ;;  %v1068_v23 = vadd.f32 %v1067_v11, %v880_v20  ;;  %v631_v24 = vpop.permute.xlu1 %630  ;;  %v676_v25 = vpop.permute.xlu0 %675 }
 0x1df   :  { %v3748_v62 = vpop.eup %3747  ;;  %3769 = vpow2.f32 %v3038_v51  ;;  %667 = vst.msk [vmem:[#allocation2 + $0x260] sm:$0xff] %vm394_vm2, %v631_v24  ;;  %722 = vst.msk [vmem:[#allocation2 + $0x290] sm:$0xff] %vm394_vm2, %v676_v25 }
 0x1e0   :  { %3771 = vrcp.f32 %v1119_v22  ;;  %v1118_v26 = vadd.f32 1.0, %v3748_v62  ;;  %v3039_v3 = vmul.f32 -1.442695, %v1068_v23  ;;  %v3750_v28 = vpop.eup %3749 }
 0x1e1   :  { %3773 = vpow2.f32 %v3040_v12  ;;  %v3752_v31 = vpop.eup %3751 }
 0x1e2   :  { %3775 = vrcp.f32 %v1118_v26  ;;  %v686_v29 = vpop.permute.xlu1 %685  ;;  %v674_v30 = vpop.permute.xlu0 %673  ;;  %v1157_v1 = vmul.f32 %v3752_v31, %v3750_v28 }
 0x1e3   :  { %3777 = vpow2.f32 %v3039_v3  ;;  %727 = vst.msk [vmem:[#allocation2 + $0x2b8] sm:$0xff] %vm394_vm2, %v686_v29  ;;  %721 = vst.msk [vmem:[#allocation2 + $0x288] sm:$0xff] %vm394_vm2, %v674_v30  ;;  %v3754_v32 = vpop.eup %3753 }
 0x1e4   :  { %3779 = vpow2.f32 %v3037_v27  ;;  %v3756_v33 = vpop.eup %3755 }
 0x1e5   :  { %v3758_v36 = vpop.eup %3757  ;;  %v1156_v21 = vmul.f32 %v3756_v33, %v3754_v32 }
 0x1e6   :  { %v684_v38 = vpop.permute.xlu1 %683  ;;  %v672_v39 = vpop.permute.xlu0 %671 }
 0x1e7   :  { %v3760_v40 = vpop.eup %3759  ;;  %726 = vst.msk [vmem:[#allocation2 + $0x2b0] sm:$0xff] %vm394_vm2, %v684_v38  ;;  %720 = vst.msk [vmem:[#allocation2 + $0x280] sm:$0xff] %vm394_vm2, %v672_v39 }
 0x1e8   :  { %v3762_v41 = vpop.eup %3761  ;;  %v1159_v61 = vmul.f32 %v3760_v40, %v3758_v36 }
 0x1e9   :  { %v3764_v42 = vpop.eup %3763 }
 0x1ea   :  { %v3766_v43 = vpop.eup %3765  ;;  %v1153_v34 = vmul.f32 %v3764_v42, %v4506_v35  ;;  %v682_v4 = vpop.permute.xlu1 %681 }
 0x1eb   :  { %v694_v5 = vpop.permute.xlu0 %693  ;;  %v3768_v6 = vpop.eup %3767  ;;  %725 = vst.msk [vmem:[#allocation2 + $0x2a8] sm:$0xff] %vm394_vm2, %v682_v4  ;;  %v1158_v52 = vmul.f32 %v3766_v43, %v3762_v41 }
 0x1ec   :  { %731 = vst.msk [vmem:[#allocation2 + $0x2d8] sm:$0xff] %vm394_vm2, %v694_v5  ;;  %v3770_v9 = vpop.eup %3769  ;;  %v4903_v10 = vadd.f32 %v1157_v1, %v1153_v34  ;;  %v1152_v17 = vmul.f32 %v3768_v6, %v4509_v37 }
 0x1ed   :  { %v3772_v13 = vpop.eup %3771  ;;  %v1121_v57 = vadd.f32 1.0, %v3770_v9 }
 0x1ee   :  { %v3774_v14 = vpop.eup %3773  ;;  %v1155_v16 = vmul.f32 0.0, %v3772_v13  ;;  %v680_v19 = vpop.permute.xlu1 %679  ;;  %3781 = vtanh.f32 %v4903_v10  ;;  %v4911_v8 = vadd.f32 %v1156_v21, %v1152_v17 }
 0x1ef   :  { %v692_v2 = vpop.permute.xlu0 %691  ;;  %v3776_v35 = vpop.eup %3775  ;;  %v1123_v51 = vadd.f32 1.0, %v3774_v14  ;;  %724 = vst.msk [vmem:[#allocation2 + $0x2a0] sm:$0xff] %vm394_vm2, %v680_v19  ;;  %v1175_v14 = vld [vmem:[#allocation2 + $0x98] sm:$0xff] }
 0x1f0   :  { %730 = vst.msk [vmem:[#allocation2 + $0x2d0] sm:$0xff] %vm394_vm2, %v692_v2  ;;  %v3778_v15 = vpop.eup %3777  ;;  %v1154_v56 = vmul.f32 0.0, %v3776_v35  ;;  %v4908_v18 = vadd.f32 %v1159_v61, %v1155_v16  ;;  %v1174_v61 = vld [vmem:[#allocation2 + $0x90] sm:$0xff]  ;;  %v1177_v35 = vld [vmem:[#allocation2 + $0xa8] sm:$0xff] }
 0x1f1   :  { %v3780_v7 = vpop.eup %3779  ;;  %3783 = vrcp.f32 %v1123_v51  ;;  %v1122_v37 = vadd.f32 1.0, %v3778_v15 }
 0x1f2   :  { %v4913_v11 = vadd.f32 %v1158_v52, %v1154_v56  ;;  %v702_v20 = vpop.permute.xlu1 %701  ;;  %3785 = vtanh.f32 %v4908_v18  ;;  %v1120_v12 = vadd.f32 1.0, %v3780_v7  ;;  %v1176_v52 = vld [vmem:[#allocation2 + $0xa0] sm:$0xff] }
 0x1f3   :  { %v690_v22 = vpop.permute.xlu0 %689  ;;  %3787 = vrcp.f32 %v1122_v37  ;;  %735 = vst.msk [vmem:[#allocation2 + $0x2f8] sm:$0xff] %vm394_vm2, %v702_v20  ;;  %v1179_v37 = vld [vmem:[#allocation2 + $0xb8] sm:$0xff] }
 0x1f4   :  { %729 = vst.msk [vmem:[#allocation2 + $0x2c8] sm:$0xff] %vm394_vm2, %v690_v22  ;;  %3789 = vtanh.f32 %v4913_v11 }
 0x1f5   :  { %3791 = vrcp.f32 %v1121_v57 }
 0x1f6   :  { %v700_v23 = vpop.permute.xlu1 %699  ;;  %3793 = vtanh.f32 %v4911_v8 }
 0x1f7   :  { %v688_v24 = vpop.permute.xlu0 %687  ;;  %734 = vst.msk [vmem:[#allocation2 + $0x2f0] sm:$0xff] %vm394_vm2, %v700_v23  ;;  %3795 = vrcp.f32 %v1120_v12 }
 0x1f8   :  { %728 = vst.msk [vmem:[#allocation2 + $0x2c0] sm:$0xff] %vm394_vm2, %v688_v24  ;;  %v1178_v24 = vld [vmem:[#allocation2 + $0xb0] sm:$0xff] }
 0x1fa   :  { %v698_v25 = vpop.permute.xlu1 %697 }
 0x1fb   :  { %v743_v62 = vpop.permute.xlu0 %742  ;;  %733 = vst.msk [vmem:[#allocation2 + $0x2e8] sm:$0xff] %vm394_vm2, %v698_v25  ;;  %v3782_v26 = vpop.eup %3781 }
 0x1fc   :  { %788 = vst.msk [vmem:[#allocation2 + $0x318] sm:$0xff] %vm394_vm2, %v743_v62 }
 0x1fe   :  { %v3784_v27 = vpop.eup %3783  ;;  %v696_v3 = vpop.permute.xlu1 %695 }
 0x1ff   :  { %v741_v28 = vpop.permute.xlu0 %740  ;;  %v3786_v29 = vpop.eup %3785  ;;  %732 = vst.msk [vmem:[#allocation2 + $0x2e0] sm:$0xff] %vm394_vm2, %v696_v3  ;;  %v1181_v3 = vld [vmem:[#allocation2 + $0xc8] sm:$0xff] }
 0x200   :  { %787 = vst.msk [vmem:[#allocation2 + $0x310] sm:$0xff] %vm394_vm2, %v741_v28  ;;  %v3788_v30 = vpop.eup %3787  ;;  %v1171_v31 = vmul.f32 %v3786_v29, %v3784_v27 }
 0x201   :  { %v3790_v32 = vpop.eup %3789 }
 0x202   :  { %v3792_v33 = vpop.eup %3791  ;;  %3464 = vmatprep.subr.mxu0 %v1171_v31  ;;  %v751_v36 = vpop.permute.xlu1 %750  ;;  %v1170_v39 = vmul.f32 %v3790_v32, %v3788_v30  ;;  %v1180_v32 = vld [vmem:[#allocation2 + $0xc0] sm:$0xff] }
 0x203   :  { %v739_v38 = vpop.permute.xlu0 %738  ;;  %v3794_v40 = vpop.eup %3793  ;;  %792 = vst.msk [vmem:[#allocation2 + $0x338] sm:$0xff] %vm394_vm2, %v751_v36  ;;  %3465 = vmatpush3.msra.mxu0 %v1171_v31  ;;  %v1169_v41 = vmul.f32 %v3792_v33, %v3782_v26 }
 0x204   :  { %786 = vst.msk [vmem:[#allocation2 + $0x308] sm:$0xff] %vm394_vm2, %v739_v38  ;;  %3466 = vmatprep.subr.mxu0 %v1170_v39  ;;  %v3796_v42 = vpop.eup %3795 }
 0x205   :  { %3467 = vmatpush3.msra.mxu0 %v1170_v39  ;;  %v1168_v1 = vmul.f32 %v3796_v42, %v3794_v40  ;;  %v1183_v40 = vld [vmem:[#allocation2 + $0xd8] sm:$0xff] }
 0x206   :  { %3468 = vmatprep.subr.mxu0 %v1169_v41  ;;  %v749_v43 = vpop.permute.xlu1 %748 }
 0x207   :  { %v737_v34 = vpop.permute.xlu0 %736  ;;  %791 = vst.msk [vmem:[#allocation2 + $0x330] sm:$0xff] %vm394_vm2, %v749_v43  ;;  %3469 = vmatpush3.msra.mxu0 %v1169_v41 }
 0x208   :  { %785 = vst.msk [vmem:[#allocation2 + $0x300] sm:$0xff] %vm394_vm2, %v737_v34  ;;  %3470 = vmatprep.subr.mxu0 %v1168_v1 }
 0x209   :  { %3471 = vmatpush3.msra.mxu0 %v1168_v1  ;;  %v1182_v1 = vld [vmem:[#allocation2 + $0xd0] sm:$0xff] }
 0x20a   :  { %3473 = vmatmul.mubr.msk.f32.vlgmr.msra.gmra.mxu0 %vm882_vm1, %v4535_v44  ;;  %v747_v4 = vpop.permute.xlu1 %746 }
 0x20b   :  { %v759_v5 = vpop.permute.xlu0 %758  ;;  %790 = vst.msk [vmem:[#allocation2 + $0x328] sm:$0xff] %vm394_vm2, %v747_v4  ;;  %3475 = vmatprep.mubr.msk.f32.mxu0 %vm882_vm1, %v4540_v45 }
 0x20c   :  { %796 = vst.msk [vmem:[#allocation2 + $0x358] sm:$0xff] %vm394_vm2, %v759_v5 }
 0x20e   :  { %3476 = vmatmul.mubr.msk.f32.gmra.mxu0 %vm882_vm1, %v4551_v46  ;;  %v745_v6 = vpop.permute.xlu1 %744 }
 0x20f   :  { %v757_v9 = vpop.permute.xlu0 %756  ;;  %789 = vst.msk [vmem:[#allocation2 + $0x320] sm:$0xff] %vm394_vm2, %v745_v6  ;;  %3478 = vmatprep.mubr.msk.f32.mxu0 %vm882_vm1, %v4558_v47  ;;  %v1185_v6 = vld [vmem:[#allocation2 + $0xe8] sm:$0xff] }
 0x210   :  { %795 = vst.msk [vmem:[#allocation2 + $0x350] sm:$0xff] %vm394_vm2, %v757_v9 }
 0x212   :  { %3479 = vmatmul.mubr.msk.f32.gmra.mxu0 %vm882_vm1, %v4569_v48  ;;  %v767_v44 = vpop.permute.xlu1 %766 }
 0x213   :  { %v755_v13 = vpop.permute.xlu0 %754  ;;  %800 = vst.msk [vmem:[#allocation2 + $0x378] sm:$0xff] %vm394_vm2, %v767_v44  ;;  %3481 = vmatprep.mubr.msk.f32.mxu0 %vm882_vm1, %v4576_v49  ;;  %v4973_v49 = vld [vmem:[%s5425_s3] sm:$0xff] }
 0x214   :  { %794 = vst.msk [vmem:[#allocation2 + $0x348] sm:$0xff] %vm394_vm2, %v755_v13 }
 0x216   :  { %3482 = vmatmul.mubr.msk.f32.gmra.mxu0 %vm882_vm1, %v4587_v50  ;;  %v765_v45 = vpop.permute.xlu1 %764  ;;  %v1173_v50 = vld [vmem:[#allocation2 + $0x88] sm:$0xff] }
 0x217   :  { %v753_v46 = vpop.permute.xlu0 %752  ;;  %799 = vst.msk [vmem:[#allocation2 + $0x370] sm:$0xff] %vm394_vm2, %v765_v45  ;;  %3484 = vmatprep.mubr.msk.f32.mxu0 %vm882_vm1, %v4594_v53 }
 0x218   :  { %793 = vst.msk [vmem:[#allocation2 + $0x340] sm:$0xff] %vm394_vm2, %v753_v46 }
 0x21a   :  { %3485 = vmatmul.mubr.msk.f32.gmra.mxu0 %vm882_vm1, %v4605_v54  ;;  %v763_v47 = vpop.permute.xlu1 %762 }
 0x21b   :  { %798 = vst.msk [vmem:[#allocation2 + $0x368] sm:$0xff] %vm394_vm2, %v763_v47  ;;  %3487 = vmatprep.mubr.msk.f32.mxu0 %vm882_vm1, %v4612_v55 }
 0x21e   :  { %3488 = vmatmul.mubr.msk.f32.gmra.mxu0 %vm882_vm1, %v4623_v58  ;;  %v761_v48 = vpop.permute.xlu1 %760  ;;  %v1172_v58 = vld [vmem:[#allocation2 + $0x80] sm:$0xff] }
 0x21f   :  { %797 = vst.msk [vmem:[#allocation2 + $0x360] sm:$0xff] %vm394_vm2, %v761_v48  ;;  %3490 = vmatprep.mubr.msk.f32.mxu0 %vm882_vm1, %v4630_v59 }
 0x222   :  { %3491 = vmatmul.mubr.msk.f32.gmra.mxu0 %vm882_vm1, %v4641_v60 }
 0x223   :  { %3493 = vmatprep.mubr.msk.f32.mxu0 %vm882_vm1, %v4648_v63 }
 0x226   :  { %3494 = vmatmul.mubr.msk.f32.gmra.mxu0 %vm882_vm1, %v4659_v0 }
 0x227   :  { %3536 = vmatprep.mubr.msk.f32.mxu0 %vm882_vm1, %v4973_v49 }
 0x2ca   :  { %v3474_v53 = vpop.f32.mrf.mxu0 }
 0x2cb   :  { %v1260_v54 = vadd.f32 %v3474_v53, %v1173_v50  ;;  %v1184_v53 = vld [vmem:[#allocation2 + $0xe0] sm:$0xff] }
 0x2cc   :  { %v1254_v55 = vpop.f32.mrf.mxu0 }
 0x2cd   :  { %v3058_v59 = vmul.f32 -1.442695, %v1260_v54  ;;  %v1255_v60 = vadd.f32 %v1254_v55, %v1172_v58  ;;  %v1187_v54 = vld [vmem:[#allocation2 + $0xf8] sm:$0xff] }
 0x2ce   :  { %v3477_v63 = vpop.f32.mrf.mxu0 }
 0x2cf   :  { %3797 = vpow2.f32 %v3058_v59  ;;  %v3057_v16 = vmul.f32 -1.442695, %v1255_v60  ;;  %v1270_v0 = vadd.f32 %v3477_v63, %v1175_v14 }
 0x2d0   :  { %v1264_v17 = vpop.f32.mrf.mxu0 }
 0x2d1   :  { %3799 = vpow2.f32 %v3057_v16  ;;  %v3060_v19 = vmul.f32 -1.442695, %v1270_v0  ;;  %v1265_v2 = vadd.f32 %v1264_v17, %v1174_v61  ;;  %v1186_v16 = vld [vmem:[#allocation2 + $0xf0] sm:$0xff] }
 0x2d2   :  { %v3480_v21 = vpop.f32.mrf.mxu0 }
 0x2d3   :  { %3801 = vpow2.f32 %v3060_v19  ;;  %v3059_v51 = vmul.f32 -1.442695, %v1265_v2  ;;  %v1280_v15 = vadd.f32 %v3480_v21, %v1177_v35 }
 0x2d4   :  { %v1274_v56 = vpop.f32.mrf.mxu0 }
 0x2d5   :  { %3803 = vpow2.f32 %v3059_v51  ;;  %v3062_v7 = vmul.f32 -1.442695, %v1280_v15  ;;  %v1275_v57 = vadd.f32 %v1274_v56, %v1176_v52 }
 0x2d6   :  { %v3483_v20 = vpop.f32.mrf.mxu0 }
 0x2d7   :  { %3805 = vpow2.f32 %v3062_v7  ;;  %v3061_v22 = vmul.f32 -1.442695, %v1275_v57  ;;  %v1290_v12 = vadd.f32 %v3483_v20, %v1179_v37 }
 0x2d8   :  { %v1284_v23 = vpop.f32.mrf.mxu0 }
 0x2d9   :  { %3807 = vpow2.f32 %v3061_v22  ;;  %v3064_v25 = vmul.f32 -1.442695, %v1290_v12  ;;  %v1285_v62 = vadd.f32 %v1284_v23, %v1178_v24 }
 0x2da   :  { %v3486_v26 = vpop.f32.mrf.mxu0 }
 0x2db   :  { %3809 = vpow2.f32 %v3064_v25  ;;  %v3063_v27 = vmul.f32 -1.442695, %v1285_v62  ;;  %v1300_v29 = vadd.f32 %v3486_v26, %v1181_v3 }
 0x2dc   :  { %v3798_v28 = vpop.eup %3797  ;;  %v1294_v30 = vpop.f32.mrf.mxu0 }
 0x2dd   :  { %v1370_v31 = vadd.f32 1.0, %v3798_v28  ;;  %3811 = vpow2.f32 %v3063_v27  ;;  %v1295_v36 = vadd.f32 %v1294_v30, %v1180_v32 }
 0x2de   :  { %v3800_v33 = vpop.eup %3799  ;;  %v3489_v38 = vpop.f32.mrf.mxu0  ;;  %3813 = vtanh.f32 %v1300_v29 }
 0x2df   :  { %v1369_v39 = vadd.f32 1.0, %v3800_v33  ;;  %v1310_v42 = vadd.f32 %v3489_v38, %v1183_v40  ;;  %3815 = vrcp.f32 %v1370_v31 }
 0x2e0   :  { %v3802_v41 = vpop.eup %3801  ;;  %v1304_v43 = vpop.f32.mrf.mxu0  ;;  %3817 = vtanh.f32 %v1295_v36 }
 0x2e1   :  { %v1372_v34 = vadd.f32 1.0, %v3802_v41  ;;  %v1305_v5 = vadd.f32 %v1304_v43, %v1182_v1  ;;  %3819 = vrcp.f32 %v1369_v39 }
 0x2e2   :  { %v3804_v4 = vpop.eup %3803  ;;  %v3492_v9 = vpop.f32.mrf.mxu0  ;;  %3821 = vtanh.f32 %v1310_v42 }
 0x2e3   :  { %v1320_v44 = vadd.f32 %v3492_v9, %v1185_v6  ;;  %v1371_v45 = vadd.f32 1.0, %v3804_v4  ;;  %3823 = vrcp.f32 %v1372_v34 }
 0x2e4   :  { %v3806_v13 = vpop.eup %3805  ;;  %v1314_v46 = vpop.f32.mrf.mxu0  ;;  %3825 = vtanh.f32 %v1305_v5 }
 0x2e5   :  { %v1374_v47 = vadd.f32 1.0, %v3806_v13  ;;  %v3066_v50 = vmul.f32 -1.442695, %v1320_v44  ;;  %v1315_v59 = vadd.f32 %v1314_v46, %v1184_v53  ;;  %v5017_v53 = vld [vmem:[%s5425_s3 + $0x20] sm:$0xff] }
 0x2e6   :  { %v3808_v48 = vpop.eup %3807  ;;  %v3495_v55 = vpop.f32.mrf.mxu0 }
 0x2e7   :  { %3827 = vrcp.f32 %v1374_v47  ;;  %v1373_v58 = vadd.f32 1.0, %v3808_v48  ;;  %v1330_v60 = vadd.f32 %v3495_v55, %v1187_v54  ;;  %v3065_v35 = vmul.f32 -1.442695, %v1315_v59  ;;  %v4996_v47 = vld [vmem:[%s5425_s3 + $0x8] sm:$0xff]  ;;  %v5003_v48 = vld [vmem:[%s5425_s3 + $0x10] sm:$0xff]  ;;  %v5045_v59 = vld [vmem:[%s5425_s3 + $0x40] sm:$0xff] }
 0x2e8   :  { %v3810_v14 = vpop.eup %3809  ;;  %3829 = vrcp.f32 %v1371_v45  ;;  %v1324_v63 = vpop.f32.mrf.mxu0  ;;  %v5024_v54 = vld [vmem:[%s5425_s3 + $0x28] sm:$0xff]  ;;  %v5031_v55 = vld [vmem:[%s5425_s3 + $0x30] sm:$0xff] }
 0x2e9   :  { %3831 = vrcp.f32 %v1373_v58  ;;  %v1376_v0 = vadd.f32 1.0, %v3810_v14  ;;  %v3068_v17 = vmul.f32 -1.442695, %v1330_v60  ;;  %v1325_v61 = vadd.f32 %v1324_v63, %v1186_v16  ;;  %v5038_v58 = vld [vmem:[%s5425_s3 + $0x38] sm:$0xff]  ;;  %v5052_v60 = vld [vmem:[%s5425_s3 + $0x48] sm:$0xff]  ;;  %v5059_v14 = vld [vmem:[%s5425_s3 + $0x50] sm:$0xff] }
 0x2ea   :  { %v3812_v19 = vpop.eup %3811  ;;  %3833 = vpow2.f32 %v3066_v50  ;;  %v5010_v50 = vld [vmem:[%s5425_s3 + $0x18] sm:$0xff]  ;;  %v5073_v16 = vld [vmem:[%s5425_s3 + $0x60] sm:$0xff] }
 0x2eb   :  { %3835 = vrcp.f32 %v1376_v0  ;;  %v1375_v2 = vadd.f32 1.0, %v3812_v19  ;;  %v3067_v21 = vmul.f32 -1.442695, %v1325_v61  ;;  %v3814_v51 = vpop.eup %3813  ;;  %v5066_v63 = vld [vmem:[%s5425_s3 + $0x58] sm:$0xff]  ;;  %v5080_v0 = vld [vmem:[%s5425_s3 + $0x68] sm:$0xff] }
 0x2ec   :  { %3837 = vpow2.f32 %v3068_v17  ;;  %v3816_v15 = vpop.eup %3815  ;;  %v5087_v17 = vld [vmem:[%s5425_s3 + $0x70] sm:$0xff]  ;;  %v5094_v61 = vld [vmem:[%s5425_s3 + $0x78] sm:$0xff]  ;;  %v1430_v19 = vld [vmem:[#allocation2 + $0x108] sm:$0xff] }
 0x2ed   :  { %3839 = vrcp.f32 %v1375_v2  ;;  %v3818_v56 = vpop.eup %3817  ;;  %v1414_v23 = vmul.f32 %v3816_v15, %v3814_v51  ;;  %v1429_v51 = vld [vmem:[#allocation2 + $0x100] sm:$0xff] }
 0x2ee   :  { %3841 = vpow2.f32 %v3067_v21  ;;  %v3820_v52 = vpop.eup %3819 }
 0x2ef   :  { %3843 = vpow2.f32 %v3065_v35  ;;  %v3822_v7 = vpop.eup %3821  ;;  %v1413_v31 = vmul.f32 %v3820_v52, %v3818_v56  ;;  %v1432_v52 = vld [vmem:[#allocation2 + $0x118] sm:$0xff] }
 0x2f0   :  { %v3824_v57 = vpop.eup %3823 }
 0x2f1   :  { %v3826_v37 = vpop.eup %3825  ;;  %v1416_v29 = vmul.f32 %v3824_v57, %v3822_v7 }
 0x2f4   :  { %v3828_v20 = vpop.eup %3827 }
 0x2f5   :  { %v3830_v22 = vpop.eup %3829  ;;  %v1410_v12 = vmul.f32 %v3828_v20, %v4903_v10 }
 0x2f6   :  { %v3832_v24 = vpop.eup %3831  ;;  %v1415_v38 = vmul.f32 %v3830_v22, %v3826_v37  ;;  %v1431_v22 = vld [vmem:[#allocation2 + $0x110] sm:$0xff] }
 0x2f7   :  { %v3834_v25 = vpop.eup %3833  ;;  %v4978_v62 = vadd.f32 %v1414_v23, %v1410_v12  ;;  %v1409_v3 = vmul.f32 %v3832_v24, %v4911_v8  ;;  %v1434_v24 = vld [vmem:[#allocation2 + $0x128] sm:$0xff] }
 0x2f8   :  { %v3836_v26 = vpop.eup %3835  ;;  %v1378_v40 = vadd.f32 1.0, %v3834_v25 }
 0x2f9   :  { %v3838_v27 = vpop.eup %3837  ;;  %v1412_v28 = vmul.f32 %v3836_v26, %v4908_v18  ;;  %3845 = vtanh.f32 %v4978_v62  ;;  %v4986_v42 = vadd.f32 %v1413_v31, %v1409_v3  ;;  %v1436_v31 = vld [vmem:[#allocation2 + $0x138] sm:$0xff] }
 0x2fa   :  { %v3840_v30 = vpop.eup %3839  ;;  %v1380_v32 = vadd.f32 1.0, %v3838_v27 }
 0x2fb   :  { %v3842_v33 = vpop.eup %3841  ;;  %v4982_v36 = vadd.f32 %v1416_v29, %v1412_v28  ;;  %v1411_v10 = vmul.f32 %v3840_v30, %v4913_v11  ;;  %v1433_v28 = vld [vmem:[#allocation2 + $0x120] sm:$0xff] }
 0x2fc   :  { %v3844_v39 = vpop.eup %3843  ;;  %3847 = vrcp.f32 %v1380_v32  ;;  %v1379_v41 = vadd.f32 1.0, %v3842_v33 }
 0x2fd   :  { %v4988_v8 = vadd.f32 %v1415_v38, %v1411_v10  ;;  %3849 = vtanh.f32 %v4982_v36  ;;  %v1377_v18 = vadd.f32 1.0, %v3844_v39  ;;  %v1435_v39 = vld [vmem:[#allocation2 + $0x130] sm:$0xff] }
 0x2fe   :  { %3851 = vrcp.f32 %v1379_v41 }
 0x2ff   :  { %3853 = vtanh.f32 %v4988_v8 }
 0x300   :  { %3855 = vrcp.f32 %v1378_v40 }
 0x301   :  { %3857 = vtanh.f32 %v4986_v42 }
 0x302   :  { %3859 = vrcp.f32 %v1377_v18 }
 0x306   :  { %v3846_v11 = vpop.eup %3845 }
 0x309   :  { %v3848_v43 = vpop.eup %3847 }
 0x30a   :  { %v3850_v34 = vpop.eup %3849 }
 0x30b   :  { %v3852_v1 = vpop.eup %3851  ;;  %v1428_v4 = vmul.f32 %v3850_v34, %v3848_v43  ;;  %v1438_v43 = vld [vmem:[#allocation2 + $0x148] sm:$0xff] }
 0x30c   :  { %v3854_v5 = vpop.eup %3853 }
 0x30d   :  { %v3856_v6 = vpop.eup %3855  ;;  %3496 = vmatprep.subr.mxu1 %v1428_v4  ;;  %v1427_v9 = vmul.f32 %v3854_v5, %v3852_v1 }
 0x30e   :  { %v3858_v44 = vpop.eup %3857  ;;  %3497 = vmatpush3.msra.mxu1 %v1428_v4  ;;  %v1426_v13 = vmul.f32 %v3856_v6, %v3846_v11  ;;  %v1437_v6 = vld [vmem:[#allocation2 + $0x140] sm:$0xff] }
 0x30f   :  { %3498 = vmatprep.subr.mxu1 %v1427_v9  ;;  %v3860_v45 = vpop.eup %3859 }
 0x310   :  { %3499 = vmatpush3.msra.mxu1 %v1427_v9  ;;  %v1425_v46 = vmul.f32 %v3860_v45, %v3858_v44 }
 0x311   :  { %3500 = vmatprep.subr.mxu1 %v1426_v13 }
 0x312   :  { %3501 = vmatpush3.msra.mxu1 %v1426_v13 }
 0x313   :  { %3502 = vmatprep.subr.mxu1 %v1425_v46 }
 0x314   :  { %3503 = vmatpush3.msra.mxu1 %v1425_v46  ;;  %v1440_v46 = vld [vmem:[#allocation2 + $0x158] sm:$0xff] }
 0x315   :  { %3505 = vmatmul.mubr.msk.f32.vlgmr.msra.gmra.mxu1 %vm882_vm1, %v4996_v47 }
 0x316   :  { %3507 = vmatprep.mubr.msk.f32.mxu1 %vm882_vm1, %v5003_v48 }
 0x319   :  { %3508 = vmatmul.mubr.msk.f32.gmra.mxu1 %vm882_vm1, %v5010_v50 }
 0x31a   :  { %3510 = vmatprep.mubr.msk.f32.mxu1 %vm882_vm1, %v5017_v53 }
 0x31d   :  { %3511 = vmatmul.mubr.msk.f32.gmra.mxu1 %vm882_vm1, %v5024_v54 }
 0x31e   :  { %3513 = vmatprep.mubr.msk.f32.mxu1 %vm882_vm1, %v5031_v55 }
 0x321   :  { %3514 = vmatmul.mubr.msk.f32.gmra.mxu1 %vm882_vm1, %v5038_v58 }
 0x322   :  { %3516 = vmatprep.mubr.msk.f32.mxu1 %vm882_vm1, %v5045_v59 }
 0x325   :  { %3517 = vmatmul.mubr.msk.f32.gmra.mxu1 %vm882_vm1, %v5052_v60 }
 0x326   :  { %3519 = vmatprep.mubr.msk.f32.mxu1 %vm882_vm1, %v5059_v14 }
 0x329   :  { %3520 = vmatmul.mubr.msk.f32.gmra.mxu1 %vm882_vm1, %v5066_v63 }
 0x32a   :  { %3522 = vmatprep.mubr.msk.f32.mxu1 %vm882_vm1, %v5073_v16 }
 0x32d   :  { %3523 = vmatmul.mubr.msk.f32.gmra.mxu1 %vm882_vm1, %v5080_v0 }
 0x32e   :  { %3525 = vmatprep.mubr.msk.f32.mxu1 %vm882_vm1, %v5087_v17 }
 0x331   :  { %3526 = vmatmul.mubr.msk.f32.gmra.mxu1 %vm882_vm1, %v5094_v61 }
 0x332   :  { %3568 = vmatprep.mubr.msk.f32.mxu1 %vm882_vm1, %v4973_v49 }
 0x3d5   :  { %v3506_v2 = vpop.f32.mrf.mxu1 }
 0x3d6   :  { %v1517_v35 = vadd.f32 %v3506_v2, %v1430_v19 }
 0x3d7   :  { %v1511_v21 = vpop.f32.mrf.mxu1 }
 0x3d8   :  { %v3086_v15 = vmul.f32 -1.442695, %v1517_v35  ;;  %v1512_v56 = vadd.f32 %v1511_v21, %v1429_v51  ;;  %v1439_v51 = vld [vmem:[#allocation2 + $0x150] sm:$0xff] }
 0x3d9   :  { %v3509_v7 = vpop.f32.mrf.mxu1 }
 0x3da   :  { %3861 = vpow2.f32 %v3086_v15  ;;  %v3085_v57 = vmul.f32 -1.442695, %v1512_v56  ;;  %v1527_v37 = vadd.f32 %v3509_v7, %v1432_v52  ;;  %v1442_v52 = vld [vmem:[#allocation2 + $0x168] sm:$0xff] }
 0x3db   :  { %v1521_v20 = vpop.f32.mrf.mxu1 }
 0x3dc   :  { %3863 = vpow2.f32 %v3085_v57  ;;  %v3088_v12 = vmul.f32 -1.442695, %v1527_v37  ;;  %v1522_v23 = vadd.f32 %v1521_v20, %v1431_v22 }
 0x3dd   :  { %v3512_v25 = vpop.f32.mrf.mxu1 }
 0x3de   :  { %3865 = vpow2.f32 %v3088_v12  ;;  %v3087_v26 = vmul.f32 -1.442695, %v1522_v23  ;;  %v1537_v27 = vadd.f32 %v3512_v25, %v1434_v24  ;;  %v1441_v25 = vld [vmem:[#allocation2 + $0x160] sm:$0xff] }
 0x3df   :  { %v1531_v3 = vpop.f32.mrf.mxu1 }
 0x3e0   :  { %3867 = vpow2.f32 %v3087_v26  ;;  %v3090_v29 = vmul.f32 -1.442695, %v1537_v27  ;;  %v1532_v30 = vadd.f32 %v1531_v3, %v1433_v28  ;;  %v1444_v26 = vld [vmem:[#allocation2 + $0x178] sm:$0xff] }
 0x3e1   :  { %v3515_v32 = vpop.f32.mrf.mxu1 }
 0x3e2   :  { %3869 = vpow2.f32 %v3090_v29  ;;  %v3089_v33 = vmul.f32 -1.442695, %v1532_v30  ;;  %v1547_v10 = vadd.f32 %v3515_v32, %v1436_v31  ;;  %v1443_v32 = vld [vmem:[#allocation2 + $0x170] sm:$0xff] }
 0x3e3   :  { %v1541_v38 = vpop.f32.mrf.mxu1 }
 0x3e4   :  { %3871 = vpow2.f32 %v3089_v33  ;;  %v3092_v40 = vmul.f32 -1.442695, %v1547_v10  ;;  %v1542_v41 = vadd.f32 %v1541_v38, %v1435_v39 }
 0x3e5   :  { %v3518_v18 = vpop.f32.mrf.mxu1 }
 0x3e6   :  { %3873 = vpow2.f32 %v3092_v40  ;;  %v3091_v11 = vmul.f32 -1.442695, %v1542_v41  ;;  %v1557_v1 = vadd.f32 %v3518_v18, %v1438_v43 }
 0x3e7   :  { %v3862_v34 = vpop.eup %3861  ;;  %v1551_v4 = vpop.f32.mrf.mxu1 }
 0x3e8   :  { %v1627_v5 = vadd.f32 1.0, %v3862_v34  ;;  %3875 = vpow2.f32 %v3091_v11  ;;  %v1552_v44 = vadd.f32 %v1551_v4, %v1437_v6 }
 0x3e9   :  { %v3864_v9 = vpop.eup %3863  ;;  %v3521_v13 = vpop.f32.mrf.mxu1  ;;  %3877 = vtanh.f32 %v1557_v1 }
 0x3ea   :  { %v1626_v45 = vadd.f32 1.0, %v3864_v9  ;;  %v1567_v2 = vadd.f32 %v3521_v13, %v1440_v46  ;;  %3879 = vrcp.f32 %v1627_v5 }
 0x3eb   :  { %v3866_v19 = vpop.eup %3865  ;;  %v1561_v35 = vpop.f32.mrf.mxu1  ;;  %3881 = vtanh.f32 %v1552_v44 }
 0x3ec   :  { %v1629_v21 = vadd.f32 1.0, %v3866_v19  ;;  %v1562_v56 = vadd.f32 %v1561_v35, %v1439_v51  ;;  %3883 = vrcp.f32 %v1626_v45 }
 0x3ed   :  { %v3868_v15 = vpop.eup %3867  ;;  %v3524_v7 = vpop.f32.mrf.mxu1  ;;  %3885 = vtanh.f32 %v1567_v2 }
 0x3ee   :  { %v1577_v57 = vadd.f32 %v3524_v7, %v1442_v52  ;;  %v1628_v20 = vadd.f32 1.0, %v3868_v15  ;;  %3887 = vrcp.f32 %v1629_v21 }
 0x3ef   :  { %v3870_v37 = vpop.eup %3869  ;;  %v1571_v22 = vpop.f32.mrf.mxu1  ;;  %3889 = vtanh.f32 %v1562_v56 }
 0x3f0   :  { %v1631_v12 = vadd.f32 1.0, %v3870_v37  ;;  %v3094_v24 = vmul.f32 -1.442695, %v1577_v57  ;;  %v1572_v28 = vadd.f32 %v1571_v22, %v1441_v25 }
 0x3f1   :  { %v3872_v23 = vpop.eup %3871  ;;  %v3527_v27 = vpop.f32.mrf.mxu1 }
 0x3f2   :  { %3891 = vrcp.f32 %v1631_v12  ;;  %v1630_v3 = vadd.f32 1.0, %v3872_v23  ;;  %v1587_v29 = vadd.f32 %v3527_v27, %v1444_v26  ;;  %v3093_v41 = vmul.f32 -1.442695, %v1572_v28 }
 0x3f3   :  { %v3874_v30 = vpop.eup %3873  ;;  %3893 = vrcp.f32 %v1628_v20  ;;  %v1581_v31 = vpop.f32.mrf.mxu1 }
 0x3f4   :  { %3895 = vrcp.f32 %v1630_v3  ;;  %v1633_v33 = vadd.f32 1.0, %v3874_v30  ;;  %v3096_v10 = vmul.f32 -1.442695, %v1587_v29  ;;  %v1582_v38 = vadd.f32 %v1581_v31, %v1443_v32 }
 0x3f5   :  { %v3876_v39 = vpop.eup %3875  ;;  %3897 = vpow2.f32 %v3094_v24 }
 0x3f6   :  { %3899 = vrcp.f32 %v1633_v33  ;;  %v1632_v40 = vadd.f32 1.0, %v3876_v39  ;;  %v3095_v18 = vmul.f32 -1.442695, %v1582_v38  ;;  %v3878_v11 = vpop.eup %3877  ;;  %v1687_v39 = vld [vmem:[#allocation2 + $0x188] sm:$0xff] }
 0x3f7   :  { %3901 = vpow2.f32 %v3096_v10  ;;  %v3880_v43 = vpop.eup %3879 }
 0x3f8   :  { %3903 = vrcp.f32 %v1632_v40  ;;  %v3882_v34 = vpop.eup %3881  ;;  %v1671_v45 = vmul.f32 %v3880_v43, %v3878_v11  ;;  %v1686_v11 = vld [vmem:[#allocation2 + $0x180] sm:$0xff] }
 0x3f9   :  { %3905 = vpow2.f32 %v3095_v18  ;;  %v3884_v1 = vpop.eup %3883 }
 0x3fa   :  { %3907 = vpow2.f32 %v3093_v41  ;;  %v3886_v4 = vpop.eup %3885  ;;  %v1670_v7 = vmul.f32 %v3884_v1, %v3882_v34  ;;  %v1689_v1 = vld [vmem:[#allocation2 + $0x198] sm:$0xff] }
 0x3fb   :  { %v3888_v5 = vpop.eup %3887 }
 0x3fc   :  { %v3890_v6 = vpop.eup %3889  ;;  %v1673_v56 = vmul.f32 %v3888_v5, %v3886_v4 }
 0x3ff   :  { %v3892_v9 = vpop.eup %3891 }
 0x400   :  { %v3894_v44 = vpop.eup %3893  ;;  %v1667_v13 = vmul.f32 %v3892_v9, %v4978_v62 }
 0x401   :  { %v3896_v46 = vpop.eup %3895  ;;  %v1672_v22 = vmul.f32 %v3894_v44, %v3890_v6  ;;  %v1688_v44 = vld [vmem:[#allocation2 + $0x190] sm:$0xff] }
 0x402   :  { %v3898_v19 = vpop.eup %3897  ;;  %v5101_v2 = vadd.f32 %v1671_v45, %v1667_v13  ;;  %v1666_v51 = vmul.f32 %v3896_v46, %v4986_v42  ;;  %v1691_v46 = vld [vmem:[#allocation2 + $0x1a8] sm:$0xff] }
 0x403   :  { %v3900_v35 = vpop.eup %3899  ;;  %v1635_v23 = vadd.f32 1.0, %v3898_v19 }
 0x404   :  { %v3902_v21 = vpop.eup %3901  ;;  %v1669_v15 = vmul.f32 %v3900_v35, %v4982_v36  ;;  %3909 = vtanh.f32 %v5101_v2  ;;  %v5109_v25 = vadd.f32 %v1670_v7, %v1666_v51  ;;  %v1690_v51 = vld [vmem:[#allocation2 + $0x1a0] sm:$0xff] }
 0x405   :  { %v3904_v52 = vpop.eup %3903  ;;  %v1637_v57 = vadd.f32 1.0, %v3902_v21 }
 0x406   :  { %v3906_v37 = vpop.eup %3905  ;;  %v5105_v20 = vadd.f32 %v1673_v56, %v1669_v15  ;;  %v1668_v62 = vmul.f32 %v3904_v52, %v4988_v8  ;;  %v1693_v52 = vld [vmem:[#allocation2 + $0x1b8] sm:$0xff] }
 0x407   :  { %v3908_v12 = vpop.eup %3907  ;;  %3911 = vrcp.f32 %v1637_v57  ;;  %v1636_v24 = vadd.f32 1.0, %v3906_v37 }
 0x408   :  { %v5111_v42 = vadd.f32 %v1672_v22, %v1668_v62  ;;  %3913 = vtanh.f32 %v5105_v20  ;;  %v1634_v36 = vadd.f32 1.0, %v3908_v12  ;;  %v1692_v22 = vld [vmem:[#allocation2 + $0x1b0] sm:$0xff] }
 0x409   :  { %3915 = vrcp.f32 %v1636_v24 }
 0x40a   :  { %3917 = vtanh.f32 %v5111_v42 }
 0x40b   :  { %3919 = vrcp.f32 %v1635_v23 }
 0x40c   :  { %3921 = vtanh.f32 %v5109_v25 }
 0x40d   :  { %3923 = vrcp.f32 %v1634_v36 }
 0x411   :  { %v3910_v8 = vpop.eup %3909 }
 0x414   :  { %v3912_v26 = vpop.eup %3911 }
 0x415   :  { %v3914_v27 = vpop.eup %3913 }
 0x416   :  { %v3916_v3 = vpop.eup %3915  ;;  %v1685_v28 = vmul.f32 %v3914_v27, %v3912_v26 }
 0x417   :  { %v3918_v29 = vpop.eup %3917 }
 0x418   :  { %v3920_v30 = vpop.eup %3919  ;;  %3528 = vmatprep.subr.mxu0 %v1685_v28  ;;  %v1684_v31 = vmul.f32 %v3918_v29, %v3916_v3  ;;  %v1694_v29 = vld [vmem:[#allocation2 + $0x1c0] sm:$0xff] }
 0x419   :  { %v3922_v32 = vpop.eup %3921  ;;  %3529 = vmatpush3.msra.mxu0 %v1685_v28  ;;  %v1683_v33 = vmul.f32 %v3920_v30, %v3910_v8  ;;  %v1695_v8 = vld [vmem:[#allocation2 + $0x1c8] sm:$0xff] }
 0x41a   :  { %3530 = vmatprep.subr.mxu0 %v1684_v31  ;;  %v3924_v10 = vpop.eup %3923 }
 0x41b   :  { %3531 = vmatpush3.msra.mxu0 %v1684_v31  ;;  %v1682_v38 = vmul.f32 %v3924_v10, %v3922_v32  ;;  %v1697_v10 = vld [vmem:[#allocation2 + $0x1d8] sm:$0xff] }
 0x41c   :  { %3532 = vmatprep.subr.mxu0 %v1683_v33 }
 0x41d   :  { %3533 = vmatpush3.msra.mxu0 %v1683_v33 }
 0x41e   :  { %3534 = vmatprep.subr.mxu0 %v1682_v38 }
 0x41f   :  { %3535 = vmatpush3.msra.mxu0 %v1682_v38 }
 0x420   :  { %3537 = vmatmul.mubr.msk.f32.vlgmr.msra.gmra.mxu0 %vm882_vm1, %v4996_v47 }
 0x421   :  { %3539 = vmatprep.mubr.msk.f32.mxu0 %vm882_vm1, %v5003_v48 }
 0x424   :  { %3540 = vmatmul.mubr.msk.f32.gmra.mxu0 %vm882_vm1, %v5010_v50 }
 0x425   :  { %3542 = vmatprep.mubr.msk.f32.mxu0 %vm882_vm1, %v5017_v53 }
 0x428   :  { %3543 = vmatmul.mubr.msk.f32.gmra.mxu0 %vm882_vm1, %v5024_v54 }
 0x429   :  { %3545 = vmatprep.mubr.msk.f32.mxu0 %vm882_vm1, %v5031_v55 }
 0x42c   :  { %3546 = vmatmul.mubr.msk.f32.gmra.mxu0 %vm882_vm1, %v5038_v58 }
 0x42d   :  { %3548 = vmatprep.mubr.msk.f32.mxu0 %vm882_vm1, %v5045_v59 }
 0x430   :  { %3549 = vmatmul.mubr.msk.f32.gmra.mxu0 %vm882_vm1, %v5052_v60 }
 0x431   :  { %3551 = vmatprep.mubr.msk.f32.mxu0 %vm882_vm1, %v5059_v14 }
 0x434   :  { %3552 = vmatmul.mubr.msk.f32.gmra.mxu0 %vm882_vm1, %v5066_v63 }
 0x435   :  { %3554 = vmatprep.mubr.msk.f32.mxu0 %vm882_vm1, %v5073_v16 }
 0x438   :  { %3555 = vmatmul.mubr.msk.f32.gmra.mxu0 %vm882_vm1, %v5080_v0 }
 0x439   :  { %3557 = vmatprep.mubr.msk.f32.mxu0 %vm882_vm1, %v5087_v17 }
 0x43c   :  { %3558 = vmatmul.mubr.msk.f32.gmra.mxu0 %vm882_vm1, %v5094_v61 }
 0x43d   :  { %3600 = vmatprep.mubr.msk.f32.mxu0 %vm882_vm1, %v4973_v49 }
 0x4e0   :  { %v3538_v40 = vpop.f32.mrf.mxu0 }
 0x4e1   :  { %v1774_v41 = vadd.f32 %v3538_v40, %v1687_v39 }
 0x4e2   :  { %v1768_v18 = vpop.f32.mrf.mxu0 }
 0x4e3   :  { %v3114_v43 = vmul.f32 -1.442695, %v1774_v41  ;;  %v1769_v34 = vadd.f32 %v1768_v18, %v1686_v11  ;;  %v1696_v18 = vld [vmem:[#allocation2 + $0x1d0] sm:$0xff] }
 0x4e4   :  { %v3541_v4 = vpop.f32.mrf.mxu0 }
 0x4e5   :  { %3925 = vpow2.f32 %v3114_v43  ;;  %v3113_v5 = vmul.f32 -1.442695, %v1769_v34  ;;  %v1784_v6 = vadd.f32 %v3541_v4, %v1689_v1  ;;  %v1699_v34 = vld [vmem:[#allocation2 + $0x1e8] sm:$0xff] }
 0x4e6   :  { %v1778_v9 = vpop.f32.mrf.mxu0 }
 0x4e7   :  { %3927 = vpow2.f32 %v3113_v5  ;;  %v3116_v13 = vmul.f32 -1.442695, %v1784_v6  ;;  %v1779_v45 = vadd.f32 %v1778_v9, %v1688_v44 }
 0x4e8   :  { %v3544_v19 = vpop.f32.mrf.mxu0 }
 0x4e9   :  { %3929 = vpow2.f32 %v3116_v13  ;;  %v3115_v49 = vmul.f32 -1.442695, %v1779_v45  ;;  %v1794_v35 = vadd.f32 %v3544_v19, %v1691_v46  ;;  %v1698_v46 = vld [vmem:[#allocation2 + $0x1e0] sm:$0xff]  ;;  %v1701_v19 = vld [vmem:[#allocation2 + $0x1f8] sm:$0xff] }
 0x4ea   :  { %v1788_v21 = vpop.f32.mrf.mxu0 }
 0x4eb   :  { %3931 = vpow2.f32 %v3115_v49  ;;  %v3118_v15 = vmul.f32 -1.442695, %v1794_v35  ;;  %v1789_v56 = vadd.f32 %v1788_v21, %v1690_v51 }
 0x4ec   :  { %v3547_v7 = vpop.f32.mrf.mxu0 }
 0x4ed   :  { %3933 = vpow2.f32 %v3118_v15  ;;  %v3117_v57 = vmul.f32 -1.442695, %v1789_v56  ;;  %v1804_v37 = vadd.f32 %v3547_v7, %v1693_v52  ;;  %v1700_v52 = vld [vmem:[#allocation2 + $0x1f0] sm:$0xff] }
 0x4ee   :  { %v1798_v62 = vpop.f32.mrf.mxu0 }
 0x4ef   :  { %3935 = vpow2.f32 %v3117_v57  ;;  %v3120_v12 = vmul.f32 -1.442695, %v1804_v37  ;;  %v1799_v23 = vadd.f32 %v1798_v62, %v1692_v22 }
 0x4f0   :  { %v3550_v24 = vpop.f32.mrf.mxu0 }
 0x4f1   :  { %3937 = vpow2.f32 %v3120_v12  ;;  %v3119_v36 = vmul.f32 -1.442695, %v1799_v23  ;;  %v1814_v27 = vadd.f32 %v3550_v24, %v1695_v8 }
 0x4f2   :  { %v3926_v26 = vpop.eup %3925  ;;  %v1808_v3 = vpop.f32.mrf.mxu0 }
 0x4f3   :  { %v1884_v28 = vadd.f32 1.0, %v3926_v26  ;;  %3939 = vpow2.f32 %v3119_v36  ;;  %v1809_v31 = vadd.f32 %v1808_v3, %v1694_v29 }
 0x4f4   :  { %v3928_v30 = vpop.eup %3927  ;;  %v3553_v32 = vpop.f32.mrf.mxu0  ;;  %3941 = vtanh.f32 %v1814_v27 }
 0x4f5   :  { %v1883_v33 = vadd.f32 1.0, %v3928_v30  ;;  %v1824_v39 = vadd.f32 %v3553_v32, %v1697_v10  ;;  %3943 = vrcp.f32 %v1884_v28 }
 0x4f6   :  { %v3930_v38 = vpop.eup %3929  ;;  %v1818_v40 = vpop.f32.mrf.mxu0  ;;  %3945 = vtanh.f32 %v1809_v31 }
 0x4f7   :  { %v1886_v41 = vadd.f32 1.0, %v3930_v38  ;;  %v1819_v43 = vadd.f32 %v1818_v40, %v1696_v18  ;;  %3947 = vrcp.f32 %v1883_v33 }
 0x4f8   :  { %v3932_v11 = vpop.eup %3931  ;;  %v3556_v1 = vpop.f32.mrf.mxu0  ;;  %3949 = vtanh.f32 %v1824_v39 }
 0x4f9   :  { %v1834_v4 = vadd.f32 %v3556_v1, %v1699_v34  ;;  %v1885_v6 = vadd.f32 1.0, %v3932_v11  ;;  %3951 = vrcp.f32 %v1886_v41 }
 0x4fa   :  { %v3934_v5 = vpop.eup %3933  ;;  %v1828_v9 = vpop.f32.mrf.mxu0  ;;  %3953 = vtanh.f32 %v1819_v43 }
 0x4fb   :  { %v1888_v44 = vadd.f32 1.0, %v3934_v5  ;;  %v3122_v45 = vmul.f32 -1.442695, %v1834_v4  ;;  %v1829_v21 = vadd.f32 %v1828_v9, %v1698_v46 }
 0x4fc   :  { %v3936_v13 = vpop.eup %3935  ;;  %v3559_v49 = vpop.f32.mrf.mxu0 }
 0x4fd   :  { %3955 = vrcp.f32 %v1888_v44  ;;  %v1887_v35 = vadd.f32 1.0, %v3936_v13  ;;  %v1844_v51 = vadd.f32 %v3559_v49, %v1701_v19  ;;  %v3121_v12 = vmul.f32 -1.442695, %v1829_v21 }
 0x4fe   :  { %v3938_v15 = vpop.eup %3937  ;;  %3957 = vrcp.f32 %v1885_v6  ;;  %v1838_v56 = vpop.f32.mrf.mxu0 }
 0x4ff   :  { %3959 = vrcp.f32 %v1887_v35  ;;  %v1890_v7 = vadd.f32 1.0, %v3938_v15  ;;  %v3124_v57 = vmul.f32 -1.442695, %v1844_v51  ;;  %v1839_v37 = vadd.f32 %v1838_v56, %v1700_v52 }
 0x500   :  { %v3940_v62 = vpop.eup %3939  ;;  %3961 = vpow2.f32 %v3122_v45 }
 0x501   :  { %3963 = vrcp.f32 %v1890_v7  ;;  %v1889_v22 = vadd.f32 1.0, %v3940_v62  ;;  %v3123_v23 = vmul.f32 -1.442695, %v1839_v37  ;;  %v3942_v24 = vpop.eup %3941  ;;  %v1948_v62 = vld [vmem:[#allocation2 + $0x228] sm:$0xff] }
 0x502   :  { %3965 = vpow2.f32 %v3124_v57  ;;  %v3944_v36 = vpop.eup %3943 }
 0x503   :  { %3967 = vrcp.f32 %v1889_v22  ;;  %v3946_v8 = vpop.eup %3945  ;;  %v1928_v32 = vmul.f32 %v3944_v36, %v3942_v24  ;;  %v1947_v36 = vld [vmem:[#allocation2 + $0x220] sm:$0xff] }
 0x504   :  { %3969 = vpow2.f32 %v3123_v23  ;;  %v3948_v26 = vpop.eup %3947 }
 0x505   :  { %3971 = vpow2.f32 %v3121_v12  ;;  %v3950_v27 = vpop.eup %3949  ;;  %v1927_v34 = vmul.f32 %v3948_v26, %v3946_v8 }
 0x506   :  { %v3952_v3 = vpop.eup %3951 }
 0x507   :  { %v3954_v28 = vpop.eup %3953  ;;  %v1930_v11 = vmul.f32 %v3952_v3, %v3950_v27  ;;  %v1950_v27 = vld [vmem:[#allocation2 + $0x238] sm:$0xff] }
 0x50a   :  { %v3956_v29 = vpop.eup %3955 }
 0x50b   :  { %v3958_v30 = vpop.eup %3957  ;;  %v1924_v31 = vmul.f32 %v3956_v29, %v5101_v2 }
 0x50c   :  { %v3960_v33 = vpop.eup %3959  ;;  %v1929_v6 = vmul.f32 %v3958_v30, %v3954_v28 }
 0x50d   :  { %v3962_v10 = vpop.eup %3961  ;;  %v5149_v38 = vadd.f32 %v1928_v32, %v1924_v31  ;;  %v1923_v41 = vmul.f32 %v3960_v33, %v5109_v25  ;;  %v1949_v31 = vld [vmem:[#allocation2 + $0x230] sm:$0xff] }
 0x50e   :  { %v3964_v39 = vpop.eup %3963  ;;  %v1892_v44 = vadd.f32 1.0, %v3962_v10 }
 0x50f   :  { %v3966_v40 = vpop.eup %3965  ;;  %v1926_v18 = vmul.f32 %v3964_v39, %v5105_v20  ;;  %3973 = vtanh.f32 %v5149_v38  ;;  %v5157_v45 = vadd.f32 %v1927_v34, %v1923_v41  ;;  %v1951_v34 = vld [vmem:[#allocation2 + $0x240] sm:$0xff] }
 0x510   :  { %v3968_v43 = vpop.eup %3967  ;;  %v1894_v1 = vadd.f32 1.0, %v3966_v40  ;;  %v1952_v40 = vld [vmem:[#allocation2 + $0x248] sm:$0xff] }
 0x511   :  { %v3970_v4 = vpop.eup %3969  ;;  %v5153_v5 = vadd.f32 %v1930_v11, %v1926_v18  ;;  %v1925_v2 = vmul.f32 %v3968_v43, %v5111_v42 }
 0x512   :  { %v3972_v9 = vpop.eup %3971  ;;  %3975 = vrcp.f32 %v1894_v1  ;;  %v1893_v13 = vadd.f32 1.0, %v3970_v4 }
 0x513   :  { %v5159_v25 = vadd.f32 %v1929_v6, %v1925_v2  ;;  %3977 = vtanh.f32 %v5153_v5  ;;  %v1891_v20 = vadd.f32 1.0, %v3972_v9  ;;  %v1954_v9 = vld [vmem:[#allocation2 + $0x258] sm:$0xff] }
 0x514   :  { %3979 = vrcp.f32 %v1893_v13 }
 0x515   :  { %3981 = vtanh.f32 %v5159_v25 }
 0x516   :  { %3983 = vrcp.f32 %v1892_v44 }
 0x517   :  { %3985 = vtanh.f32 %v5157_v45 }
 0x518   :  { %3987 = vrcp.f32 %v1891_v20 }
 0x51c   :  { %v3974_v42 = vpop.eup %3973 }
 0x51f   :  { %v3976_v46 = vpop.eup %3975 }
 0x520   :  { %v3978_v19 = vpop.eup %3977 }
 0x521   :  { %v3980_v49 = vpop.eup %3979  ;;  %v1942_v35 = vmul.f32 %v3978_v19, %v3976_v46  ;;  %v1953_v46 = vld [vmem:[#allocation2 + $0x250] sm:$0xff] }
 0x522   :  { %v3982_v21 = vpop.eup %3981 }
 0x523   :  { %v3984_v51 = vpop.eup %3983  ;;  %3560 = vmatprep.subr.mxu1 %v1942_v35  ;;  %v1941_v15 = vmul.f32 %v3982_v21, %v3980_v49 }
 0x524   :  { %v3986_v56 = vpop.eup %3985  ;;  %3561 = vmatpush3.msra.mxu1 %v1942_v35  ;;  %v1940_v52 = vmul.f32 %v3984_v51, %v3974_v42  ;;  %v1956_v35 = vld [vmem:[#allocation2 + $0x268] sm:$0xff] }
 0x525   :  { %3562 = vmatprep.subr.mxu1 %v1941_v15  ;;  %v3988_v7 = vpop.eup %3987 }
 0x526   :  { %3563 = vmatpush3.msra.mxu1 %v1941_v15  ;;  %v1939_v57 = vmul.f32 %v3988_v7, %v3986_v56 }
 0x527   :  { %3564 = vmatprep.subr.mxu1 %v1940_v52 }
 0x528   :  { %3565 = vmatpush3.msra.mxu1 %v1940_v52 }
 0x529   :  { %3566 = vmatprep.subr.mxu1 %v1939_v57 }
 0x52a   :  { %3567 = vmatpush3.msra.mxu1 %v1939_v57 }
 0x52b   :  { %3569 = vmatmul.mubr.msk.f32.vlgmr.msra.gmra.mxu1 %vm882_vm1, %v4996_v47  ;;  %v5197_v47 = vld [vmem:[%s5425_s3] sm:$0xff] }
 0x52c   :  { %3571 = vmatprep.mubr.msk.f32.mxu1 %vm882_vm1, %v5003_v48  ;;  %v1944_v48 = vld [vmem:[#allocation2 + $0x208] sm:$0xff] }
 0x52f   :  { %3572 = vmatmul.mubr.msk.f32.gmra.mxu1 %vm882_vm1, %v5010_v50 }
 0x530   :  { %3574 = vmatprep.mubr.msk.f32.mxu1 %vm882_vm1, %v5017_v53 }
 0x533   :  { %3575 = vmatmul.mubr.msk.f32.gmra.mxu1 %vm882_vm1, %v5024_v54 }
 0x534   :  { %3577 = vmatprep.mubr.msk.f32.mxu1 %vm882_vm1, %v5031_v55  ;;  %v1943_v55 = vld [vmem:[#allocation2 + $0x200] sm:$0xff] }
 0x537   :  { %3578 = vmatmul.mubr.msk.f32.gmra.mxu1 %vm882_vm1, %v5038_v58 }
 0x538   :  { %3580 = vmatprep.mubr.msk.f32.mxu1 %vm882_vm1, %v5045_v59 }
 0x53b   :  { %3581 = vmatmul.mubr.msk.f32.gmra.mxu1 %vm882_vm1, %v5052_v60  ;;  %v1946_v60 = vld [vmem:[#allocation2 + $0x218] sm:$0xff] }
 0x53c   :  { %3583 = vmatprep.mubr.msk.f32.mxu1 %vm882_vm1, %v5059_v14 }
 0x53f   :  { %3584 = vmatmul.mubr.msk.f32.gmra.mxu1 %vm882_vm1, %v5066_v63 }
 0x540   :  { %3586 = vmatprep.mubr.msk.f32.mxu1 %vm882_vm1, %v5073_v16 }
 0x543   :  { %3587 = vmatmul.mubr.msk.f32.gmra.mxu1 %vm882_vm1, %v5080_v0 }
 0x544   :  { %3589 = vmatprep.mubr.msk.f32.mxu1 %vm882_vm1, %v5087_v17  ;;  %v1945_v17 = vld [vmem:[#allocation2 + $0x210] sm:$0xff] }
 0x547   :  { %3590 = vmatmul.mubr.msk.f32.gmra.mxu1 %vm882_vm1, %v5094_v61 }
 0x548   :  { %3632 = vmatprep.mubr.msk.f32.mxu1 %vm882_vm1, %v5197_v47 }
 0x5eb   :  { %v3570_v50 = vpop.f32.mrf.mxu1 }
 0x5ec   :  { %v2031_v53 = vadd.f32 %v3570_v50, %v1944_v48  ;;  %v1955_v50 = vld [vmem:[#allocation2 + $0x260] sm:$0xff] }
 0x5ed   :  { %v2025_v54 = vpop.f32.mrf.mxu1 }
 0x5ee   :  { %v3142_v58 = vmul.f32 -1.442695, %v2031_v53  ;;  %v2026_v59 = vadd.f32 %v2025_v54, %v1943_v55  ;;  %v1958_v53 = vld [vmem:[#allocation2 + $0x278] sm:$0xff] }
 0x5ef   :  { %v3573_v14 = vpop.f32.mrf.mxu1 }
 0x5f0   :  { %3989 = vpow2.f32 %v3142_v58  ;;  %v3141_v63 = vmul.f32 -1.442695, %v2026_v59  ;;  %v2041_v16 = vadd.f32 %v3573_v14, %v1946_v60 }
 0x5f1   :  { %v2035_v0 = vpop.f32.mrf.mxu1 }
 0x5f2   :  { %3991 = vpow2.f32 %v3141_v63  ;;  %v3144_v61 = vmul.f32 -1.442695, %v2041_v16  ;;  %v2036_v37 = vadd.f32 %v2035_v0, %v1945_v17  ;;  %v1957_v63 = vld [vmem:[#allocation2 + $0x270] sm:$0xff] }
 0x5f3   :  { %v3576_v22 = vpop.f32.mrf.mxu1 }
 0x5f4   :  { %3993 = vpow2.f32 %v3144_v61  ;;  %v3143_v12 = vmul.f32 -1.442695, %v2036_v37  ;;  %v2051_v23 = vadd.f32 %v3576_v22, %v1948_v62 }
 0x5f5   :  { %v2045_v24 = vpop.f32.mrf.mxu1 }
 0x5f6   :  { %3995 = vpow2.f32 %v3143_v12  ;;  %v3146_v8 = vmul.f32 -1.442695, %v2051_v23  ;;  %v2046_v26 = vadd.f32 %v2045_v24, %v1947_v36 }
 0x5f7   :  { %v3579_v3 = vpop.f32.mrf.mxu1 }
 0x5f8   :  { %3997 = vpow2.f32 %v3146_v8  ;;  %v3145_v28 = vmul.f32 -1.442695, %v2046_v26  ;;  %v2061_v29 = vadd.f32 %v3579_v3, %v1950_v27 }
 0x5f9   :  { %v2055_v30 = vpop.f32.mrf.mxu1 }
 0x5fa   :  { %3999 = vpow2.f32 %v3145_v28  ;;  %v3148_v32 = vmul.f32 -1.442695, %v2061_v29  ;;  %v2056_v33 = vadd.f32 %v2055_v30, %v1949_v31 }
 0x5fb   :  { %v3582_v10 = vpop.f32.mrf.mxu1 }
 0x5fc   :  { %4001 = vpow2.f32 %v3148_v32  ;;  %v3147_v39 = vmul.f32 -1.442695, %v2056_v33  ;;  %v2071_v18 = vadd.f32 %v3582_v10, %v1952_v40 }
 0x5fd   :  { %v3990_v41 = vpop.eup %3989  ;;  %v2065_v11 = vpop.f32.mrf.mxu1 }
 0x5fe   :  { %v2141_v43 = vadd.f32 1.0, %v3990_v41  ;;  %4003 = vpow2.f32 %v3147_v39  ;;  %v2066_v4 = vadd.f32 %v2065_v11, %v1951_v34 }
 0x5ff   :  { %v3992_v1 = vpop.eup %3991  ;;  %v3585_v2 = vpop.f32.mrf.mxu1  ;;  %4005 = vtanh.f32 %v2071_v18 }
 0x600   :  { %v2140_v6 = vadd.f32 1.0, %v3992_v1  ;;  %v2081_v13 = vadd.f32 %v3585_v2, %v1954_v9  ;;  %4007 = vrcp.f32 %v2141_v43 }
 0x601   :  { %v3994_v44 = vpop.eup %3993  ;;  %v2075_v20 = vpop.f32.mrf.mxu1  ;;  %4009 = vtanh.f32 %v2066_v4 }
 0x602   :  { %v2143_v42 = vadd.f32 1.0, %v3994_v44  ;;  %v2076_v49 = vadd.f32 %v2075_v20, %v1953_v46  ;;  %4011 = vrcp.f32 %v2140_v6 }
 0x603   :  { %v3996_v19 = vpop.eup %3995  ;;  %v3588_v21 = vpop.f32.mrf.mxu1  ;;  %4013 = vtanh.f32 %v2081_v13 }
 0x604   :  { %v2091_v51 = vadd.f32 %v3588_v21, %v1956_v35  ;;  %v2142_v56 = vadd.f32 1.0, %v3996_v19  ;;  %4015 = vrcp.f32 %v2143_v42 }
 0x605   :  { %v3998_v15 = vpop.eup %3997  ;;  %v2085_v52 = vpop.f32.mrf.mxu1  ;;  %4017 = vtanh.f32 %v2076_v49 }
 0x606   :  { %v2145_v7 = vadd.f32 1.0, %v3998_v15  ;;  %v3150_v48 = vmul.f32 -1.442695, %v2091_v51  ;;  %v2086_v58 = vadd.f32 %v2085_v52, %v1955_v50  ;;  %v5241_v50 = vld [vmem:[%s5425_s3 + $0x20] sm:$0xff] }
 0x607   :  { %v4000_v57 = vpop.eup %3999  ;;  %v3591_v54 = vpop.f32.mrf.mxu1 }
 0x608   :  { %4019 = vrcp.f32 %v2145_v7  ;;  %v2144_v55 = vadd.f32 1.0, %v4000_v57  ;;  %v2101_v59 = vadd.f32 %v3591_v54, %v1958_v53  ;;  %v3149_v62 = vmul.f32 -1.442695, %v2086_v58  ;;  %v5220_v7 = vld [vmem:[%s5425_s3 + $0x8] sm:$0xff]  ;;  %v5227_v57 = vld [vmem:[%s5425_s3 + $0x10] sm:$0xff]  ;;  %v5269_v58 = vld [vmem:[%s5425_s3 + $0x40] sm:$0xff] }
 0x609   :  { %v4002_v60 = vpop.eup %4001  ;;  %4021 = vrcp.f32 %v2142_v56  ;;  %v2095_v14 = vpop.f32.mrf.mxu1  ;;  %v5248_v53 = vld [vmem:[%s5425_s3 + $0x28] sm:$0xff]  ;;  %v5255_v54 = vld [vmem:[%s5425_s3 + $0x30] sm:$0xff] }
 0x60a   :  { %4023 = vrcp.f32 %v2144_v55  ;;  %v2147_v16 = vadd.f32 1.0, %v4002_v60  ;;  %v3152_v0 = vmul.f32 -1.442695, %v2101_v59  ;;  %v2096_v17 = vadd.f32 %v2095_v14, %v1957_v63  ;;  %v5262_v55 = vld [vmem:[%s5425_s3 + $0x38] sm:$0xff]  ;;  %v5276_v59 = vld [vmem:[%s5425_s3 + $0x48] sm:$0xff]  ;;  %v5283_v60 = vld [vmem:[%s5425_s3 + $0x50] sm:$0xff] }
 0x60b   :  { %v4004_v61 = vpop.eup %4003  ;;  %4025 = vpow2.f32 %v3150_v48  ;;  %v5234_v48 = vld [vmem:[%s5425_s3 + $0x18] sm:$0xff]  ;;  %v5297_v63 = vld [vmem:[%s5425_s3 + $0x60] sm:$0xff] }
 0x60c   :  { %4027 = vrcp.f32 %v2147_v16  ;;  %v2146_v37 = vadd.f32 1.0, %v4004_v61  ;;  %v3151_v22 = vmul.f32 -1.442695, %v2096_v17  ;;  %v4006_v12 = vpop.eup %4005  ;;  %v5290_v14 = vld [vmem:[%s5425_s3 + $0x58] sm:$0xff]  ;;  %v5304_v16 = vld [vmem:[%s5425_s3 + $0x68] sm:$0xff] }
 0x60d   :  { %4029 = vpow2.f32 %v3152_v0  ;;  %v4008_v23 = vpop.eup %4007  ;;  %v5311_v0 = vld [vmem:[%s5425_s3 + $0x70] sm:$0xff]  ;;  %v5318_v17 = vld [vmem:[%s5425_s3 + $0x78] sm:$0xff]  ;;  %v2201_v61 = vld [vmem:[#allocation2 + $0x288] sm:$0xff] }
 0x60e   :  { %4031 = vrcp.f32 %v2146_v37  ;;  %v4010_v24 = vpop.eup %4009  ;;  %v2185_v30 = vmul.f32 %v4008_v23, %v4006_v12  ;;  %v2200_v12 = vld [vmem:[#allocation2 + $0x280] sm:$0xff] }
 0x60f   :  { %4033 = vpow2.f32 %v3151_v22  ;;  %v4012_v36 = vpop.eup %4011 }
 0x610   :  { %4035 = vpow2.f32 %v3149_v62  ;;  %v4014_v8 = vpop.eup %4013  ;;  %v2184_v43 = vmul.f32 %v4012_v36, %v4010_v24  ;;  %v2203_v36 = vld [vmem:[#allocation2 + $0x298] sm:$0xff] }
 0x611   :  { %v4016_v26 = vpop.eup %4015 }
 0x612   :  { %v4018_v27 = vpop.eup %4017  ;;  %v2187_v18 = vmul.f32 %v4016_v26, %v4014_v8 }
 0x615   :  { %v4020_v3 = vpop.eup %4019 }
 0x616   :  { %v4022_v28 = vpop.eup %4021  ;;  %v2181_v29 = vmul.f32 %v4020_v3, %v5149_v38 }
 0x617   :  { %v4024_v31 = vpop.eup %4023  ;;  %v2186_v2 = vmul.f32 %v4022_v28, %v4018_v27  ;;  %v2202_v28 = vld [vmem:[#allocation2 + $0x290] sm:$0xff] }
 0x618   :  { %v4026_v32 = vpop.eup %4025  ;;  %v5202_v33 = vadd.f32 %v2185_v30, %v2181_v29  ;;  %v2180_v40 = vmul.f32 %v4024_v31, %v5157_v45  ;;  %v2205_v31 = vld [vmem:[#allocation2 + $0x2a8] sm:$0xff] }
 0x619   :  { %v4028_v10 = vpop.eup %4027  ;;  %v2149_v9 = vadd.f32 1.0, %v4026_v32 }
 0x61a   :  { %v4030_v39 = vpop.eup %4029  ;;  %v2183_v41 = vmul.f32 %v4028_v10, %v5153_v5  ;;  %4037 = vtanh.f32 %v5202_v33  ;;  %v5210_v13 = vadd.f32 %v2184_v43, %v2180_v40  ;;  %v2204_v40 = vld [vmem:[#allocation2 + $0x2a0] sm:$0xff] }
 0x61b   :  { %v4032_v11 = vpop.eup %4031  ;;  %v2151_v34 = vadd.f32 1.0, %v4030_v39 }
 0x61c   :  { %v4034_v1 = vpop.eup %4033  ;;  %v5206_v4 = vadd.f32 %v2187_v18, %v2183_v41  ;;  %v2182_v38 = vmul.f32 %v4032_v11, %v5159_v25  ;;  %v2207_v11 = vld [vmem:[#allocation2 + $0x2b8] sm:$0xff] }
 0x61d   :  { %v4036_v6 = vpop.eup %4035  ;;  %4039 = vrcp.f32 %v2151_v34  ;;  %v2150_v44 = vadd.f32 1.0, %v4034_v1 }
 0x61e   :  { %v5212_v45 = vadd.f32 %v2186_v2, %v2182_v38  ;;  %4041 = vtanh.f32 %v5206_v4  ;;  %v2148_v5 = vadd.f32 1.0, %v4036_v6  ;;  %v2206_v2 = vld [vmem:[#allocation2 + $0x2b0] sm:$0xff] }
 0x61f   :  { %4043 = vrcp.f32 %v2150_v44 }
 0x620   :  { %4045 = vtanh.f32 %v5212_v45 }
 0x621   :  { %4047 = vrcp.f32 %v2149_v9 }
 0x622   :  { %4049 = vtanh.f32 %v5210_v13 }
 0x623   :  { %4051 = vrcp.f32 %v2148_v5 }
 0x627   :  { %v4038_v25 = vpop.eup %4037 }
 0x62a   :  { %v4040_v20 = vpop.eup %4039 }
 0x62b   :  { %v4042_v42 = vpop.eup %4041 }
 0x62c   :  { %v4044_v46 = vpop.eup %4043  ;;  %v2199_v19 = vmul.f32 %v4042_v42, %v4040_v20 }
 0x62d   :  { %v4046_v49 = vpop.eup %4045 }
 0x62e   :  { %v4048_v35 = vpop.eup %4047  ;;  %3592 = vmatprep.subr.mxu0 %v2199_v19  ;;  %v2198_v21 = vmul.f32 %v4046_v49, %v4044_v46  ;;  %v2208_v49 = vld [vmem:[#allocation2 + $0x2c0] sm:$0xff] }
 0x62f   :  { %v4050_v51 = vpop.eup %4049  ;;  %3593 = vmatpush3.msra.mxu0 %v2199_v19  ;;  %v2197_v15 = vmul.f32 %v4048_v35, %v4038_v25  ;;  %v2209_v25 = vld [vmem:[#allocation2 + $0x2c8] sm:$0xff] }
 0x630   :  { %3594 = vmatprep.subr.mxu0 %v2198_v21  ;;  %v4052_v56 = vpop.eup %4051 }
 0x631   :  { %3595 = vmatpush3.msra.mxu0 %v2198_v21  ;;  %v2196_v52 = vmul.f32 %v4052_v56, %v4050_v51  ;;  %v2211_v56 = vld [vmem:[#allocation2 + $0x2d8] sm:$0xff] }
 0x632   :  { %3596 = vmatprep.subr.mxu0 %v2197_v15 }
 0x633   :  { %3597 = vmatpush3.msra.mxu0 %v2197_v15 }
 0x634   :  { %3598 = vmatprep.subr.mxu0 %v2196_v52 }
 0x635   :  { %3599 = vmatpush3.msra.mxu0 %v2196_v52 }
 0x636   :  { %3601 = vmatmul.mubr.msk.f32.vlgmr.msra.gmra.mxu0 %vm882_vm1, %v5220_v7 }
 0x637   :  { %3603 = vmatprep.mubr.msk.f32.mxu0 %vm882_vm1, %v5227_v57 }
 0x63a   :  { %3604 = vmatmul.mubr.msk.f32.gmra.mxu0 %vm882_vm1, %v5234_v48 }
 0x63b   :  { %3606 = vmatprep.mubr.msk.f32.mxu0 %vm882_vm1, %v5241_v50 }
 0x63e   :  { %3607 = vmatmul.mubr.msk.f32.gmra.mxu0 %vm882_vm1, %v5248_v53 }
 0x63f   :  { %3609 = vmatprep.mubr.msk.f32.mxu0 %vm882_vm1, %v5255_v54 }
 0x642   :  { %3610 = vmatmul.mubr.msk.f32.gmra.mxu0 %vm882_vm1, %v5262_v55 }
 0x643   :  { %3612 = vmatprep.mubr.msk.f32.mxu0 %vm882_vm1, %v5269_v58 }
 0x646   :  { %3613 = vmatmul.mubr.msk.f32.gmra.mxu0 %vm882_vm1, %v5276_v59 }
 0x647   :  { %3615 = vmatprep.mubr.msk.f32.mxu0 %vm882_vm1, %v5283_v60 }
 0x64a   :  { %3616 = vmatmul.mubr.msk.f32.gmra.mxu0 %vm882_vm1, %v5290_v14 }
 0x64b   :  { %3618 = vmatprep.mubr.msk.f32.mxu0 %vm882_vm1, %v5297_v63 }
 0x64e   :  { %3619 = vmatmul.mubr.msk.f32.gmra.mxu0 %vm882_vm1, %v5304_v16 }
 0x64f   :  { %3621 = vmatprep.mubr.msk.f32.mxu0 %vm882_vm1, %v5311_v0 }
 0x652   :  { %3622 = vmatmul.mubr.msk.f32.gmra.mxu0 %vm882_vm1, %v5318_v17 }
 0x653   :  { %3664 = vmatprep.mubr.msk.f32.mxu0 %vm882_vm1, %v5197_v47 }
 0x6f6   :  { %v3602_v37 = vpop.f32.mrf.mxu0 }
 0x6f7   :  { %v2288_v62 = vadd.f32 %v3602_v37, %v2201_v61 }
 0x6f8   :  { %v2282_v22 = vpop.f32.mrf.mxu0 }
 0x6f9   :  { %v3170_v23 = vmul.f32 -1.442695, %v2288_v62  ;;  %v2283_v24 = vadd.f32 %v2282_v22, %v2200_v12  ;;  %v2210_v22 = vld [vmem:[#allocation2 + $0x2d0] sm:$0xff] }
 0x6fa   :  { %v3605_v8 = vpop.f32.mrf.mxu0 }
 0x6fb   :  { %4053 = vpow2.f32 %v3170_v23  ;;  %v3169_v26 = vmul.f32 -1.442695, %v2283_v24  ;;  %v2298_v27 = vadd.f32 %v3605_v8, %v2203_v36  ;;  %v2213_v24 = vld [vmem:[#allocation2 + $0x2e8] sm:$0xff] }
 0x6fc   :  { %v2292_v3 = vpop.f32.mrf.mxu0 }
 0x6fd   :  { %4055 = vpow2.f32 %v3169_v26  ;;  %v3172_v29 = vmul.f32 -1.442695, %v2298_v27  ;;  %v2293_v30 = vadd.f32 %v2292_v3, %v2202_v28 }
 0x6fe   :  { %v3608_v32 = vpop.f32.mrf.mxu0 }
 0x6ff   :  { %4057 = vpow2.f32 %v3172_v29  ;;  %v3171_v47 = vmul.f32 -1.442695, %v2293_v30  ;;  %v2308_v10 = vadd.f32 %v3608_v32, %v2205_v31  ;;  %v2212_v31 = vld [vmem:[#allocation2 + $0x2e0] sm:$0xff]  ;;  %v2215_v32 = vld [vmem:[#allocation2 + $0x2f8] sm:$0xff] }
 0x700   :  { %v2302_v39 = vpop.f32.mrf.mxu0 }
 0x701   :  { %4059 = vpow2.f32 %v3171_v47  ;;  %v3174_v41 = vmul.f32 -1.442695, %v2308_v10  ;;  %v2303_v18 = vadd.f32 %v2302_v39, %v2204_v40 }
 0x702   :  { %v3611_v43 = vpop.f32.mrf.mxu0 }
 0x703   :  { %4061 = vpow2.f32 %v3174_v41  ;;  %v3173_v34 = vmul.f32 -1.442695, %v2303_v18  ;;  %v2318_v1 = vadd.f32 %v3611_v43, %v2207_v11  ;;  %v2214_v11 = vld [vmem:[#allocation2 + $0x2f0] sm:$0xff] }
 0x704   :  { %v2312_v38 = vpop.f32.mrf.mxu0 }
 0x705   :  { %4063 = vpow2.f32 %v3173_v34  ;;  %v3176_v6 = vmul.f32 -1.442695, %v2318_v1  ;;  %v2313_v9 = vadd.f32 %v2312_v38, %v2206_v2 }
 0x706   :  { %v3614_v44 = vpop.f32.mrf.mxu0 }
 0x707   :  { %4065 = vpow2.f32 %v3176_v6  ;;  %v3175_v5 = vmul.f32 -1.442695, %v2313_v9  ;;  %v2328_v42 = vadd.f32 %v3614_v44, %v2209_v25 }
 0x708   :  { %v4054_v20 = vpop.eup %4053  ;;  %v2322_v46 = vpop.f32.mrf.mxu0 }
 0x709   :  { %v2398_v19 = vadd.f32 1.0, %v4054_v20  ;;  %4067 = vpow2.f32 %v3175_v5  ;;  %v2323_v21 = vadd.f32 %v2322_v46, %v2208_v49 }
 0x70a   :  { %v4056_v35 = vpop.eup %4055  ;;  %v3617_v51 = vpop.f32.mrf.mxu0  ;;  %4069 = vtanh.f32 %v2328_v42 }
 0x70b   :  { %v2397_v15 = vadd.f32 1.0, %v4056_v35  ;;  %v2338_v61 = vadd.f32 %v3617_v51, %v2211_v56  ;;  %4071 = vrcp.f32 %v2398_v19 }
 0x70c   :  { %v4058_v52 = vpop.eup %4057  ;;  %v2332_v37 = vpop.f32.mrf.mxu0  ;;  %4073 = vtanh.f32 %v2323_v21 }
 0x70d   :  { %v2400_v62 = vadd.f32 1.0, %v4058_v52  ;;  %v2333_v23 = vadd.f32 %v2332_v37, %v2210_v22  ;;  %4075 = vrcp.f32 %v2397_v15 }
 0x70e   :  { %v4060_v12 = vpop.eup %4059  ;;  %v3620_v36 = vpop.f32.mrf.mxu0  ;;  %4077 = vtanh.f32 %v2338_v61 }
 0x70f   :  { %v2348_v8 = vadd.f32 %v3620_v36, %v2213_v24  ;;  %v2399_v27 = vadd.f32 1.0, %v4060_v12  ;;  %4079 = vrcp.f32 %v2400_v62 }
 0x710   :  { %v4062_v26 = vpop.eup %4061  ;;  %v2342_v3 = vpop.f32.mrf.mxu0  ;;  %4081 = vtanh.f32 %v2333_v23 }
 0x711   :  { %v2402_v28 = vadd.f32 1.0, %v4062_v26  ;;  %v3178_v30 = vmul.f32 -1.442695, %v2348_v8  ;;  %v2343_v39 = vadd.f32 %v2342_v3, %v2212_v31 }
 0x712   :  { %v4064_v29 = vpop.eup %4063  ;;  %v3623_v47 = vpop.f32.mrf.mxu0 }
 0x713   :  { %4083 = vrcp.f32 %v2402_v28  ;;  %v2401_v10 = vadd.f32 1.0, %v4064_v29  ;;  %v2358_v40 = vadd.f32 %v3623_v47, %v2215_v32  ;;  %v3177_v6 = vmul.f32 -1.442695, %v2343_v39 }
 0x714   :  { %v4066_v41 = vpop.eup %4065  ;;  %4085 = vrcp.f32 %v2399_v27  ;;  %v2352_v18 = vpop.f32.mrf.mxu0 }
 0x715   :  { %4087 = vrcp.f32 %v2401_v10  ;;  %v2404_v43 = vadd.f32 1.0, %v4066_v41  ;;  %v3180_v34 = vmul.f32 -1.442695, %v2358_v40  ;;  %v2353_v1 = vadd.f32 %v2352_v18, %v2214_v11 }
 0x716   :  { %v4068_v38 = vpop.eup %4067  ;;  %4089 = vpow2.f32 %v3178_v30 }
 0x717   :  { %4091 = vrcp.f32 %v2404_v43  ;;  %v2403_v2 = vadd.f32 1.0, %v4068_v38  ;;  %v3179_v9 = vmul.f32 -1.442695, %v2353_v1  ;;  %v4070_v44 = vpop.eup %4069  ;;  %v2458_v1 = vld [vmem:[#allocation2 + $0x308] sm:$0xff] }
 0x718   :  { %4093 = vpow2.f32 %v3180_v34  ;;  %v4072_v5 = vpop.eup %4071 }
 0x719   :  { %4095 = vrcp.f32 %v2403_v2  ;;  %v4074_v25 = vpop.eup %4073  ;;  %v2442_v51 = vmul.f32 %v4072_v5, %v4070_v44 }
 0x71a   :  { %4097 = vpow2.f32 %v3179_v9  ;;  %v4076_v20 = vpop.eup %4075  ;;  %v2457_v9 = vld [vmem:[#allocation2 + $0x300] sm:$0xff] }
 0x71b   :  { %4099 = vpow2.f32 %v3177_v6  ;;  %v4078_v42 = vpop.eup %4077  ;;  %v2441_v24 = vmul.f32 %v4076_v20, %v4074_v25  ;;  %v2460_v25 = vld [vmem:[#allocation2 + $0x318] sm:$0xff] }
 0x71c   :  { %v4080_v46 = vpop.eup %4079 }
 0x71d   :  { %v4082_v19 = vpop.eup %4081  ;;  %v2444_v12 = vmul.f32 %v4080_v46, %v4078_v42 }
 0x720   :  { %v4084_v49 = vpop.eup %4083 }
 0x721   :  { %v4086_v35 = vpop.eup %4085  ;;  %v2438_v21 = vmul.f32 %v4084_v49, %v5202_v33  ;;  %v2459_v49 = vld [vmem:[#allocation2 + $0x310] sm:$0xff] }
 0x722   :  { %v4088_v15 = vpop.eup %4087  ;;  %v2443_v27 = vmul.f32 %v4086_v35, %v4082_v19 }
 0x723   :  { %v4090_v56 = vpop.eup %4089  ;;  %v5325_v52 = vadd.f32 %v2442_v51, %v2438_v21  ;;  %v2437_v62 = vmul.f32 %v4088_v15, %v5210_v13  ;;  %v2462_v51 = vld [vmem:[#allocation2 + $0x328] sm:$0xff] }
 0x724   :  { %v4092_v61 = vpop.eup %4091  ;;  %v2406_v28 = vadd.f32 1.0, %v4090_v56 }
 0x725   :  { %v4094_v37 = vpop.eup %4093  ;;  %v2440_v22 = vmul.f32 %v4092_v61, %v5206_v4  ;;  %4101 = vtanh.f32 %v5325_v52  ;;  %v5333_v30 = vadd.f32 %v2441_v24, %v2437_v62  ;;  %v2461_v62 = vld [vmem:[#allocation2 + $0x320] sm:$0xff] }
 0x726   :  { %v4096_v23 = vpop.eup %4095  ;;  %v2408_v36 = vadd.f32 1.0, %v4094_v37 }
 0x727   :  { %v4098_v8 = vpop.eup %4097  ;;  %v5329_v26 = vadd.f32 %v2444_v12, %v2440_v22  ;;  %v2439_v33 = vmul.f32 %v4096_v23, %v5212_v45  ;;  %v2464_v23 = vld [vmem:[#allocation2 + $0x338] sm:$0xff] }
 0x728   :  { %v4100_v3 = vpop.eup %4099  ;;  %4103 = vrcp.f32 %v2408_v36  ;;  %v2407_v29 = vadd.f32 1.0, %v4098_v8 }
 0x729   :  { %v5335_v13 = vadd.f32 %v2443_v27, %v2439_v33  ;;  %4105 = vtanh.f32 %v5329_v26  ;;  %v2405_v4 = vadd.f32 1.0, %v4100_v3  ;;  %v2463_v27 = vld [vmem:[#allocation2 + $0x330] sm:$0xff] }
 0x72a   :  { %4107 = vrcp.f32 %v2407_v29 }
 0x72b   :  { %4109 = vtanh.f32 %v5335_v13 }
 0x72c   :  { %4111 = vrcp.f32 %v2406_v28 }
 0x72d   :  { %4113 = vtanh.f32 %v5333_v30 }
 0x72e   :  { %4115 = vrcp.f32 %v2405_v4 }
 0x732   :  { %v4102_v45 = vpop.eup %4101 }
 0x735   :  { %v4104_v31 = vpop.eup %4103 }
 0x736   :  { %v4106_v32 = vpop.eup %4105 }
 0x737   :  { %v4108_v47 = vpop.eup %4107  ;;  %v2456_v10 = vmul.f32 %v4106_v32, %v4104_v31 }
 0x738   :  { %v4110_v39 = vpop.eup %4109 }
 0x739   :  { %v4112_v40 = vpop.eup %4111  ;;  %3624 = vmatprep.subr.mxu1 %v2456_v10  ;;  %v2455_v41 = vmul.f32 %v4110_v39, %v4108_v47  ;;  %v2465_v39 = vld [vmem:[#allocation2 + $0x340] sm:$0xff] }
 0x73a   :  { %v4114_v18 = vpop.eup %4113  ;;  %3625 = vmatpush3.msra.mxu1 %v2456_v10  ;;  %v2454_v11 = vmul.f32 %v4112_v40, %v4102_v45  ;;  %v2466_v45 = vld [vmem:[#allocation2 + $0x348] sm:$0xff] }
 0x73b   :  { %3626 = vmatprep.subr.mxu1 %v2455_v41  ;;  %v4116_v43 = vpop.eup %4115 }
 0x73c   :  { %3627 = vmatpush3.msra.mxu1 %v2455_v41  ;;  %v2453_v34 = vmul.f32 %v4116_v43, %v4114_v18  ;;  %v2468_v43 = vld [vmem:[#allocation2 + $0x358] sm:$0xff] }
 0x73d   :  { %3628 = vmatprep.subr.mxu1 %v2454_v11 }
 0x73e   :  { %3629 = vmatpush3.msra.mxu1 %v2454_v11 }
 0x73f   :  { %3630 = vmatprep.subr.mxu1 %v2453_v34 }
 0x740   :  { %3631 = vmatpush3.msra.mxu1 %v2453_v34 }
 0x741   :  { %3633 = vmatmul.mubr.msk.f32.vlgmr.msra.gmra.mxu1 %vm882_vm1, %v5220_v7 }
 0x742   :  { %3635 = vmatprep.mubr.msk.f32.mxu1 %vm882_vm1, %v5227_v57 }
 0x745   :  { %3636 = vmatmul.mubr.msk.f32.gmra.mxu1 %vm882_vm1, %v5234_v48 }
 0x746   :  { %3638 = vmatprep.mubr.msk.f32.mxu1 %vm882_vm1, %v5241_v50 }
 0x749   :  { %3639 = vmatmul.mubr.msk.f32.gmra.mxu1 %vm882_vm1, %v5248_v53 }
 0x74a   :  { %3641 = vmatprep.mubr.msk.f32.mxu1 %vm882_vm1, %v5255_v54 }
 0x74d   :  { %3642 = vmatmul.mubr.msk.f32.gmra.mxu1 %vm882_vm1, %v5262_v55 }
 0x74e   :  { %3644 = vmatprep.mubr.msk.f32.mxu1 %vm882_vm1, %v5269_v58 }
 0x751   :  { %3645 = vmatmul.mubr.msk.f32.gmra.mxu1 %vm882_vm1, %v5276_v59 }
 0x752   :  { %3647 = vmatprep.mubr.msk.f32.mxu1 %vm882_vm1, %v5283_v60 }
 0x755   :  { %3648 = vmatmul.mubr.msk.f32.gmra.mxu1 %vm882_vm1, %v5290_v14 }
 0x756   :  { %3650 = vmatprep.mubr.msk.f32.mxu1 %vm882_vm1, %v5297_v63 }
 0x759   :  { %3651 = vmatmul.mubr.msk.f32.gmra.mxu1 %vm882_vm1, %v5304_v16 }
 0x75a   :  { %3653 = vmatprep.mubr.msk.f32.mxu1 %vm882_vm1, %v5311_v0 }
 0x75d   :  { %3654 = vmatmul.mubr.msk.f32.gmra.mxu1 %vm882_vm1, %v5318_v17 }
 0x801   :  { %v3634_v38 = vpop.f32.mrf.mxu1 }
 0x802   :  { %v2545_v2 = vadd.f32 %v3634_v38, %v2458_v1 }
 0x803   :  { %v2539_v6 = vpop.f32.mrf.mxu1 }
 0x804   :  { %v3198_v44 = vmul.f32 -1.442695, %v2545_v2  ;;  %v2540_v5 = vadd.f32 %v2539_v6, %v2457_v9  ;;  %v2467_v6 = vld [vmem:[#allocation2 + $0x350] sm:$0xff] }
 0x805   :  { %v3637_v20 = vpop.f32.mrf.mxu1 }
 0x806   :  { %4117 = vpow2.f32 %v3198_v44  ;;  %v3197_v42 = vmul.f32 -1.442695, %v2540_v5  ;;  %v2555_v46 = vadd.f32 %v3637_v20, %v2460_v25  ;;  %v2470_v5 = vld [vmem:[#allocation2 + $0x368] sm:$0xff] }
 0x807   :  { %v2549_v19 = vpop.f32.mrf.mxu1 }
 0x808   :  { %4119 = vpow2.f32 %v3197_v42  ;;  %v3200_v35 = vmul.f32 -1.442695, %v2555_v46  ;;  %v2550_v21 = vadd.f32 %v2549_v19, %v2459_v49 }
 0x809   :  { %v3640_v15 = vpop.f32.mrf.mxu1 }
 0x80a   :  { %4121 = vpow2.f32 %v3200_v35  ;;  %v3199_v56 = vmul.f32 -1.442695, %v2550_v21  ;;  %v2565_v61 = vadd.f32 %v3640_v15, %v2462_v51  ;;  %v2469_v51 = vld [vmem:[#allocation2 + $0x360] sm:$0xff]  ;;  %v2472_v15 = vld [vmem:[#allocation2 + $0x378] sm:$0xff] }
 0x80b   :  { %v2559_v37 = vpop.f32.mrf.mxu1 }
 0x80c   :  { %4123 = vpow2.f32 %v3199_v56  ;;  %v3202_v22 = vmul.f32 -1.442695, %v2565_v61  ;;  %v2560_v12 = vadd.f32 %v2559_v37, %v2461_v62 }
 0x80d   :  { %v3643_v24 = vpop.f32.mrf.mxu1 }
 0x80e   :  { %4125 = vpow2.f32 %v3202_v22  ;;  %v3201_v36 = vmul.f32 -1.442695, %v2560_v12  ;;  %v2575_v8 = vadd.f32 %v3643_v24, %v2464_v23  ;;  %v2471_v23 = vld [vmem:[#allocation2 + $0x370] sm:$0xff] }
 0x80f   :  { %v2569_v33 = vpop.f32.mrf.mxu1 }
 0x810   :  { %4127 = vpow2.f32 %v3201_v36  ;;  %v3204_v3 = vmul.f32 -1.442695, %v2575_v8  ;;  %v2570_v28 = vadd.f32 %v2569_v33, %v2463_v27 }
 0x811   :  { %v3646_v29 = vpop.f32.mrf.mxu1 }
 0x812   :  { %4129 = vpow2.f32 %v3204_v3  ;;  %v3203_v4 = vmul.f32 -1.442695, %v2570_v28  ;;  %v2585_v32 = vadd.f32 %v3646_v29, %v2466_v45 }
 0x813   :  { %v4118_v31 = vpop.eup %4117  ;;  %v2579_v47 = vpop.f32.mrf.mxu1 }
 0x814   :  { %v2655_v10 = vadd.f32 1.0, %v4118_v31  ;;  %4131 = vpow2.f32 %v3203_v4  ;;  %v2580_v41 = vadd.f32 %v2579_v47, %v2465_v39 }
 0x815   :  { %v4120_v40 = vpop.eup %4119  ;;  %v3649_v18 = vpop.f32.mrf.mxu1  ;;  %4133 = vtanh.f32 %v2585_v32 }
 0x816   :  { %v2654_v11 = vadd.f32 1.0, %v4120_v40  ;;  %v2595_v1 = vadd.f32 %v3649_v18, %v2468_v43  ;;  %4135 = vrcp.f32 %v2655_v10 }
 0x817   :  { %v4122_v34 = vpop.eup %4121  ;;  %v2589_v38 = vpop.f32.mrf.mxu1  ;;  %4137 = vtanh.f32 %v2580_v41 }
 0x818   :  { %v2657_v2 = vadd.f32 1.0, %v4122_v34  ;;  %v2590_v44 = vadd.f32 %v2589_v38, %v2467_v6  ;;  %4139 = vrcp.f32 %v2654_v11 }
 0x819   :  { %v4124_v9 = vpop.eup %4123  ;;  %v3652_v25 = vpop.f32.mrf.mxu1  ;;  %4141 = vtanh.f32 %v2595_v1 }
 0x81a   :  { %v2605_v20 = vadd.f32 %v3652_v25, %v2470_v5  ;;  %v2656_v46 = vadd.f32 1.0, %v4124_v9  ;;  %4143 = vrcp.f32 %v2657_v2 }
 0x81b   :  { %v4126_v42 = vpop.eup %4125  ;;  %v2599_v19 = vpop.f32.mrf.mxu1  ;;  %4145 = vtanh.f32 %v2590_v44 }
 0x81c   :  { %v2659_v49 = vadd.f32 1.0, %v4126_v42  ;;  %v3206_v21 = vmul.f32 -1.442695, %v2605_v20  ;;  %v2600_v37 = vadd.f32 %v2599_v19, %v2469_v51 }
 0x81d   :  { %v4128_v35 = vpop.eup %4127  ;;  %v3655_v56 = vpop.f32.mrf.mxu1 }
 0x81e   :  { %4147 = vrcp.f32 %v2659_v49  ;;  %v2658_v61 = vadd.f32 1.0, %v4128_v35  ;;  %v2615_v62 = vadd.f32 %v3655_v56, %v2472_v15  ;;  %v3205_v3 = vmul.f32 -1.442695, %v2600_v37 }
 0x81f   :  { %v4130_v22 = vpop.eup %4129  ;;  %4149 = vrcp.f32 %v2656_v46  ;;  %v2609_v12 = vpop.f32.mrf.mxu1 }
 0x820   :  { %4151 = vrcp.f32 %v2658_v61  ;;  %v2661_v24 = vadd.f32 1.0, %v4130_v22  ;;  %v3208_v36 = vmul.f32 -1.442695, %v2615_v62  ;;  %v2610_v8 = vadd.f32 %v2609_v12, %v2471_v23 }
 0x821   :  { %v4132_v33 = vpop.eup %4131  ;;  %4153 = vpow2.f32 %v3206_v21 }
 0x822   :  { %4155 = vrcp.f32 %v2661_v24  ;;  %v2660_v27 = vadd.f32 1.0, %v4132_v33  ;;  %v3207_v28 = vmul.f32 -1.442695, %v2610_v8  ;;  %v4134_v29 = vpop.eup %4133 }
 0x823   :  { %4157 = vpow2.f32 %v3208_v36  ;;  %v4136_v4 = vpop.eup %4135 }
 0x824   :  { %4159 = vrcp.f32 %v2660_v27  ;;  %v4138_v45 = vpop.eup %4137  ;;  %v2699_v18 = vmul.f32 %v4136_v4, %v4134_v29  ;;  %v2716_v27 = vld [vmem:[#allocation2 + $0x3b0] sm:$0xff] }
 0x825   :  { %4161 = vpow2.f32 %v3207_v28  ;;  %v4140_v31 = vpop.eup %4139 }
 0x826   :  { %4163 = vpow2.f32 %v3205_v3  ;;  %v4142_v32 = vpop.eup %4141  ;;  %v2698_v5 = vmul.f32 %v4140_v31, %v4138_v45 }
 0x827   :  { %v4144_v47 = vpop.eup %4143 }
 0x828   :  { %v4146_v10 = vpop.eup %4145  ;;  %v2701_v9 = vmul.f32 %v4144_v47, %v4142_v32 }
 0x82b   :  { %v4148_v39 = vpop.eup %4147 }
 0x82c   :  { %v4150_v40 = vpop.eup %4149  ;;  %v2695_v41 = vmul.f32 %v4148_v39, %v5325_v52 }
 0x82d   :  { %v4152_v11 = vpop.eup %4151  ;;  %v2700_v46 = vmul.f32 %v4150_v40, %v4146_v10  ;;  %v2719_v10 = vld [vmem:[#allocation2 + $0x3d8] sm:$0xff] }
 0x82e   :  { %v4154_v43 = vpop.eup %4153  ;;  %v2703_v34 = vadd.f32 %v2699_v18, %v2695_v41  ;;  %v2694_v2 = vmul.f32 %v4152_v11, %v5333_v30  ;;  %v2718_v11 = vld [vmem:[#allocation2 + $0x3d0] sm:$0xff] }
 0x82f   :  { %v4156_v1 = vpop.eup %4155  ;;  %v2663_v49 = vadd.f32 1.0, %v4154_v43 }
 0x830   :  { %v4158_v38 = vpop.eup %4157  ;;  %v2697_v6 = vmul.f32 %v4156_v1, %v5329_v26  ;;  %4165 = vtanh.f32 %v2703_v34  ;;  %v2702_v21 = vadd.f32 %v2698_v5, %v2694_v2  ;;  %v2720_v5 = vld [vmem:[#allocation2 + $0x3f0] sm:$0xff] }
 0x831   :  { %v4160_v44 = vpop.eup %4159  ;;  %v2665_v25 = vadd.f32 1.0, %v4158_v38  ;;  %v2721_v38 = vld [vmem:[#allocation2 + $0x3f8] sm:$0xff] }
 0x832   :  { %v4162_v20 = vpop.eup %4161  ;;  %v5373_v42 = vadd.f32 %v2701_v9, %v2697_v6  ;;  %v2696_v52 = vmul.f32 %v4160_v44, %v5335_v13 }
 0x833   :  { %v4164_v19 = vpop.eup %4163  ;;  %4167 = vrcp.f32 %v2665_v25  ;;  %v2664_v35 = vadd.f32 1.0, %v4162_v20 }
 0x834   :  { %v5376_v51 = vadd.f32 %v2700_v46, %v2696_v52  ;;  %4169 = vtanh.f32 %v5373_v42  ;;  %v2662_v26 = vadd.f32 1.0, %v4164_v19 }
 0x835   :  { %4171 = vrcp.f32 %v2664_v35 }
 0x836   :  { %4173 = vtanh.f32 %v5376_v51 }
 0x837   :  { %4175 = vrcp.f32 %v2663_v49 }
 0x838   :  { %4177 = vtanh.f32 %v2702_v21 }
 0x839   :  { %4179 = vrcp.f32 %v2662_v26 }
 0x83d   :  { %v4166_v30 = vpop.eup %4165 }
 0x840   :  { %v4168_v15 = vpop.eup %4167 }
 0x841   :  { %v4170_v13 = vpop.eup %4169 }
 0x842   :  { %v4172_v56 = vpop.eup %4171  ;;  %v2713_v61 = vmul.f32 %v4170_v13, %v4168_v15 }
 0x843   :  { %v4174_v37 = vpop.eup %4173 }
 0x844   :  { %v4176_v62 = vpop.eup %4175  ;;  %3656 = vmatprep.subr.mxu0 %v2713_v61  ;;  %v2712_v22 = vmul.f32 %v4174_v37, %v4172_v56 }
 0x845   :  { %v4178_v12 = vpop.eup %4177  ;;  %3657 = vmatpush3.msra.mxu0 %v2713_v61  ;;  %v2711_v23 = vmul.f32 %v4176_v62, %v4166_v30 }
 0x846   :  { %3658 = vmatprep.subr.mxu0 %v2712_v22  ;;  %v4180_v24 = vpop.eup %4179 }
 0x847   :  { %3659 = vmatpush3.msra.mxu0 %v2712_v22  ;;  %v2710_v36 = vmul.f32 %v4180_v24, %v4178_v12 }
 0x848   :  { %3660 = vmatprep.subr.mxu0 %v2711_v23 }
 0x849   :  { %3661 = vmatpush3.msra.mxu0 %v2711_v23 }
 0x84a   :  { %3662 = vmatprep.subr.mxu0 %v2710_v36 }
 0x84b   :  { %3663 = vmatpush3.msra.mxu0 %v2710_v36 }
 0x84c   :  { %3665 = vmatmul.mubr.msk.f32.vlgmr.msra.gmra.mxu0 %vm882_vm1, %v5220_v7  ;;  %v4253_v7 = vmov 0.0  }
 0x84d   :  { %3667 = vmatprep.mubr.msk.f32.mxu0 %vm882_vm1, %v5227_v57  ;;  %3688 = vmatprep.subr.mxu1 %v4253_v7 }
 0x84e   :  { %3692 = vmatprep.mubr.msk.f32.mxu1 %vm4254_vm3, %v4253_v7 }
 0x850   :  { %3668 = vmatmul.mubr.msk.f32.gmra.mxu0 %vm882_vm1, %v5234_v48 }
 0x851   :  { %3670 = vmatprep.mubr.msk.f32.mxu0 %vm882_vm1, %v5241_v50  ;;  %v2715_v50 = vld [vmem:[#allocation2 + $0x398] sm:$0xff] }
 0x854   :  { %3671 = vmatmul.mubr.msk.f32.gmra.mxu0 %vm882_vm1, %v5248_v53 }
 0x855   :  { %3673 = vmatprep.mubr.msk.f32.mxu0 %vm882_vm1, %v5255_v54 }
 0x858   :  { %3674 = vmatmul.mubr.msk.f32.gmra.mxu0 %vm882_vm1, %v5262_v55 }
 0x859   :  { %3676 = vmatprep.mubr.msk.f32.mxu0 %vm882_vm1, %v5269_v58  ;;  %v2714_v58 = vld [vmem:[#allocation2 + $0x390] sm:$0xff] }
 0x85c   :  { %3677 = vmatmul.mubr.msk.f32.gmra.mxu0 %vm882_vm1, %v5276_v59 }
 0x85d   :  { %3679 = vmatprep.mubr.msk.f32.mxu0 %vm882_vm1, %v5283_v60 }
 0x860   :  { %3680 = vmatmul.mubr.msk.f32.gmra.mxu0 %vm882_vm1, %v5290_v14 }
 0x861   :  { %3682 = vmatprep.mubr.msk.f32.mxu0 %vm882_vm1, %v5297_v63 }
 0x864   :  { %3683 = vmatmul.mubr.msk.f32.gmra.mxu0 %vm882_vm1, %v5304_v16 }
 0x865   :  { %3685 = vmatprep.mubr.msk.f32.mxu0 %vm882_vm1, %v5311_v0  ;;  %v2717_v0 = vld [vmem:[#allocation2 + $0x3b8] sm:$0xff] }
 0x868   :  { %3686 = vmatmul.mubr.msk.f32.gmra.mxu0 %vm882_vm1, %v5318_v17 }
 0x90c   :  { %v3666_v57 = vpop.f32.mrf.mxu0 }
 0x90e   :  { %v2788_v48 = vpop.f32.mrf.mxu0 }
 0x910   :  { %v3669_v53 = vpop.f32.mrf.mxu0 }
 0x911   :  { %v2802_v54 = vadd.f32 %v3669_v53, %v2715_v50 }
 0x912   :  { %v2796_v55 = vpop.f32.mrf.mxu0 }
 0x913   :  { %v3226_v59 = vmul.f32 -1.442695, %v2802_v54  ;;  %v2797_v60 = vadd.f32 %v2796_v55, %v2714_v58  ;;  %v2907_v58 = vld [vmem:[%s5427_s4] sm:$0xff] }
 0x914   :  { %v3672_v14 = vpop.f32.mrf.mxu0 }
 0x915   :  { %v3225_v63 = vmul.f32 -1.442695, %v2797_v60  ;;  %4181 = vpow2.f32 %v3226_v59 }
 0x916   :  { %v2806_v16 = vpop.f32.mrf.mxu0 }
 0x917   :  { %4183 = vpow2.f32 %v3225_v63 }
 0x918   :  { %v3675_v17 = vpop.f32.mrf.mxu0 }
 0x919   :  { %v2820_v8 = vadd.f32 %v3675_v17, %v2717_v0 }
 0x91a   :  { %v2814_v33 = vpop.f32.mrf.mxu0 }
 0x91b   :  { %v3228_v3 = vmul.f32 -1.442695, %v2820_v8  ;;  %v2815_v28 = vadd.f32 %v2814_v33, %v2716_v27 }
 0x91c   :  { %v3678_v29 = vpop.f32.mrf.mxu0 }
 0x91d   :  { %4185 = vpow2.f32 %v3228_v3  ;;  %v3227_v4 = vmul.f32 -1.442695, %v2815_v28 }
 0x91e   :  { %v2824_v45 = vpop.f32.mrf.mxu0 }
 0x91f   :  { %4187 = vpow2.f32 %v3227_v4 }
 0x920   :  { %v3681_v31 = vpop.f32.mrf.mxu0 }
 0x921   :  { %v2838_v41 = vadd.f32 %v3681_v31, %v2719_v10 }
 0x922   :  { %v2832_v32 = vpop.f32.mrf.mxu0  ;;  %v4182_v47 = vpop.eup %4181 }
 0x923   :  { %v2878_v18 = vadd.f32 1.0, %v4182_v47  ;;  %v2833_v34 = vadd.f32 %v2832_v32, %v2718_v11  ;;  %4189 = vtanh.f32 %v2838_v41 }
 0x924   :  { %v3684_v39 = vpop.f32.mrf.mxu0  ;;  %v4184_v40 = vpop.eup %4183 }
 0x925   :  { %v2877_v1 = vadd.f32 1.0, %v4184_v40  ;;  %4191 = vrcp.f32 %v2878_v18 }
 0x926   :  { %v2842_v43 = vpop.f32.mrf.mxu0  ;;  %4193 = vtanh.f32 %v2833_v34 }
 0x927   :  { %4195 = vrcp.f32 %v2877_v1 }
 0x928   :  { %v3687_v2 = vpop.f32.mrf.mxu0 }
 0x929   :  { %v2856_v6 = vadd.f32 %v3687_v2, %v2721_v38 }
 0x92a   :  { %v4186_v9 = vpop.eup %4185  ;;  %v2850_v44 = vpop.f32.mrf.mxu0 }
 0x92b   :  { %v2880_v25 = vadd.f32 1.0, %v4186_v9  ;;  %v3230_v20 = vmul.f32 -1.442695, %v2856_v6  ;;  %v2851_v52 = vadd.f32 %v2850_v44, %v2720_v5 }
 0x92c   :  { %v4188_v46 = vpop.eup %4187 }
 0x92d   :  { %4197 = vrcp.f32 %v2880_v25  ;;  %v2879_v19 = vadd.f32 1.0, %v4188_v46  ;;  %v3229_v49 = vmul.f32 -1.442695, %v2851_v52 }
 0x92e   :  { %4199 = vpow2.f32 %v3230_v20 }
 0x92f   :  { %4201 = vrcp.f32 %v2879_v19 }
 0x930   :  { %4203 = vpow2.f32 %v3229_v49  ;;  %v4190_v35 = vpop.eup %4189 }
 0x932   :  { %v4192_v21 = vpop.eup %4191 }
 0x933   :  { %v4194_v26 = vpop.eup %4193  ;;  %v2900_v61 = vmul.f32 %v4192_v21, %v4190_v35 }
 0x934   :  { %v4196_v30 = vpop.eup %4195 }
 0x935   :  { %v2899_v24 = vmul.f32 %v4196_v30, %v4194_v26 }
 0x93a   :  { %v4198_v15 = vpop.eup %4197 }
 0x93b   :  { %v4200_v13 = vpop.eup %4199  ;;  %v2898_v56 = vmul.f32 %v4198_v15, %v5373_v42 }
 0x93c   :  { %v4202_v37 = vpop.eup %4201  ;;  %v2882_v62 = vadd.f32 1.0, %v4200_v13 }
 0x93d   :  { %v4204_v22 = vpop.eup %4203  ;;  %v2902_v12 = vadd.f32 %v2900_v61, %v2898_v56  ;;  %v2897_v23 = vmul.f32 %v4202_v37, %v5376_v51  ;;  %v2912_v51 = vpop.permute.xlu0 %2911 }
 0x93e   :  { %4205 = vrcp.f32 %v2882_v62  ;;  %v2881_v36 = vadd.f32 1.0, %v4204_v22 }
 0x93f   :  { %4207 = vtanh.f32 %v2902_v12  ;;  %v2901_v57 = vadd.f32 %v2899_v24, %v2897_v23 }
 0x940   :  { %4209 = vrcp.f32 %v2881_v36 }
 0x941   :  { %4211 = vtanh.f32 %v2901_v57 }
 0x94b   :  { %v4206_v48 = vpop.eup %4205 }
 0x94c   :  { %v4208_v50 = vpop.eup %4207 }
 0x94d   :  { %v4210_v53 = vpop.eup %4209  ;;  %v2906_v54 = vmul.f32 %v4208_v50, %v4206_v48 }
 0x94e   :  { %v4212_v55 = vpop.eup %4211 }
 0x94f   :  { %3689 = vmatpush3.msra.mxu1 %v2906_v54  ;;  %v2905_v42 = vmul.f32 %v4212_v55, %v4210_v53 }
 0x950   :  { %3690 = vmatprep.subr.mxu1 %v4253_v7 }
 0x951   :  { %3691 = vmatpush3.msra.mxu1 %v2905_v42 }
 0x952   :  { %3693 = vmatmul.mubr.msk.f32.vlgmr.msra.gmra.mxu1 %vm2914_vm4, %v2907_v58 }
 0xa12   :  { %v2984_v59 = vpop.f32.mrf.mxu1 }
 0xa13   :  { %v2985_v60 = vadd.f32 %v2984_v59, %v2912_v51 }
 0xa14   :  { %v3694_v14 = vpop.f32.mrf.mxu1 }
 0xa15   :  { %2988 = vst.msk [vmem:[%s5428_s6] sm:$0xff] %vm394_vm2, %v2985_v60 }

</bundles_post_ra>
